<compile_context>
chip_gen: v7x
topology: tpu7x:2x2x1
jax: 0.10.0
libtpu: 0.0.40
codegen_flags: <defaults>
</compile_context>

<pallas_src>
import functools
import math
from collections import namedtuple

import jax
import jax.numpy as jnp
from jax.experimental import pallas as pl
from jax.experimental.pallas import tpu as pltpu


def _round_up(x, m):
    return ((x + m - 1) // m) * m


Dims = namedtuple(
    "Dims",
    ["k1", "s1", "k2", "s2", "C", "C1", "C2", "FH",
     "oh1", "ow1", "oh2", "ow2", "M1", "M2",
     "K1", "K1P", "C1P", "C2P", "NA", "NAP"],
)


def compute_dims(C, H, W, n_actions):
    k1, s1, k2, s2 = 8, 4, 4, 2
    C1, C2, FH = 168, 324, 256
    oh1 = (H - k1) // s1 + 1
    ow1 = (W - k1) // s1 + 1
    oh2 = (oh1 - k2) // s2 + 1
    ow2 = (ow1 - k2) // s2 + 1
    assert oh2 >= 1 and ow2 >= 1, "input spatial size too small for the conv stack"
    K1 = C * k1 * k1
    return Dims(k1=k1, s1=s1, k2=k2, s2=s2, C=C, C1=C1, C2=C2, FH=FH,
                oh1=oh1, ow1=ow1, oh2=oh2, ow2=ow2,
                M1=oh1 * ow1, M2=oh2 * ow2,
                K1=K1, K1P=_round_up(K1, 128),
                C1P=_round_up(C1, 128), C2P=_round_up(C2, 128),
                NA=n_actions, NAP=_round_up(n_actions, 128))


def choose_batch_tile(B, m1):
    """Batch elements per grid step: fill >=256 MXU rows (TB*M1) when the batch
    allows (TB rounded to 8 for sublane alignment), but keep >=2 grid steps so
    both v7x TensorCores get work."""
    tb = _round_up(max(1, -(-256 // m1)), 8)
    if B >= 2:
        tb = min(tb, -(-B // 2))
    return max(1, min(tb, B))


# ----------------------------- fused Pallas kernel ---------------------------
def _dqn_fused_kernel(p1_ref, w1_ref, b1_ref, w2_ref, b2_ref,
                      fw1_ref, fb1_ref, fw2_ref, fb2_ref, o_ref, y1_ref, *,
                      d: Dims, tb: int):
    """Post-im2col DQN chain for one tile of `tb` batch elements.

    p1 rows (and the y1 scratch rows) are ordered (spatial, batch): row = p*tb + b.
    """
    f32, bf16 = jnp.float32, jnp.bfloat16

    # ---- conv1 as one GEMM: (M1*tb, K1P) @ (K1P, C1P), bf16 MXU, f32 accum ----
    y1 = jnp.dot(p1_ref[0], w1_ref[...], preferred_element_type=f32)
    y1_ref[...] = jnp.maximum(y1 + b1_ref[...], 0.0)      # stage ReLU(conv1) in VMEM
    # padded channels (>=C1) stay exactly zero (zero weights, zero bias, relu(0)=0)

    # ---- conv2: k2*k2 accumulated GEMMs; each LHS is the M2 tb-row slabs of the
    #      y1 scratch needed for kernel tap (ki,kj); row order r*tb + b matches
    #      the y2 accumulator and the fc1 packing.                               ----
    y2 = jnp.zeros((d.M2 * tb, d.C2P), f32)
    for ki in range(d.k2):
        for kj in range(d.k2):
            slabs = []
            for oi in range(d.oh2):
                for oj in range(d.ow2):
                    p = (d.s2 * oi + ki) * d.ow1 + (d.s2 * oj + kj)
                    slabs.append(y1_ref[pl.ds(p * tb, tb), :])
            lhs = jnp.concatenate(slabs, axis=0).astype(bf16)        # (M2*tb, C1P)
            blk = (ki * d.k2 + kj) * d.C1P
            y2 = y2 + jnp.dot(lhs, w2_ref[pl.ds(blk, d.C1P), :],
                              preferred_element_type=f32)
    y2 = jnp.maximum(y2 + b2_ref[...], 0.0)                          # (M2*tb, C2P)

    # ---- fc1 as one GEMM: lane-concat the M2 spatial slabs -> (tb, M2*C2P); the
    #      PyTorch NCHW flatten is absorbed into fw1's host-side packing.        ----
    h_in = jnp.concatenate([y2[r * tb:(r + 1) * tb, :] for r in range(d.M2)],
                           axis=1).astype(bf16)                      # (tb, M2*C2P)
    h = jnp.dot(h_in, fw1_ref[...], preferred_element_type=f32) + fb1_ref[...]
    h = jnp.maximum(h, 0.0).astype(bf16)                             # (tb, FH)

    # ---- fc2 (no activation); lane-dense 128-wide padded output ----
    q = jnp.dot(h, fw2_ref[...], preferred_element_type=f32) + fb2_ref[...]
    o_ref[...] = q[None].astype(o_ref.dtype)


# ------------------------------ JAX glue --------------------------------------
def _im2col_nhwc(x_nhwc, k, s):
    """(B,H,W,C) -> (B, OH*OW, C*k*k); column order c*k*k + ki*k + kj (PyTorch)."""
    B, H, W, C = x_nhwc.shape
    OH = (H - k) // s + 1
    OW = (W - k) // s + 1
    cols = []
    for ki in range(k):
        for kj in range(k):
            cols.append(x_nhwc[:, ki:ki + s * OH:s, kj:kj + s * OW:s, :])
    p = jnp.stack(cols, axis=-1)                     # (B, OH, OW, C, k*k)
    return p.reshape(B, OH * OW, C * k * k)


def init_params(key, in_ch, H, W, n_actions):
    """Deterministic synthetic init matching initialize_weights() statistics."""
    k1, k2, k3, k4 = jax.random.split(key, 4)
    w1 = jax.random.normal(k1, (168, in_ch, 8, 8), jnp.float32) * math.sqrt(2.0 / (8 * 8 * 168))
    b1 = jnp.zeros((168,), jnp.float32)
    w2 = jax.random.normal(k2, (324, 168, 4, 4), jnp.float32) * math.sqrt(2.0 / (4 * 4 * 324))
    b2 = jnp.zeros((324,), jnp.float32)
    d = compute_dims(in_ch, H, W, n_actions)
    conv_out = 324 * d.oh2 * d.ow2
    # fc weights stored already transposed (in, out); row index = c*(oh2*ow2) + oi*ow2 + oj
    fw1 = jax.random.normal(k3, (conv_out, 256), jnp.float32) * 0.01
    fb1 = jnp.zeros((256,), jnp.float32)
    fw2 = jax.random.normal(k4, (256, n_actions), jnp.float32) * 0.01
    fb2 = jnp.zeros((n_actions,), jnp.float32)
    return dict(w1=w1, b1=b1, w2=w2, b2=b2, fw1=fw1, fb1=fb1, fw2=fw2, fb2=fb2)


def pack_params(params, d: Dims):
    """One-time host-side repack: bf16 weights, 128-padded lane dims, flatten folded in."""
    # conv1: (C1, C, k1, k1) -> (K1, C1) -> pad -> bf16
    w1m = params["w1"].reshape(d.C1, -1).T
    w1m = jnp.pad(w1m, ((0, d.K1P - d.K1), (0, d.C1P - d.C1))).astype(jnp.bfloat16)
    b1p = jnp.pad(params["b1"], (0, d.C1P - d.C1)).reshape(1, -1).astype(jnp.float32)
    # conv2: (C2, C1, k2, k2) -> (ki, kj, c, n) -> pad c->C1P, n->C2P -> (k2*k2*C1P, C2P)
    w2p = jnp.transpose(params["w2"], (2, 3, 1, 0))
    w2p = jnp.pad(w2p, ((0, 0), (0, 0), (0, d.C1P - d.C1), (0, d.C2P - d.C2)))
    w2p = w2p.reshape(d.k2 * d.k2 * d.C1P, d.C2P).astype(jnp.bfloat16)
    b2p = jnp.pad(params["b2"], (0, d.C2P - d.C2)).reshape(1, -1).astype(jnp.float32)
    # fc1: rows of fw1 are PyTorch NCHW-flatten indexed (c*M2 + r).  Re-pack to
    # (M2*C2P, FH) with row = r*C2P + c so the kernel's lane-concat of the M2
    # spatial slabs of y2 feeds a single GEMM (flatten + transpose folded in).
    fw1 = params["fw1"].reshape(d.C2, d.M2, d.FH)          # [c, r, :]
    fw1p = jnp.transpose(fw1, (1, 0, 2))                   # (M2, C2, FH)
    fw1p = jnp.pad(fw1p, ((0, 0), (0, d.C2P - d.C2), (0, 0)))
    fw1p = fw1p.reshape(d.M2 * d.C2P, d.FH).astype(jnp.bfloat16)
    fb1p = params["fb1"].reshape(1, -1).astype(jnp.float32)
    # fc2: pad output lanes to NAP (128) so the final store is lane-dense.
    fw2p = jnp.pad(params["fw2"], ((0, 0), (0, d.NAP - d.NA))).astype(jnp.bfloat16)
    fb2p = jnp.pad(params["fb2"], (0, d.NAP - d.NA)).reshape(1, -1).astype(jnp.float32)
    return dict(w1=w1m, b1=b1p, w2=w2p, b2=b2p,
                fw1=fw1p, fb1=fb1p, fw2=fw2p, fb2=fb2p)


@functools.partial(jax.jit, static_argnames=("dims",))
def dqn_forward(x_nchw, packed, dims: Dims):
    d = dims
    B = x_nchw.shape[0]
    TB = choose_batch_tile(B, d.M1)
    nsteps = -(-B // TB)
    B_pad = nsteps * TB

    x = x_nchw
    if B_pad != B:
        x = jnp.pad(x, ((0, B_pad - B), (0, 0), (0, 0), (0, 0)))
    x = jnp.transpose(x, (0, 2, 3, 1))                      # NCHW -> NHWC (input glue)
    p1 = _im2col_nhwc(x, k=d.k1, s=d.s1)                    # (B_pad, M1, K1)
    if d.K1P != d.K1:
        p1 = jnp.pad(p1, ((0, 0), (0, 0), (0, d.K1P - d.K1)))
    # (spatial, batch)-major rows within each grid step: row = p*TB + b.
    p1 = (p1.reshape(nsteps, TB, d.M1, d.K1P)
            .transpose(0, 2, 1, 3)
            .reshape(nsteps, d.M1 * TB, d.K1P)
            .astype(jnp.bfloat16))

    kernel = functools.partial(_dqn_fused_kernel, d=d, tb=TB)

    flops = 2 * B_pad * (d.M1 * d.K1P * d.C1P
                         + d.M2 * (d.k2 * d.k2 * d.C1P) * d.C2P
                         + d.M2 * d.C2P * d.FH
                         + d.FH * d.NAP)
    bytes_accessed = (int(p1.size) * 2
                      + sum(int(v.size) * v.dtype.itemsize for v in packed.values())
                      + B_pad * d.NAP * 4)

    out = pl.pallas_call(
        kernel,
        out_shape=jax.ShapeDtypeStruct((nsteps, TB, d.NAP), jnp.float32),
        grid=(nsteps,),
        in_specs=[
            pl.BlockSpec((1, d.M1 * TB, d.K1P), lambda s: (s, 0, 0)),      # p1 (per step)
            pl.BlockSpec((d.K1P, d.C1P), lambda s: (0, 0)),                # w1 (resident)
            pl.BlockSpec((1, d.C1P), lambda s: (0, 0)),                    # b1
            pl.BlockSpec((d.k2 * d.k2 * d.C1P, d.C2P), lambda s: (0, 0)),  # w2
            pl.BlockSpec((1, d.C2P), lambda s: (0, 0)),                    # b2
            pl.BlockSpec((d.M2 * d.C2P, d.FH), lambda s: (0, 0)),          # fc1 weights
            pl.BlockSpec((1, d.FH), lambda s: (0, 0)),                     # fc1 bias
            pl.BlockSpec((d.FH, d.NAP), lambda s: (0, 0)),                 # fc2 weights
            pl.BlockSpec((1, d.NAP), lambda s: (0, 0)),                    # fc2 bias
        ],
        out_specs=pl.BlockSpec((1, TB, d.NAP), lambda s: (s, 0, 0)),
        scratch_shapes=[pltpu.VMEM((d.M1 * TB, d.C1P), jnp.float32)],      # y1 stage
        compiler_params=pltpu.CompilerParams(
            dimension_semantics=("parallel",),
            vmem_limit_bytes=32 * 1024 * 1024),
        cost_estimate=pl.CostEstimate(flops=flops, transcendentals=0,
                                      bytes_accessed=bytes_accessed),
    )(p1, packed["w1"], packed["b1"], packed["w2"], packed["b2"],
      packed["fw1"], packed["fb1"], packed["fw2"], packed["fb2"])

    return out.reshape(B_pad, d.NAP)[:B, :d.NA]


def _reference_forward(x_nchw, params):
    """Pure-JAX f32 reference matching the PyTorch module semantics."""
    dn = ("NCHW", "OIHW", "NCHW")
    y = jax.lax.conv_general_dilated(x_nchw, params["w1"], (4, 4), "VALID",
                                     dimension_numbers=dn)
    y = jax.nn.relu(y + params["b1"][None, :, None, None])
    y = jax.lax.conv_general_dilated(y, params["w2"], (2, 2), "VALID",
                                     dimension_numbers=dn)
    y = jax.nn.relu(y + params["b2"][None, :, None, None])
    y = y.reshape(y.shape[0], -1)                            # NCHW flatten
    h = jax.nn.relu(y @ params["fw1"] + params["fb1"])
    return h @ params["fw2"] + params["fb2"]


if __name__ == "__main__":
    # Small but valid shapes: conv stack needs H,W >= 20; use 32x32, C=4, 2 actions.
    B, C, H, W = 2, 4, 32, 32
    n_actions = 2
    dims = compute_dims(C, H, W, n_actions)

    key = jax.random.PRNGKey(0)
    kx, kp = jax.random.split(key)
    x = jax.random.normal(kx, (B, C, H, W), jnp.float32)      # NCHW, like PyTorch
    params = init_params(kp, C, H, W, n_actions)
    packed = pack_params(params, dims)                        # one-time repack

    out = dqn_forward(x, packed, dims=dims)
    jax.block_until_ready(out)
    assert out.shape == (B, n_actions), out.shape

    ref = _reference_forward(x, params)
    rel = float(jnp.max(jnp.abs(out - ref)) / (jnp.max(jnp.abs(ref)) + 1e-8))
    # bf16 MXU path vs f32 reference: expect ~1e-2 relative; a layout bug would be ~1.
    assert rel < 0.25, f"mismatch vs f32 reference: rel={rel}"
    print("KERNEL_OK")
</pallas_src>

<mosaic_0001>
module attributes {stable_mosaic.version = 11 : i64} {
  func.func @_dqn_fused_kernel(%arg0: i32, %arg1: memref<1x49x256xbf16, #tpu.memory_space<vmem>>, %arg2: memref<256x256xbf16, #tpu.memory_space<vmem>>, %arg3: memref<1x256xf32, #tpu.memory_space<vmem>>, %arg4: memref<4096x384xbf16, #tpu.memory_space<vmem>>, %arg5: memref<1x384xf32, #tpu.memory_space<vmem>>, %arg6: memref<1536x256xbf16, #tpu.memory_space<vmem>>, %arg7: memref<1x256xf32, #tpu.memory_space<vmem>>, %arg8: memref<256x128xbf16, #tpu.memory_space<vmem>>, %arg9: memref<1x128xf32, #tpu.memory_space<vmem>>, %arg10: memref<1x1x128xf32, #tpu.memory_space<vmem>>, %arg11: memref<49x256xf32, #tpu.memory_space<vmem>>) attributes {dimension_semantics = [#tpu.dimension_semantics<parallel>], iteration_bounds = array<i64: 2>, scalar_prefetch = 0 : i64, scratch_operands = 1 : i64, tpu.core_type = #tpu.core_type<tc>, window_params = [{transform_indices = @transform_0, window_bounds = array<i64: 1, 49, 256>}, {pipeline_mode = #tpu.pipeline_mode<synchronous>, transform_indices = @transform_1, window_bounds = array<i64: 256, 256>}, {pipeline_mode = #tpu.pipeline_mode<synchronous>, transform_indices = @transform_2, window_bounds = array<i64: 1, 256>}, {pipeline_mode = #tpu.pipeline_mode<synchronous>, transform_indices = @transform_3, window_bounds = array<i64: 4096, 384>}, {pipeline_mode = #tpu.pipeline_mode<synchronous>, transform_indices = @transform_4, window_bounds = array<i64: 1, 384>}, {pipeline_mode = #tpu.pipeline_mode<synchronous>, transform_indices = @transform_5, window_bounds = array<i64: 1536, 256>}, {pipeline_mode = #tpu.pipeline_mode<synchronous>, transform_indices = @transform_6, window_bounds = array<i64: 1, 256>}, {pipeline_mode = #tpu.pipeline_mode<synchronous>, transform_indices = @transform_7, window_bounds = array<i64: 256, 128>}, {pipeline_mode = #tpu.pipeline_mode<synchronous>, transform_indices = @transform_8, window_bounds = array<i64: 1, 128>}, {transform_indices = @transform_9, window_bounds = array<i64: 1, 1, 128>}]} {
    %c0 = arith.constant 0 : index
    %c0_0 = arith.constant 0 : index
    %c0_1 = arith.constant 0 : index
    %0 = vector.load %arg1[%c0, %c0_0, %c0_1] : memref<1x49x256xbf16, #tpu.memory_space<vmem>>, vector<1x49x256xbf16>
    %1 = vector.shape_cast %0 : vector<1x49x256xbf16> to vector<49x256xbf16>
    %c0_2 = arith.constant 0 : index
    %c0_3 = arith.constant 0 : index
    %2 = vector.load %arg2[%c0_2, %c0_3] : memref<256x256xbf16, #tpu.memory_space<vmem>>, vector<256x256xbf16>
    %cst = arith.constant dense<0.000000e+00> : vector<49x256xf32>
    %3 = tpu.matmul %1, %2, %cst {dimension_numbers = #tpu.dot_dimension_numbers<[1], [0], [0], [1], [0, 0, 1, 1], [], []>} : vector<49x256xbf16>, vector<256x256xbf16>, vector<49x256xf32> -> vector<49x256xf32>
    %c0_4 = arith.constant 0 : index
    %c0_5 = arith.constant 0 : index
    %4 = vector.load %arg3[%c0_4, %c0_5] : memref<1x256xf32, #tpu.memory_space<vmem>>, vector<1x256xf32>
    %5 = vector.broadcast %4 : vector<1x256xf32> to vector<49x256xf32>
    %6 = arith.addf %3, %5 : vector<49x256xf32>
    %cst_6 = arith.constant 0.000000e+00 : f32
    %7 = vector.broadcast %cst_6 : f32 to vector<49x256xf32>
    %8 = arith.maximumf %6, %7 : vector<49x256xf32>
    %c0_7 = arith.constant 0 : index
    %c0_8 = arith.constant 0 : index
    %9 = vector.load %arg11[%c0_7, %c0_8] : memref<49x256xf32, #tpu.memory_space<vmem>>, vector<49x256xf32>
    tpu.vector_store %arg11[%c0_7, %c0_8], %8 {strides = array<i32>} : memref<49x256xf32, #tpu.memory_space<vmem>>, vector<49x256xf32>,
    %cst_9 = arith.constant 0.000000e+00 : f32
    %10 = vector.broadcast %cst_9 : f32 to vector<4x384xf32>
    %c0_10 = arith.constant 0 : index
    %c0_11 = arith.constant 0 : index
    %11 = vector.load %arg11[%c0_10, %c0_11] : memref<49x256xf32, #tpu.memory_space<vmem>>, vector<1x256xf32>
    %c2 = arith.constant 2 : index
    %c0_12 = arith.constant 0 : index
    %12 = vector.load %arg11[%c2, %c0_12] : memref<49x256xf32, #tpu.memory_space<vmem>>, vector<1x256xf32>
    %c14 = arith.constant 14 : index
    %c0_13 = arith.constant 0 : index
    %13 = vector.load %arg11[%c14, %c0_13] : memref<49x256xf32, #tpu.memory_space<vmem>>, vector<1x256xf32>
    %c16 = arith.constant 16 : index
    %c0_14 = arith.constant 0 : index
    %14 = vector.load %arg11[%c16, %c0_14] : memref<49x256xf32, #tpu.memory_space<vmem>>, vector<1x256xf32>
    %15 = tpu.concatenate %11, %12, %13, %14 in 0 : vector<1x256xf32>, vector<1x256xf32>, vector<1x256xf32>, vector<1x256xf32> -> vector<4x256xf32>
    %16 = arith.truncf %15 : vector<4x256xf32> to vector<4x256xbf16>
    %c0_15 = arith.constant 0 : index
    %c0_16 = arith.constant 0 : index
    %17 = vector.load %arg4[%c0_15, %c0_16] : memref<4096x384xbf16, #tpu.memory_space<vmem>>, vector<256x384xbf16>
    %cst_17 = arith.constant dense<0.000000e+00> : vector<4x384xf32>
    %18 = tpu.matmul %16, %17, %cst_17 {dimension_numbers = #tpu.dot_dimension_numbers<[1], [0], [0], [1], [0, 0, 1, 1], [], []>} : vector<4x256xbf16>, vector<256x384xbf16>, vector<4x384xf32> -> vector<4x384xf32>
    %19 = arith.addf %10, %18 : vector<4x384xf32>
    %c1 = arith.constant 1 : index
    %c0_18 = arith.constant 0 : index
    %20 = vector.load %arg11[%c1, %c0_18] : memref<49x256xf32, #tpu.memory_space<vmem>>, vector<1x256xf32>
    %c3 = arith.constant 3 : index
    %c0_19 = arith.constant 0 : index
    %21 = vector.load %arg11[%c3, %c0_19] : memref<49x256xf32, #tpu.memory_space<vmem>>, vector<1x256xf32>
    %c15 = arith.constant 15 : index
    %c0_20 = arith.constant 0 : index
    %22 = vector.load %arg11[%c15, %c0_20] : memref<49x256xf32, #tpu.memory_space<vmem>>, vector<1x256xf32>
    %c17 = arith.constant 17 : index
    %c0_21 = arith.constant 0 : index
    %23 = vector.load %arg11[%c17, %c0_21] : memref<49x256xf32, #tpu.memory_space<vmem>>, vector<1x256xf32>
    %24 = tpu.concatenate %20, %21, %22, %23 in 0 : vector<1x256xf32>, vector<1x256xf32>, vector<1x256xf32>, vector<1x256xf32> -> vector<4x256xf32>
    %25 = arith.truncf %24 : vector<4x256xf32> to vector<4x256xbf16>
    %c256 = arith.constant 256 : index
    %c0_22 = arith.constant 0 : index
    %26 = vector.load %arg4[%c256, %c0_22] : memref<4096x384xbf16, #tpu.memory_space<vmem>>, vector<256x384xbf16>
    %cst_23 = arith.constant dense<0.000000e+00> : vector<4x384xf32>
    %27 = tpu.matmul %25, %26, %cst_23 {dimension_numbers = #tpu.dot_dimension_numbers<[1], [0], [0], [1], [0, 0, 1, 1], [], []>} : vector<4x256xbf16>, vector<256x384xbf16>, vector<4x384xf32> -> vector<4x384xf32>
    %28 = arith.addf %19, %27 : vector<4x384xf32>
    %c2_24 = arith.constant 2 : index
    %c0_25 = arith.constant 0 : index
    %29 = vector.load %arg11[%c2_24, %c0_25] : memref<49x256xf32, #tpu.memory_space<vmem>>, vector<1x256xf32>
    %c4 = arith.constant 4 : index
    %c0_26 = arith.constant 0 : index
    %30 = vector.load %arg11[%c4, %c0_26] : memref<49x256xf32, #tpu.memory_space<vmem>>, vector<1x256xf32>
    %c16_27 = arith.constant 16 : index
    %c0_28 = arith.constant 0 : index
    %31 = vector.load %arg11[%c16_27, %c0_28] : memref<49x256xf32, #tpu.memory_space<vmem>>, vector<1x256xf32>
    %c18 = arith.constant 18 : index
    %c0_29 = arith.constant 0 : index
    %32 = vector.load %arg11[%c18, %c0_29] : memref<49x256xf32, #tpu.memory_space<vmem>>, vector<1x256xf32>
    %33 = tpu.concatenate %29, %30, %31, %32 in 0 : vector<1x256xf32>, vector<1x256xf32>, vector<1x256xf32>, vector<1x256xf32> -> vector<4x256xf32>
    %34 = arith.truncf %33 : vector<4x256xf32> to vector<4x256xbf16>
    %c512 = arith.constant 512 : index
    %c0_30 = arith.constant 0 : index
    %35 = vector.load %arg4[%c512, %c0_30] : memref<4096x384xbf16, #tpu.memory_space<vmem>>, vector<256x384xbf16>
    %cst_31 = arith.constant dense<0.000000e+00> : vector<4x384xf32>
    %36 = tpu.matmul %34, %35, %cst_31 {dimension_numbers = #tpu.dot_dimension_numbers<[1], [0], [0], [1], [0, 0, 1, 1], [], []>} : vector<4x256xbf16>, vector<256x384xbf16>, vector<4x384xf32> -> vector<4x384xf32>
    %37 = arith.addf %28, %36 : vector<4x384xf32>
    %c3_32 = arith.constant 3 : index
    %c0_33 = arith.constant 0 : index
    %38 = vector.load %arg11[%c3_32, %c0_33] : memref<49x256xf32, #tpu.memory_space<vmem>>, vector<1x256xf32>
    %c5 = arith.constant 5 : index
    %c0_34 = arith.constant 0 : index
    %39 = vector.load %arg11[%c5, %c0_34] : memref<49x256xf32, #tpu.memory_space<vmem>>, vector<1x256xf32>
    %c17_35 = arith.constant 17 : index
    %c0_36 = arith.constant 0 : index
    %40 = vector.load %arg11[%c17_35, %c0_36] : memref<49x256xf32, #tpu.memory_space<vmem>>, vector<1x256xf32>
    %c19 = arith.constant 19 : index
    %c0_37 = arith.constant 0 : index
    %41 = vector.load %arg11[%c19, %c0_37] : memref<49x256xf32, #tpu.memory_space<vmem>>, vector<1x256xf32>
    %42 = tpu.concatenate %38, %39, %40, %41 in 0 : vector<1x256xf32>, vector<1x256xf32>, vector<1x256xf32>, vector<1x256xf32> -> vector<4x256xf32>
    %43 = arith.truncf %42 : vector<4x256xf32> to vector<4x256xbf16>
    %c768 = arith.constant 768 : index
    %c0_38 = arith.constant 0 : index
    %44 = vector.load %arg4[%c768, %c0_38] : memref<4096x384xbf16, #tpu.memory_space<vmem>>, vector<256x384xbf16>
    %cst_39 = arith.constant dense<0.000000e+00> : vector<4x384xf32>
    %45 = tpu.matmul %43, %44, %cst_39 {dimension_numbers = #tpu.dot_dimension_numbers<[1], [0], [0], [1], [0, 0, 1, 1], [], []>} : vector<4x256xbf16>, vector<256x384xbf16>, vector<4x384xf32> -> vector<4x384xf32>
    %46 = arith.addf %37, %45 : vector<4x384xf32>
    %c7 = arith.constant 7 : index
    %c0_40 = arith.constant 0 : index
    %47 = vector.load %arg11[%c7, %c0_40] : memref<49x256xf32, #tpu.memory_space<vmem>>, vector<1x256xf32>
    %c9 = arith.constant 9 : index
    %c0_41 = arith.constant 0 : index
    %48 = vector.load %arg11[%c9, %c0_41] : memref<49x256xf32, #tpu.memory_space<vmem>>, vector<1x256xf32>
    %c21 = arith.constant 21 : index
    %c0_42 = arith.constant 0 : index
    %49 = vector.load %arg11[%c21, %c0_42] : memref<49x256xf32, #tpu.memory_space<vmem>>, vector<1x256xf32>
    %c23 = arith.constant 23 : index
    %c0_43 = arith.constant 0 : index
    %50 = vector.load %arg11[%c23, %c0_43] : memref<49x256xf32, #tpu.memory_space<vmem>>, vector<1x256xf32>
    %51 = tpu.concatenate %47, %48, %49, %50 in 0 : vector<1x256xf32>, vector<1x256xf32>, vector<1x256xf32>, vector<1x256xf32> -> vector<4x256xf32>
    %52 = arith.truncf %51 : vector<4x256xf32> to vector<4x256xbf16>
    %c1024 = arith.constant 1024 : index
    %c0_44 = arith.constant 0 : index
    %53 = vector.load %arg4[%c1024, %c0_44] : memref<4096x384xbf16, #tpu.memory_space<vmem>>, vector<256x384xbf16>
    %cst_45 = arith.constant dense<0.000000e+00> : vector<4x384xf32>
    %54 = tpu.matmul %52, %53, %cst_45 {dimension_numbers = #tpu.dot_dimension_numbers<[1], [0], [0], [1], [0, 0, 1, 1], [], []>} : vector<4x256xbf16>, vector<256x384xbf16>, vector<4x384xf32> -> vector<4x384xf32>
    %55 = arith.addf %46, %54 : vector<4x384xf32>
    %c8 = arith.constant 8 : index
    %c0_46 = arith.constant 0 : index
    %56 = vector.load %arg11[%c8, %c0_46] : memref<49x256xf32, #tpu.memory_space<vmem>>, vector<1x256xf32>
    %c10 = arith.constant 10 : index
    %c0_47 = arith.constant 0 : index
    %57 = vector.load %arg11[%c10, %c0_47] : memref<49x256xf32, #tpu.memory_space<vmem>>, vector<1x256xf32>
    %c22 = arith.constant 22 : index
    %c0_48 = arith.constant 0 : index
    %58 = vector.load %arg11[%c22, %c0_48] : memref<49x256xf32, #tpu.memory_space<vmem>>, vector<1x256xf32>
    %c24 = arith.constant 24 : index
    %c0_49 = arith.constant 0 : index
    %59 = vector.load %arg11[%c24, %c0_49] : memref<49x256xf32, #tpu.memory_space<vmem>>, vector<1x256xf32>
    %60 = tpu.concatenate %56, %57, %58, %59 in 0 : vector<1x256xf32>, vector<1x256xf32>, vector<1x256xf32>, vector<1x256xf32> -> vector<4x256xf32>
    %61 = arith.truncf %60 : vector<4x256xf32> to vector<4x256xbf16>
    %c1280 = arith.constant 1280 : index
    %c0_50 = arith.constant 0 : index
    %62 = vector.load %arg4[%c1280, %c0_50] : memref<4096x384xbf16, #tpu.memory_space<vmem>>, vector<256x384xbf16>
    %cst_51 = arith.constant dense<0.000000e+00> : vector<4x384xf32>
    %63 = tpu.matmul %61, %62, %cst_51 {dimension_numbers = #tpu.dot_dimension_numbers<[1], [0], [0], [1], [0, 0, 1, 1], [], []>} : vector<4x256xbf16>, vector<256x384xbf16>, vector<4x384xf32> -> vector<4x384xf32>
    %64 = arith.addf %55, %63 : vector<4x384xf32>
    %c9_52 = arith.constant 9 : index
    %c0_53 = arith.constant 0 : index
    %65 = vector.load %arg11[%c9_52, %c0_53] : memref<49x256xf32, #tpu.memory_space<vmem>>, vector<1x256xf32>
    %c11 = arith.constant 11 : index
    %c0_54 = arith.constant 0 : index
    %66 = vector.load %arg11[%c11, %c0_54] : memref<49x256xf32, #tpu.memory_space<vmem>>, vector<1x256xf32>
    %c23_55 = arith.constant 23 : index
    %c0_56 = arith.constant 0 : index
    %67 = vector.load %arg11[%c23_55, %c0_56] : memref<49x256xf32, #tpu.memory_space<vmem>>, vector<1x256xf32>
    %c25 = arith.constant 25 : index
    %c0_57 = arith.constant 0 : index
    %68 = vector.load %arg11[%c25, %c0_57] : memref<49x256xf32, #tpu.memory_space<vmem>>, vector<1x256xf32>
    %69 = tpu.concatenate %65, %66, %67, %68 in 0 : vector<1x256xf32>, vector<1x256xf32>, vector<1x256xf32>, vector<1x256xf32> -> vector<4x256xf32>
    %70 = arith.truncf %69 : vector<4x256xf32> to vector<4x256xbf16>
    %c1536 = arith.constant 1536 : index
    %c0_58 = arith.constant 0 : index
    %71 = vector.load %arg4[%c1536, %c0_58] : memref<4096x384xbf16, #tpu.memory_space<vmem>>, vector<256x384xbf16>
    %cst_59 = arith.constant dense<0.000000e+00> : vector<4x384xf32>
    %72 = tpu.matmul %70, %71, %cst_59 {dimension_numbers = #tpu.dot_dimension_numbers<[1], [0], [0], [1], [0, 0, 1, 1], [], []>} : vector<4x256xbf16>, vector<256x384xbf16>, vector<4x384xf32> -> vector<4x384xf32>
    %73 = arith.addf %64, %72 : vector<4x384xf32>
    %c10_60 = arith.constant 10 : index
    %c0_61 = arith.constant 0 : index
    %74 = vector.load %arg11[%c10_60, %c0_61] : memref<49x256xf32, #tpu.memory_space<vmem>>, vector<1x256xf32>
    %c12 = arith.constant 12 : index
    %c0_62 = arith.constant 0 : index
    %75 = vector.load %arg11[%c12, %c0_62] : memref<49x256xf32, #tpu.memory_space<vmem>>, vector<1x256xf32>
    %c24_63 = arith.constant 24 : index
    %c0_64 = arith.constant 0 : index
    %76 = vector.load %arg11[%c24_63, %c0_64] : memref<49x256xf32, #tpu.memory_space<vmem>>, vector<1x256xf32>
    %c26 = arith.constant 26 : index
    %c0_65 = arith.constant 0 : index
    %77 = vector.load %arg11[%c26, %c0_65] : memref<49x256xf32, #tpu.memory_space<vmem>>, vector<1x256xf32>
    %78 = tpu.concatenate %74, %75, %76, %77 in 0 : vector<1x256xf32>, vector<1x256xf32>, vector<1x256xf32>, vector<1x256xf32> -> vector<4x256xf32>
    %79 = arith.truncf %78 : vector<4x256xf32> to vector<4x256xbf16>
    %c1792 = arith.constant 1792 : index
    %c0_66 = arith.constant 0 : index
    %80 = vector.load %arg4[%c1792, %c0_66] : memref<4096x384xbf16, #tpu.memory_space<vmem>>, vector<256x384xbf16>
    %cst_67 = arith.constant dense<0.000000e+00> : vector<4x384xf32>
    %81 = tpu.matmul %79, %80, %cst_67 {dimension_numbers = #tpu.dot_dimension_numbers<[1], [0], [0], [1], [0, 0, 1, 1], [], []>} : vector<4x256xbf16>, vector<256x384xbf16>, vector<4x384xf32> -> vector<4x384xf32>
    %82 = arith.addf %73, %81 : vector<4x384xf32>
    %c14_68 = arith.constant 14 : index
    %c0_69 = arith.constant 0 : index
    %83 = vector.load %arg11[%c14_68, %c0_69] : memref<49x256xf32, #tpu.memory_space<vmem>>, vector<1x256xf32>
    %c16_70 = arith.constant 16 : index
    %c0_71 = arith.constant 0 : index
    %84 = vector.load %arg11[%c16_70, %c0_71] : memref<49x256xf32, #tpu.memory_space<vmem>>, vector<1x256xf32>
    %c28 = arith.constant 28 : index
    %c0_72 = arith.constant 0 : index
    %85 = vector.load %arg11[%c28, %c0_72] : memref<49x256xf32, #tpu.memory_space<vmem>>, vector<1x256xf32>
    %c30 = arith.constant 30 : index
    %c0_73 = arith.constant 0 : index
    %86 = vector.load %arg11[%c30, %c0_73] : memref<49x256xf32, #tpu.memory_space<vmem>>, vector<1x256xf32>
    %87 = tpu.concatenate %83, %84, %85, %86 in 0 : vector<1x256xf32>, vector<1x256xf32>, vector<1x256xf32>, vector<1x256xf32> -> vector<4x256xf32>
    %88 = arith.truncf %87 : vector<4x256xf32> to vector<4x256xbf16>
    %c2048 = arith.constant 2048 : index
    %c0_74 = arith.constant 0 : index
    %89 = vector.load %arg4[%c2048, %c0_74] : memref<4096x384xbf16, #tpu.memory_space<vmem>>, vector<256x384xbf16>
    %cst_75 = arith.constant dense<0.000000e+00> : vector<4x384xf32>
    %90 = tpu.matmul %88, %89, %cst_75 {dimension_numbers = #tpu.dot_dimension_numbers<[1], [0], [0], [1], [0, 0, 1, 1], [], []>} : vector<4x256xbf16>, vector<256x384xbf16>, vector<4x384xf32> -> vector<4x384xf32>
    %91 = arith.addf %82, %90 : vector<4x384xf32>
    %c15_76 = arith.constant 15 : index
    %c0_77 = arith.constant 0 : index
    %92 = vector.load %arg11[%c15_76, %c0_77] : memref<49x256xf32, #tpu.memory_space<vmem>>, vector<1x256xf32>
    %c17_78 = arith.constant 17 : index
    %c0_79 = arith.constant 0 : index
    %93 = vector.load %arg11[%c17_78, %c0_79] : memref<49x256xf32, #tpu.memory_space<vmem>>, vector<1x256xf32>
    %c29 = arith.constant 29 : index
    %c0_80 = arith.constant 0 : index
    %94 = vector.load %arg11[%c29, %c0_80] : memref<49x256xf32, #tpu.memory_space<vmem>>, vector<1x256xf32>
    %c31 = arith.constant 31 : index
    %c0_81 = arith.constant 0 : index
    %95 = vector.load %arg11[%c31, %c0_81] : memref<49x256xf32, #tpu.memory_space<vmem>>, vector<1x256xf32>
    %96 = tpu.concatenate %92, %93, %94, %95 in 0 : vector<1x256xf32>, vector<1x256xf32>, vector<1x256xf32>, vector<1x256xf32> -> vector<4x256xf32>
    %97 = arith.truncf %96 : vector<4x256xf32> to vector<4x256xbf16>
    %c2304 = arith.constant 2304 : index
    %c0_82 = arith.constant 0 : index
    %98 = vector.load %arg4[%c2304, %c0_82] : memref<4096x384xbf16, #tpu.memory_space<vmem>>, vector<256x384xbf16>
    %cst_83 = arith.constant dense<0.000000e+00> : vector<4x384xf32>
    %99 = tpu.matmul %97, %98, %cst_83 {dimension_numbers = #tpu.dot_dimension_numbers<[1], [0], [0], [1], [0, 0, 1, 1], [], []>} : vector<4x256xbf16>, vector<256x384xbf16>, vector<4x384xf32> -> vector<4x384xf32>
    %100 = arith.addf %91, %99 : vector<4x384xf32>
    %c16_84 = arith.constant 16 : index
    %c0_85 = arith.constant 0 : index
    %101 = vector.load %arg11[%c16_84, %c0_85] : memref<49x256xf32, #tpu.memory_space<vmem>>, vector<1x256xf32>
    %c18_86 = arith.constant 18 : index
    %c0_87 = arith.constant 0 : index
    %102 = vector.load %arg11[%c18_86, %c0_87] : memref<49x256xf32, #tpu.memory_space<vmem>>, vector<1x256xf32>
    %c30_88 = arith.constant 30 : index
    %c0_89 = arith.constant 0 : index
    %103 = vector.load %arg11[%c30_88, %c0_89] : memref<49x256xf32, #tpu.memory_space<vmem>>, vector<1x256xf32>
    %c32 = arith.constant 32 : index
    %c0_90 = arith.constant 0 : index
    %104 = vector.load %arg11[%c32, %c0_90] : memref<49x256xf32, #tpu.memory_space<vmem>>, vector<1x256xf32>
    %105 = tpu.concatenate %101, %102, %103, %104 in 0 : vector<1x256xf32>, vector<1x256xf32>, vector<1x256xf32>, vector<1x256xf32> -> vector<4x256xf32>
    %106 = arith.truncf %105 : vector<4x256xf32> to vector<4x256xbf16>
    %c2560 = arith.constant 2560 : index
    %c0_91 = arith.constant 0 : index
    %107 = vector.load %arg4[%c2560, %c0_91] : memref<4096x384xbf16, #tpu.memory_space<vmem>>, vector<256x384xbf16>
    %cst_92 = arith.constant dense<0.000000e+00> : vector<4x384xf32>
    %108 = tpu.matmul %106, %107, %cst_92 {dimension_numbers = #tpu.dot_dimension_numbers<[1], [0], [0], [1], [0, 0, 1, 1], [], []>} : vector<4x256xbf16>, vector<256x384xbf16>, vector<4x384xf32> -> vector<4x384xf32>
    %109 = arith.addf %100, %108 : vector<4x384xf32>
    %c17_93 = arith.constant 17 : index
    %c0_94 = arith.constant 0 : index
    %110 = vector.load %arg11[%c17_93, %c0_94] : memref<49x256xf32, #tpu.memory_space<vmem>>, vector<1x256xf32>
    %c19_95 = arith.constant 19 : index
    %c0_96 = arith.constant 0 : index
    %111 = vector.load %arg11[%c19_95, %c0_96] : memref<49x256xf32, #tpu.memory_space<vmem>>, vector<1x256xf32>
    %c31_97 = arith.constant 31 : index
    %c0_98 = arith.constant 0 : index
    %112 = vector.load %arg11[%c31_97, %c0_98] : memref<49x256xf32, #tpu.memory_space<vmem>>, vector<1x256xf32>
    %c33 = arith.constant 33 : index
    %c0_99 = arith.constant 0 : index
    %113 = vector.load %arg11[%c33, %c0_99] : memref<49x256xf32, #tpu.memory_space<vmem>>, vector<1x256xf32>
    %114 = tpu.concatenate %110, %111, %112, %113 in 0 : vector<1x256xf32>, vector<1x256xf32>, vector<1x256xf32>, vector<1x256xf32> -> vector<4x256xf32>
    %115 = arith.truncf %114 : vector<4x256xf32> to vector<4x256xbf16>
    %c2816 = arith.constant 2816 : index
    %c0_100 = arith.constant 0 : index
    %116 = vector.load %arg4[%c2816, %c0_100] : memref<4096x384xbf16, #tpu.memory_space<vmem>>, vector<256x384xbf16>
    %cst_101 = arith.constant dense<0.000000e+00> : vector<4x384xf32>
    %117 = tpu.matmul %115, %116, %cst_101 {dimension_numbers = #tpu.dot_dimension_numbers<[1], [0], [0], [1], [0, 0, 1, 1], [], []>} : vector<4x256xbf16>, vector<256x384xbf16>, vector<4x384xf32> -> vector<4x384xf32>
    %118 = arith.addf %109, %117 : vector<4x384xf32>
    %c21_102 = arith.constant 21 : index
    %c0_103 = arith.constant 0 : index
    %119 = vector.load %arg11[%c21_102, %c0_103] : memref<49x256xf32, #tpu.memory_space<vmem>>, vector<1x256xf32>
    %c23_104 = arith.constant 23 : index
    %c0_105 = arith.constant 0 : index
    %120 = vector.load %arg11[%c23_104, %c0_105] : memref<49x256xf32, #tpu.memory_space<vmem>>, vector<1x256xf32>
    %c35 = arith.constant 35 : index
    %c0_106 = arith.constant 0 : index
    %121 = vector.load %arg11[%c35, %c0_106] : memref<49x256xf32, #tpu.memory_space<vmem>>, vector<1x256xf32>
    %c37 = arith.constant 37 : index
    %c0_107 = arith.constant 0 : index
    %122 = vector.load %arg11[%c37, %c0_107] : memref<49x256xf32, #tpu.memory_space<vmem>>, vector<1x256xf32>
    %123 = tpu.concatenate %119, %120, %121, %122 in 0 : vector<1x256xf32>, vector<1x256xf32>, vector<1x256xf32>, vector<1x256xf32> -> vector<4x256xf32>
    %124 = arith.truncf %123 : vector<4x256xf32> to vector<4x256xbf16>
    %c3072 = arith.constant 3072 : index
    %c0_108 = arith.constant 0 : index
    %125 = vector.load %arg4[%c3072, %c0_108] : memref<4096x384xbf16, #tpu.memory_space<vmem>>, vector<256x384xbf16>
    %cst_109 = arith.constant dense<0.000000e+00> : vector<4x384xf32>
    %126 = tpu.matmul %124, %125, %cst_109 {dimension_numbers = #tpu.dot_dimension_numbers<[1], [0], [0], [1], [0, 0, 1, 1], [], []>} : vector<4x256xbf16>, vector<256x384xbf16>, vector<4x384xf32> -> vector<4x384xf32>
    %127 = arith.addf %118, %126 : vector<4x384xf32>
    %c22_110 = arith.constant 22 : index
    %c0_111 = arith.constant 0 : index
    %128 = vector.load %arg11[%c22_110, %c0_111] : memref<49x256xf32, #tpu.memory_space<vmem>>, vector<1x256xf32>
    %c24_112 = arith.constant 24 : index
    %c0_113 = arith.constant 0 : index
    %129 = vector.load %arg11[%c24_112, %c0_113] : memref<49x256xf32, #tpu.memory_space<vmem>>, vector<1x256xf32>
    %c36 = arith.constant 36 : index
    %c0_114 = arith.constant 0 : index
    %130 = vector.load %arg11[%c36, %c0_114] : memref<49x256xf32, #tpu.memory_space<vmem>>, vector<1x256xf32>
    %c38 = arith.constant 38 : index
    %c0_115 = arith.constant 0 : index
    %131 = vector.load %arg11[%c38, %c0_115] : memref<49x256xf32, #tpu.memory_space<vmem>>, vector<1x256xf32>
    %132 = tpu.concatenate %128, %129, %130, %131 in 0 : vector<1x256xf32>, vector<1x256xf32>, vector<1x256xf32>, vector<1x256xf32> -> vector<4x256xf32>
    %133 = arith.truncf %132 : vector<4x256xf32> to vector<4x256xbf16>
    %c3328 = arith.constant 3328 : index
    %c0_116 = arith.constant 0 : index
    %134 = vector.load %arg4[%c3328, %c0_116] : memref<4096x384xbf16, #tpu.memory_space<vmem>>, vector<256x384xbf16>
    %cst_117 = arith.constant dense<0.000000e+00> : vector<4x384xf32>
    %135 = tpu.matmul %133, %134, %cst_117 {dimension_numbers = #tpu.dot_dimension_numbers<[1], [0], [0], [1], [0, 0, 1, 1], [], []>} : vector<4x256xbf16>, vector<256x384xbf16>, vector<4x384xf32> -> vector<4x384xf32>
    %136 = arith.addf %127, %135 : vector<4x384xf32>
    %c23_118 = arith.constant 23 : index
    %c0_119 = arith.constant 0 : index
    %137 = vector.load %arg11[%c23_118, %c0_119] : memref<49x256xf32, #tpu.memory_space<vmem>>, vector<1x256xf32>
    %c25_120 = arith.constant 25 : index
    %c0_121 = arith.constant 0 : index
    %138 = vector.load %arg11[%c25_120, %c0_121] : memref<49x256xf32, #tpu.memory_space<vmem>>, vector<1x256xf32>
    %c37_122 = arith.constant 37 : index
    %c0_123 = arith.constant 0 : index
    %139 = vector.load %arg11[%c37_122, %c0_123] : memref<49x256xf32, #tpu.memory_space<vmem>>, vector<1x256xf32>
    %c39 = arith.constant 39 : index
    %c0_124 = arith.constant 0 : index
    %140 = vector.load %arg11[%c39, %c0_124] : memref<49x256xf32, #tpu.memory_space<vmem>>, vector<1x256xf32>
    %141 = tpu.concatenate %137, %138, %139, %140 in 0 : vector<1x256xf32>, vector<1x256xf32>, vector<1x256xf32>, vector<1x256xf32> -> vector<4x256xf32>
    %142 = arith.truncf %141 : vector<4x256xf32> to vector<4x256xbf16>
    %c3584 = arith.constant 3584 : index
    %c0_125 = arith.constant 0 : index
    %143 = vector.load %arg4[%c3584, %c0_125] : memref<4096x384xbf16, #tpu.memory_space<vmem>>, vector<256x384xbf16>
    %cst_126 = arith.constant dense<0.000000e+00> : vector<4x384xf32>
    %144 = tpu.matmul %142, %143, %cst_126 {dimension_numbers = #tpu.dot_dimension_numbers<[1], [0], [0], [1], [0, 0, 1, 1], [], []>} : vector<4x256xbf16>, vector<256x384xbf16>, vector<4x384xf32> -> vector<4x384xf32>
    %145 = arith.addf %136, %144 : vector<4x384xf32>
    %c24_127 = arith.constant 24 : index
    %c0_128 = arith.constant 0 : index
    %146 = vector.load %arg11[%c24_127, %c0_128] : memref<49x256xf32, #tpu.memory_space<vmem>>, vector<1x256xf32>
    %c26_129 = arith.constant 26 : index
    %c0_130 = arith.constant 0 : index
    %147 = vector.load %arg11[%c26_129, %c0_130] : memref<49x256xf32, #tpu.memory_space<vmem>>, vector<1x256xf32>
    %c38_131 = arith.constant 38 : index
    %c0_132 = arith.constant 0 : index
    %148 = vector.load %arg11[%c38_131, %c0_132] : memref<49x256xf32, #tpu.memory_space<vmem>>, vector<1x256xf32>
    %c40 = arith.constant 40 : index
    %c0_133 = arith.constant 0 : index
    %149 = vector.load %arg11[%c40, %c0_133] : memref<49x256xf32, #tpu.memory_space<vmem>>, vector<1x256xf32>
    %150 = tpu.concatenate %146, %147, %148, %149 in 0 : vector<1x256xf32>, vector<1x256xf32>, vector<1x256xf32>, vector<1x256xf32> -> vector<4x256xf32>
    %151 = arith.truncf %150 : vector<4x256xf32> to vector<4x256xbf16>
    %c3840 = arith.constant 3840 : index
    %c0_134 = arith.constant 0 : index
    %152 = vector.load %arg4[%c3840, %c0_134] : memref<4096x384xbf16, #tpu.memory_space<vmem>>, vector<256x384xbf16>
    %cst_135 = arith.constant dense<0.000000e+00> : vector<4x384xf32>
    %153 = tpu.matmul %151, %152, %cst_135 {dimension_numbers = #tpu.dot_dimension_numbers<[1], [0], [0], [1], [0, 0, 1, 1], [], []>} : vector<4x256xbf16>, vector<256x384xbf16>, vector<4x384xf32> -> vector<4x384xf32>
    %154 = arith.addf %145, %153 : vector<4x384xf32>
    %c0_136 = arith.constant 0 : index
    %c0_137 = arith.constant 0 : index
    %155 = vector.load %arg5[%c0_136, %c0_137] : memref<1x384xf32, #tpu.memory_space<vmem>>, vector<1x384xf32>
    %156 = vector.broadcast %155 : vector<1x384xf32> to vector<4x384xf32>
    %157 = arith.addf %154, %156 : vector<4x384xf32>
    %cst_138 = arith.constant 0.000000e+00 : f32
    %158 = vector.broadcast %cst_138 : f32 to vector<4x384xf32>
    %159 = arith.maximumf %157, %158 : vector<4x384xf32>
    %160 = vector.extract_strided_slice %159 {offsets = [0, 0], sizes = [1, 384], strides = [1, 1]} : vector<4x384xf32> to vector<1x384xf32>
    %161 = vector.extract_strided_slice %159 {offsets = [1, 0], sizes = [1, 384], strides = [1, 1]} : vector<4x384xf32> to vector<1x384xf32>
    %162 = vector.extract_strided_slice %159 {offsets = [2, 0], sizes = [1, 384], strides = [1, 1]} : vector<4x384xf32> to vector<1x384xf32>
    %163 = vector.extract_strided_slice %159 {offsets = [3, 0], sizes = [1, 384], strides = [1, 1]} : vector<4x384xf32> to vector<1x384xf32>
    %164 = tpu.concatenate %160, %161, %162, %163 in 1 : vector<1x384xf32>, vector<1x384xf32>, vector<1x384xf32>, vector<1x384xf32> -> vector<1x1536xf32>
    %165 = arith.truncf %164 : vector<1x1536xf32> to vector<1x1536xbf16>
    %c0_139 = arith.constant 0 : index
    %c0_140 = arith.constant 0 : index
    %166 = vector.load %arg6[%c0_139, %c0_140] : memref<1536x256xbf16, #tpu.memory_space<vmem>>, vector<1536x256xbf16>
    %cst_141 = arith.constant dense<0.000000e+00> : vector<1x256xf32>
    %167 = tpu.matmul %165, %166, %cst_141 {dimension_numbers = #tpu.dot_dimension_numbers<[1], [0], [0], [1], [0, 0, 1, 1], [], []>} : vector<1x1536xbf16>, vector<1536x256xbf16>, vector<1x256xf32> -> vector<1x256xf32>
    %c0_142 = arith.constant 0 : index
    %c0_143 = arith.constant 0 : index
    %168 = vector.load %arg7[%c0_142, %c0_143] : memref<1x256xf32, #tpu.memory_space<vmem>>, vector<1x256xf32>
    %169 = arith.addf %167, %168 : vector<1x256xf32>
    %cst_144 = arith.constant 0.000000e+00 : f32
    %170 = vector.broadcast %cst_144 : f32 to vector<1x256xf32>
    %171 = arith.maximumf %169, %170 : vector<1x256xf32>
    %172 = arith.truncf %171 : vector<1x256xf32> to vector<1x256xbf16>
    %c0_145 = arith.constant 0 : index
    %c0_146 = arith.constant 0 : index
    %173 = vector.load %arg8[%c0_145, %c0_146] : memref<256x128xbf16, #tpu.memory_space<vmem>>, vector<256x128xbf16>
    %cst_147 = arith.constant dense<0.000000e+00> : vector<1x128xf32>
    %174 = tpu.matmul %172, %173, %cst_147 {dimension_numbers = #tpu.dot_dimension_numbers<[1], [0], [0], [1], [0, 0, 1, 1], [], []>} : vector<1x256xbf16>, vector<256x128xbf16>, vector<1x128xf32> -> vector<1x128xf32>
    %c0_148 = arith.constant 0 : index
    %c0_149 = arith.constant 0 : index
    %175 = vector.load %arg9[%c0_148, %c0_149] : memref<1x128xf32, #tpu.memory_space<vmem>>, vector<1x128xf32>
    %176 = arith.addf %174, %175 : vector<1x128xf32>
    %177 = vector.shape_cast %176 : vector<1x128xf32> to vector<1x1x128xf32>
    %c0_150 = arith.constant 0 : index
    %c0_151 = arith.constant 0 : index
    %c0_152 = arith.constant 0 : index
    %178 = vector.load %arg10[%c0_150, %c0_151, %c0_152] : memref<1x1x128xf32, #tpu.memory_space<vmem>>, vector<1x1x128xf32>
    tpu.vector_store %arg10[%c0_150, %c0_151, %c0_152], %177 {strides = array<i32>} : memref<1x1x128xf32, #tpu.memory_space<vmem>>, vector<1x1x128xf32>,
    return
  }
  func.func @transform_0(%arg0: i32) -> (i32, i32, i32) {
    %c0_i32 = arith.constant 0 : i32
    %c0_i32_0 = arith.constant 0 : i32
    %c0_i32_1 = arith.constant 0 : i32
    return %arg0, %c0_i32, %c0_i32_0 : i32, i32, i32
  }
  func.func @transform_1(%arg0: i32) -> (i32, i32) {
    %c0_i32 = arith.constant 0 : i32
    %c0_i32_0 = arith.constant 0 : i32
    %c0_i32_1 = arith.constant 0 : i32
    return %c0_i32, %c0_i32_0 : i32, i32
  }
  func.func @transform_2(%arg0: i32) -> (i32, i32) {
    %c0_i32 = arith.constant 0 : i32
    %c0_i32_0 = arith.constant 0 : i32
    %c0_i32_1 = arith.constant 0 : i32
    return %c0_i32, %c0_i32_0 : i32, i32
  }
  func.func @transform_3(%arg0: i32) -> (i32, i32) {
    %c0_i32 = arith.constant 0 : i32
    %c0_i32_0 = arith.constant 0 : i32
    %c0_i32_1 = arith.constant 0 : i32
    return %c0_i32, %c0_i32_0 : i32, i32
  }
  func.func @transform_4(%arg0: i32) -> (i32, i32) {
    %c0_i32 = arith.constant 0 : i32
    %c0_i32_0 = arith.constant 0 : i32
    %c0_i32_1 = arith.constant 0 : i32
    return %c0_i32, %c0_i32_0 : i32, i32
  }
  func.func @transform_5(%arg0: i32) -> (i32, i32) {
    %c0_i32 = arith.constant 0 : i32
    %c0_i32_0 = arith.constant 0 : i32
    %c0_i32_1 = arith.constant 0 : i32
    return %c0_i32, %c0_i32_0 : i32, i32
  }
  func.func @transform_6(%arg0: i32) -> (i32, i32) {
    %c0_i32 = arith.constant 0 : i32
    %c0_i32_0 = arith.constant 0 : i32
    %c0_i32_1 = arith.constant 0 : i32
    return %c0_i32, %c0_i32_0 : i32, i32
  }
  func.func @transform_7(%arg0: i32) -> (i32, i32) {
    %c0_i32 = arith.constant 0 : i32
    %c0_i32_0 = arith.constant 0 : i32
    %c0_i32_1 = arith.constant 0 : i32
    return %c0_i32, %c0_i32_0 : i32, i32
  }
  func.func @transform_8(%arg0: i32) -> (i32, i32) {
    %c0_i32 = arith.constant 0 : i32
    %c0_i32_0 = arith.constant 0 : i32
    %c0_i32_1 = arith.constant 0 : i32
    return %c0_i32, %c0_i32_0 : i32, i32
  }
  func.func @transform_9(%arg0: i32) -> (i32, i32, i32) {
    %c0_i32 = arith.constant 0 : i32
    %c0_i32_0 = arith.constant 0 : i32
    %c0_i32_1 = arith.constant 0 : i32
    return %arg0, %c0_i32, %c0_i32_0 : i32, i32, i32
  }
}

</mosaic_0001>

<bundles_post_ra>
// kernel: dqn_forward.1
= control target key start
LH: loop header
LB: loop body
LE: loop exit
PB: predicated region body
PF: predicated region fallthrough
CT: control target
= control target key end

     0   :  { %14 = vsyncpa [#allocation4], 0  ;;  %s16292_s0 = inlined_call_operand.vmem [shape: bf16[2,49,256], index: 0, kind: input, shape index: {}]   ;;  %s16293_s1 = inlined_call_operand.vmem [shape: bf16[256,256], index: 1, kind: input, shape index: {}]   ;;  %s16294_s2 = inlined_call_operand.vmem [shape: f32[1,256], index: 2, kind: input, shape index: {}]   ;;  %s16295_s3 = inlined_call_operand.vmem [shape: bf16[4096,384], index: 3, kind: input, shape index: {}]   ;;  %s16296_s4 = inlined_call_operand.vmem [shape: f32[1,384], index: 4, kind: input, shape index: {}]   ;;  %s16297_s5 = inlined_call_operand.vmem [shape: bf16[1536,256], index: 5, kind: input, shape index: {}]   ;;  %s16298_s6 = inlined_call_operand.vmem [shape: f32[1,256], index: 6, kind: input, shape index: {}]   ;;  %s16299_s7 = inlined_call_operand.vmem [shape: bf16[256,128], index: 7, kind: input, shape index: {}]   ;;  %s16300_s8 = inlined_call_operand.vmem [shape: f32[1,128], index: 8, kind: input, shape index: {}]   ;;  %s16301_s9 = inlined_call_operand.hbm [shape: f32[2,1,128], index: 9, kind: output, shape index: {}]  }
   0x1   :  { %16 = vsyncpa [#allocation4 + $0x1], 0  ;;  %s12404_s30 = smov 0   ;;  %s12406_s10 = smov 0  }
   0x2   :  { %s12408_s11 = smov 0   ;;  %s12410_s12 = smov 0  }
   0x3 LB: > { %s12425_s13 = sadd.s32 4294967295, %s12351_s12   ;;  %s9442_s14 = sadd.s32 4294967294, %s12351_s12   ;;  %s12351_s12 = sphi %s12410_s12, %s16307_s12   ;;  %s12347_s11 = sphi %s12408_s11, %s16306_s11   ;;  %s12343_s10 = sphi %s12406_s10, %s16305_s10   ;;  %s12339_s30 = sphi %s12404_s30, %s16304_s30  }
   0x4   : > { %s12429_s15 = sadd.s32 1, %s12351_s12   ;;  %s223_s16 = sadd.s32 1, %s12347_s11 }
   0x5   : > { %s220_s17 = ssub.s32 %s12351_s12, %s12429_s15  ;;  %p233_p0 = scmp.ne.s32.totalorder %s12347_s11, %s12343_s10 }
   0x6   : > { %p221_p1 = scmp.eq.s32.totalorder %s220_s17, 0  ;;  %p234_p2 = scmp.eq.s32.totalorder %s12425_s13, 1 }
   0x7   : > { %p239_p3 = scmp.ne.s32.totalorder %s12343_s10, %s12339_s30  ;;  %p240_p4 = scmp.eq.s32.totalorder %s9442_s14, 1 }
   0x8   : > { %s12440_s18 = scalar_select %p221_p1, %s12347_s11, %s223_s16  }
   0x9   : > { %p12442_p5 = por %p234_p2, %p233_p0  ;;  %p12446_p6 = por %p240_p4, %p239_p3 }
   0xa   : > { %p9445_p7 = scmp.ge.s32.totalorder %s12351_s12, 1  ;;  %p290_p8 = scmp.lt.s32.totalorder %s12351_s12, 3 }
   0xc   : > { %p291_p9 = pnand %p9445_p7, %p290_p8 }
   0xd   : > { %v10902_v0 = vld [vmem:[%s16293_s1 + $0x4] ss:$8 sps:$4 sm:$0xff] (!%p291_p9)   ;;  %v10904_v1 = vld [vmem:[%s16293_s1] ss:$8 sps:$4 sm:$0xff] (!%p291_p9)   ;;  %v10905_v2 = vld [vmem:[%s16293_s1 + $0x14] ss:$8 sps:$4 sm:$0xff] (!%p291_p9)  }
   0xe   : > { %294 = sbr.rel (%p291_p9) target bundleno = 2142 (0x85e), region = 56  ;;  %579 = vmatprep.subr.bf16.mxu1 (!%p291_p9), %v10902_v0  ;;  %v10907_v3 = vld [vmem:[%s16293_s1 + $0x10] ss:$8 sps:$4 sm:$0xff] (!%p291_p9)   ;;  %v10908_v4 = vld [vmem:[%s16293_s1 + $0x24] ss:$8 sps:$4 sm:$0xff] (!%p291_p9)   ;;  %p325_p10 = scmp.lt.s32.totalorder (!%p291_p9), %s12425_s13, 1 }
   0xf   : > { %580 = vmatpush1.bf16.msra.mxu1 (!%p291_p9), %v10904_v1  ;;  %v10910_v5 = vld [vmem:[%s16293_s1 + $0x20] ss:$8 sps:$4 sm:$0xff] (!%p291_p9)   ;;  %v10911_v6 = vld [vmem:[%s16293_s1 + $0x34] ss:$8 sps:$4 sm:$0xff] (!%p291_p9)   ;;  %v10913_v7 = vld [vmem:[%s16293_s1 + $0x30] ss:$8 sps:$4 sm:$0xff] (!%p291_p9)  }
  0x10   : > { %581 = vmatprep.subr.bf16.mxu1 (!%p291_p9), %v10905_v2  ;;  %v10914_v8 = vld [vmem:[%s16293_s1 + $0x44] ss:$8 sps:$4 sm:$0xff] (!%p291_p9)   ;;  %v10916_v9 = vld [vmem:[%s16293_s1 + $0x40] ss:$8 sps:$4 sm:$0xff] (!%p291_p9)   ;;  %v10917_v10 = vld [vmem:[%s16293_s1 + $0x54] ss:$8 sps:$4 sm:$0xff] (!%p291_p9)  }
  0x11   : > { %v10919_v11 = vld [vmem:[%s16293_s1 + $0x50] ss:$8 sps:$4 sm:$0xff] (!%p291_p9)   ;;  %v10920_v12 = vld [vmem:[%s16293_s1 + $0x64] ss:$8 sps:$4 sm:$0xff] (!%p291_p9)   ;;  %v10922_v14 = vld [vmem:[%s16293_s1 + $0x60] ss:$8 sps:$4 sm:$0xff] (!%p291_p9)  }
  0x12   : > { %v10923_v15 = vld [vmem:[%s16293_s1 + $0x74] ss:$8 sps:$4 sm:$0xff] (!%p291_p9)   ;;  %v10925_v16 = vld [vmem:[%s16293_s1 + $0x70] ss:$8 sps:$4 sm:$0xff] (!%p291_p9)   ;;  %v10926_v17 = vld [vmem:[%s16293_s1 + $0x84] ss:$8 sps:$4 sm:$0xff] (!%p291_p9)  }
  0x13   : > { %582 = vmatpush1.bf16.msra.mxu1 (!%p291_p9), %v10907_v3  ;;  %v10928_v18 = vld [vmem:[%s16293_s1 + $0x80] ss:$8 sps:$4 sm:$0xff] (!%p291_p9)   ;;  %v10929_v19 = vld [vmem:[%s16293_s1 + $0x94] ss:$8 sps:$4 sm:$0xff] (!%p291_p9)   ;;  %v10931_v20 = vld [vmem:[%s16293_s1 + $0x90] ss:$8 sps:$4 sm:$0xff] (!%p291_p9)  }
  0x14   : > { %583 = vmatprep.subr.bf16.mxu1 (!%p291_p9), %v10908_v4  ;;  %v10932_v21 = vld [vmem:[%s16293_s1 + $0xa4] ss:$8 sps:$4 sm:$0xff] (!%p291_p9)   ;;  %v10934_v22 = vld [vmem:[%s16293_s1 + $0xa0] ss:$8 sps:$4 sm:$0xff] (!%p291_p9)   ;;  %v10935_v25 = vld [vmem:[%s16293_s1 + $0xb4] ss:$8 sps:$4 sm:$0xff] (!%p291_p9)  }
  0x15   : > { %s326_s25 = scalar_select %p325_p10, %s12425_s13, 1  ;;  %v10986_v23 = vld [vmem:[%s16295_s3 + $0xc8] ss:$12 sps:$4 sm:$0xff]   ;;  %v10937_v26 = vld [vmem:[%s16293_s1 + $0xb0] ss:$8 sps:$4 sm:$0xff]   ;;  %vm729_vm0 = vcmask 1040384  }
  0x16   : > { %v10987_v24 = vld [vmem:[%s16295_s3 + $0x8] ss:$12 sps:$4 sm:$0xff]   ;;  %10488 = vmatprep.subr.bf16.mxu0 %v10986_v23  ;;  %v10991_v27 = vld [vmem:[%s16295_s3 + $0xe0] ss:$12 sps:$4 sm:$0xff]   ;;  %v10943_v31 = vld [vmem:[%s16293_s1 + $0xd0] ss:$8 sps:$4 sm:$0xff]  }
  0x17   : > { %584 = vmatpush1.bf16.msra.mxu1 %v10910_v5  ;;  %s10862_s14 = smul.u32 56, %s326_s25  ;;  %10489 = vmatpush3.bf16.msra.mxu0 %v10987_v24  ;;  %v10938_v28 = vld [vmem:[%s16293_s1 + $0xc4] ss:$8 sps:$4 sm:$0xff]   ;;  %v10940_v29 = vld [vmem:[%s16293_s1 + $0xc0] ss:$8 sps:$4 sm:$0xff]   ;;  %vm732_vm1 = vcmask 1041408  }
  0x18   : > { %585 = vmatprep.subr.bf16.mxu1 %v10911_v6  ;;  %10490 = vmatprep.subr.bf16.mxu0 %v10991_v27  ;;  %v10941_v30 = vld [vmem:[%s16293_s1 + $0xd4] ss:$8 sps:$4 sm:$0xff]   ;;  %v10944_v32 = vld [vmem:[%s16293_s1 + $0xe4] ss:$8 sps:$4 sm:$0xff]   ;;  %v10946_v33 = vld [vmem:[%s16293_s1 + $0xe0] ss:$8 sps:$4 sm:$0xff]   ;;  %v372_v27 = vlaneseq }
  0x19   : > { %s12493_s26 = scalar_lea.vmem %s16292_s0, %s10862_s14  ;;  %v10947_v34 = vld [vmem:[%s16293_s1 + $0xf4] ss:$8 sps:$4 sm:$0xff]   ;;  %v10949_v35 = vld [vmem:[%s16293_s1 + $0xf0] ss:$8 sps:$4 sm:$0xff]   ;;  %v10959_v39 = vld [vmem:[%s16295_s3 + $0x180] ss:$12 sps:$4 sm:$0xff]  }
  0x1a   : > { %v10952_v13 = vld [vmem:[%s12493_s26 + $0x4] ss:$8 sps:$4 sm:$0xff]   ;;  %v10950_v37 = vld [vmem:[%s12493_s26] ss:$8 sps:$4 sm:$0xff]   ;;  %v10953_v38 = vld [vmem:[%s12493_s26 + $0x14] ss:$8 sps:$4 sm:$0xff]  }
  0x1b   : > { %586 = vmatpush1.bf16.msra.mxu1 %v10913_v7  ;;  %611 = vmatprep.mubr.bf16.mxu1 %v10952_v13  ;;  %v10961_v36 = vld [vmem:[%s16295_s3 + $0x184] ss:$12 sps:$4 sm:$0xff]   ;;  %v10964_v40 = vld [vmem:[%s16295_s3 + $0x19c] ss:$12 sps:$4 sm:$0xff]   ;;  %v10967_v42 = vld [vmem:[%s16295_s3 + $0x1b4] ss:$12 sps:$4 sm:$0xff]  }
  0x1c   : > { %587 = vmatprep.subr.bf16.mxu1 %v10914_v8  ;;  %v10962_v41 = vld [vmem:[%s16295_s3 + $0x198] ss:$12 sps:$4 sm:$0xff]   ;;  %v10965_v45 = vld [vmem:[%s16295_s3 + $0x1b0] ss:$12 sps:$4 sm:$0xff]   ;;  %v10968_v47 = vld [vmem:[%s16295_s3 + $0x1c8] ss:$12 sps:$4 sm:$0xff]  }
  0x1d   : > { %v10955_v43 = vld [vmem:[%s12493_s26 + $0x10] ss:$8 sps:$4 sm:$0xff]   ;;  %v10956_v44 = vld [vmem:[%s12493_s26 + $0x24] ss:$8 sps:$4 sm:$0xff]   ;;  %v10958_v49 = vld [vmem:[%s12493_s26 + $0x20] ss:$8 sps:$4 sm:$0xff]  }
  0x1e   : > { %v10970_v46 = vld [vmem:[%s16295_s3 + $0x1cc] ss:$12 sps:$4 sm:$0xff]   ;;  %v10973_v48 = vld [vmem:[%s16295_s3 + $0x1e4] ss:$12 sps:$4 sm:$0xff]   ;;  %v10976_v51 = vld [vmem:[%s16295_s3 + $0x1fc] ss:$12 sps:$4 sm:$0xff]  }
  0x1f   : > { %588 = vmatpush1.bf16.msra.mxu1 %v10916_v9  ;;  %v10971_v50 = vld [vmem:[%s16295_s3 + $0x1e0] ss:$12 sps:$4 sm:$0xff]   ;;  %v10974_v52 = vld [vmem:[%s16295_s3 + $0x1f8] ss:$12 sps:$4 sm:$0xff]   ;;  %v10977_v54 = vld [vmem:[%s16295_s3 + $0x210] ss:$12 sps:$4 sm:$0xff]  }
  0x20   : > { %589 = vmatprep.subr.bf16.mxu1 %v10917_v10  ;;  %v10979_v53 = vld [vmem:[%s16295_s3 + $0x214] ss:$12 sps:$4 sm:$0xff]   ;;  %v10982_v55 = vld [vmem:[%s16295_s3 + $0x22c] ss:$12 sps:$4 sm:$0xff]   ;;  %v10985_v57 = vld [vmem:[%s16295_s3 + $0x244] ss:$12 sps:$4 sm:$0xff]  }
  0x21   : > { %v10980_v56 = vld [vmem:[%s16295_s3 + $0x228] ss:$12 sps:$4 sm:$0xff]   ;;  %v10983_v58 = vld [vmem:[%s16295_s3 + $0x240] ss:$12 sps:$4 sm:$0xff]   ;;  %v10988_v60 = vld [vmem:[%s16295_s3 + $0x258] ss:$12 sps:$4 sm:$0xff]  }
  0x22   : > { %v10990_v59 = vld [vmem:[%s16295_s3 + $0x25c] ss:$12 sps:$4 sm:$0xff]   ;;  %v10992_v61 = vld [vmem:[%s16295_s3 + $0x20] ss:$12 sps:$4 sm:$0xff]   ;;  %v10996_v63 = vld [vmem:[%s16295_s3 + $0xf8] ss:$12 sps:$4 sm:$0xff]  }
  0x23   : > { %590 = vmatpush1.bf16.msra.mxu1 %v10919_v11  ;;  %10491 = vmatpush3.bf16.msra.mxu0 %v10992_v61  ;;  %v10995_v62 = vld [vmem:[%s16295_s3 + $0x274] ss:$12 sps:$4 sm:$0xff]   ;;  %v10993_v0 = vld [vmem:[%s16295_s3 + $0x270] ss:$12 sps:$4 sm:$0xff]   ;;  %v10997_v1 = vld [vmem:[%s16295_s3 + $0x38] ss:$12 sps:$4 sm:$0xff]  }
  0x24   : > { %591 = vmatprep.subr.bf16.mxu1 %v10920_v12  ;;  %10492 = vmatprep.subr.bf16.mxu0 %v10996_v63  ;;  %v11000_v2 = vld [vmem:[%s16295_s3 + $0x28c] ss:$12 sps:$4 sm:$0xff]   ;;  %v11001_v3 = vld [vmem:[%s16295_s3 + $0x110] ss:$12 sps:$4 sm:$0xff]   ;;  %v10998_v4 = vld [vmem:[%s16295_s3 + $0x288] ss:$12 sps:$4 sm:$0xff]  }
  0x25   : > { %v11002_v5 = vld [vmem:[%s16295_s3 + $0x50] ss:$12 sps:$4 sm:$0xff]   ;;  %v11006_v7 = vld [vmem:[%s16295_s3 + $0x128] ss:$12 sps:$4 sm:$0xff]   ;;  %v11003_v8 = vld [vmem:[%s16295_s3 + $0x2a0] ss:$12 sps:$4 sm:$0xff]  }
  0x26   : > { %v11005_v6 = vld [vmem:[%s16295_s3 + $0x2a4] ss:$12 sps:$4 sm:$0xff]   ;;  %v11007_v9 = vld [vmem:[%s16295_s3 + $0x68] ss:$12 sps:$4 sm:$0xff]   ;;  %v11011_v11 = vld [vmem:[%s16295_s3 + $0x140] ss:$12 sps:$4 sm:$0xff]  }
  0x27   : > { %592 = vmatpush1.bf16.msra.mxu1 %v10922_v14  ;;  %10493 = vmatpush3.bf16.msra.mxu0 %v10997_v1  ;;  %v11010_v10 = vld [vmem:[%s16295_s3 + $0x2bc] ss:$12 sps:$4 sm:$0xff]   ;;  %v337_v12 = vld [vmem:[%s12493_s26 + $0x30] sm:$0x11]  ;;  %v11008_v13 = vld [vmem:[%s16295_s3 + $0x2b8] ss:$12 sps:$4 sm:$0xff]  }
  0x28   : > { %593 = vmatprep.subr.bf16.mxu1 %v10923_v15  ;;  %10494 = vmatprep.subr.bf16.mxu0 %v11001_v3  ;;  %v9454_v14 = vcombine.high %v337_v12, %v337_v12  ;;  %v11013_v15 = vld [vmem:[%s16295_s3 + $0x80] ss:$12 sps:$4 sm:$0xff]   ;;  %v11020_v23 = vld [vmem:[%s16295_s3 + $0x2e8] ss:$12 sps:$4 sm:$0xff]   ;;  %v11024_v24 = vld [vmem:[%s16295_s3 + $0xb0] ss:$12 sps:$4 sm:$0xff]  }
  0x29   : > { %vm735_vm2 = vcmask 1042432   ;;  %s323_s16 = sand.u32 1, %s12343_s10   ;;  %s10463_s21 = sshll.u32 %s12425_s13, 4 }
  0x2a   : > { %s324_s22 = scalar_lea.vmem [#allocation3], %s323_s16  ;;  %s16250_s26 = scalar_lea.hbm %s16301_s9, %s10463_s21 }
  0x2b   : > { %594 = vmatpush1.bf16.msra.mxu1 %v10925_v16  ;;  %10495 = vmatpush3.bf16.msra.mxu0 %v11002_v5  ;;  %v9453_v16 = vcombine.low %v337_v12, %v337_v12  ;;  %s9387_s23 = sshll.u32 %s324_s22, 4  ;;  %s9375_s28 = scalar_lea.sflag [#allocation4], %s323_s16  ;;  %s16252_s23 = int_to_ptr.vmem [resolvable:$true] %s9387_s23 }
  0x2c   : > { %595 = vmatprep.subr.bf16.mxu1 %v10926_v17  ;;  %10496 = vmatprep.subr.bf16.mxu0 %v11006_v7  ;;  %v11017_v17 = vld [vmem:[%s16295_s3 + $0x2d4] ss:$12 sps:$4 sm:$0xff]   ;;  %s12289_s25 = scalar_lea.vmem %s16252_s23, 16  ;;  %s12353_s13 = smov [#allocation3]  }
  0x2d   : > { %p12290_p11 = scmp.ne.s32.totalorder %s16252_s23, %s12289_s25  ;;  %s12293_s29 = sshll.u32 %s12353_s13, 4  ;;  %s12294_s29 = int_to_ptr.vmem [resolvable:$false] %s12293_s29 }
  0x2e   : > { %s12295_s17 = scalar_lea.vmem %s12294_s29, 32  ;;  %p12296_p0 = scmp.lt.s32.totalorder %s16252_s23, %s12294_s29 }
  0x2f   : > { %596 = vmatpush1.bf16.msra.mxu1 %v10928_v18  ;;  %10497 = vmatpush3.bf16.msra.mxu0 %v11007_v9  ;;  %v11018_v18 = vld [vmem:[%s16295_s3 + $0x158] ss:$12 sps:$4 sm:$0xff]   ;;  %p12291_p12 = pnand %p12290_p11, %p12442_p5  ;;  %p12297_p1 = scmp.lt.s32.totalorder %s12295_s17, %s12289_s25 }
  0x30   : > { %597 = vmatprep.subr.bf16.mxu1 %v10929_v19  ;;  %10498 = vmatprep.subr.bf16.mxu0 %v11011_v11  ;;  %v11015_v19 = vld [vmem:[%s16295_s3 + $0x2d0] ss:$12 sps:$4 sm:$0xff]  }
  0x31   : > { %p12292_p13 = pneg %p12291_p12  ;;  %p12298_p2 = por %p12297_p1, %p12296_p0 }
  0x33   : > { %598 = vmatpush1.bf16.msra.mxu1 %v10931_v20  ;;  %10499 = vmatpush3.bf16.msra.mxu0 %v11013_v15  ;;  %v11019_v20 = vld [vmem:[%s16295_s3 + $0x98] ss:$12 sps:$4 sm:$0xff]   ;;  %p12299_p3 = pnand %p12298_p2, %p12292_p13 }
  0x34   : > { %599 = vmatprep.subr.bf16.mxu1 %v10932_v21  ;;  %10500 = vmatprep.subr.bf16.mxu0 %v11018_v18  ;;  %v11022_v21 = vld [vmem:[%s16295_s3 + $0x2ec] ss:$12 sps:$4 sm:$0xff]  }
  0x37   : > { %600 = vmatpush1.bf16.msra.mxu1 %v10934_v22  ;;  %10501 = vmatpush3.bf16.msra.mxu0 %v11019_v20  ;;  %v11023_v22 = vld [vmem:[%s16295_s3 + $0x170] ss:$12 sps:$4 sm:$0xff]  }
  0x38   : > { %601 = vmatprep.subr.bf16.mxu1 %v10935_v25  ;;  %10502 = vmatprep.subr.bf16.mxu0 %v11023_v22  ;;  %v11025_v25 = vld [vmem:[%s16295_s3 + $0x248] ss:$12 sps:$4 sm:$0xff]  }
  0x3b   : > { %602 = vmatpush1.bf16.msra.mxu1 %v10937_v26  ;;  %10503 = vmatpush3.bf16.msra.mxu0 %v11024_v24  ;;  %v11026_v26 = vld [vmem:[%s16295_s3 + $0x548] ss:$12 sps:$4 sm:$0xff]  }
  0x3c   : > { %603 = vmatprep.subr.bf16.mxu1 %v10938_v28  ;;  %10532 = vmatprep.subr.bf16.mxu0 %v11026_v26  ;;  %v12712_v28 = vshrl.u32 %v372_v27, 7 }
  0x3f   : > { %604 = vmatpush1.bf16.msra.mxu1 %v10940_v29  ;;  %v370_v29 = vld [vmem:[%s16294_s2] sm:$0x3] }
  0x40   : > { %605 = vmatprep.subr.bf16.mxu1 %v10941_v30  ;;  %v12718_v30 = vsub.s32 0, %v12712_v28 }
  0x43   : > { %606 = vmatpush1.bf16.msra.mxu1 %v10943_v31  ;;  %v12721_v31 = vsub.s32 1, %v12712_v28 }
  0x44   : > { %607 = vmatprep.subr.bf16.mxu1 %v10944_v32  ;;  %v375_v32 = vrot.slane %v370_v29, %v12718_v30 }
  0x47   : > { %608 = vmatpush1.bf16.msra.mxu1 %v10946_v33  ;;  %v12725_v33 = vrot.slane %v370_v29, %v12721_v31 }
  0x48   : > { %609 = vmatprep.subr.bf16.mxu1 %v10947_v34 }
  0x4b   : > { %610 = vmatpush1.bf16.msra.mxu1 %v10949_v35 }
  0x4c   : > { %1184 = vmatprep.subr.bf16.mxu1 %v10961_v36 }
  0x4e   : > { %612 = vmatmul.mubr.bf16.vlgmr.msra.gmra.mrb[0].mxu1 %v10950_v37 }
  0x4f   : > { %621 = vmatprep.mubr.bf16.mxu1 %v10953_v38  ;;  %1185 = vmatpush1.bf16.msra.mxu1 %v10959_v39 }
  0x50   : > { %1186 = vmatprep.subr.bf16.mxu1 %v10964_v40 }
  0x53   : > { %1187 = vmatpush1.bf16.msra.mxu1 %v10962_v41 }
  0x54   : > { %1188 = vmatprep.subr.bf16.mxu1 %v10967_v42 }
  0x56   : > { %622 = vmatmul.mubr.bf16.gmra.mrb[4].mxu1 %v10955_v43 }
  0x57   : > { %631 = vmatprep.mubr.bf16.mxu1 %v10956_v44  ;;  %1189 = vmatpush1.bf16.msra.mxu1 %v10965_v45 }
  0x58   : > { %1190 = vmatprep.subr.bf16.mxu1 %v10970_v46 }
  0x5b   : > { %1191 = vmatpush1.bf16.msra.mxu1 %v10968_v47 }
  0x5c   : > { %1192 = vmatprep.subr.bf16.mxu1 %v10973_v48 }
  0x5e   : > { %632 = vmatmul.mubr.bf16.gmra.mrb[8].mxu1 %v10958_v49 }
  0x5f   : > { %1193 = vmatpush1.bf16.msra.mxu1 %v10971_v50  ;;  %641 = vmatprep.mubr.bf16.mxu1 %v9454_v14 }
  0x60   : > { %1194 = vmatprep.subr.bf16.mxu1 %v10976_v51 }
  0x63   : > { %1195 = vmatpush1.bf16.msra.mxu1 %v10974_v52 }
  0x64   : > { %1196 = vmatprep.subr.bf16.mxu1 %v10979_v53 }
  0x66   : > { %642 = vmatmul.mubr.bf16.gmra.mrb[12].mxu1 %v9453_v16 }
  0x67   : > { %1197 = vmatpush1.bf16.msra.mxu1 %v10977_v54 }
  0x68   : > { %1198 = vmatprep.subr.bf16.mxu1 %v10982_v55 }
  0x6b   : > { %1199 = vmatpush1.bf16.msra.mxu1 %v10980_v56 }
  0x6c   : > { %1200 = vmatprep.subr.bf16.mxu1 %v10985_v57 }
  0x6f   : > { %1201 = vmatpush1.bf16.msra.mxu1 %v10983_v58 }
  0x70   : > { %1202 = vmatprep.subr.bf16.mxu1 %v10990_v59 }
  0x73   : > { %1203 = vmatpush1.bf16.msra.mxu1 %v10988_v60 }
  0x74   : > { %1204 = vmatprep.subr.bf16.mxu1 %v10995_v62 }
  0x77   : > { %1205 = vmatpush1.bf16.msra.mxu1 %v10993_v0 }
  0x78   : > { %1206 = vmatprep.subr.bf16.mxu1 %v11000_v2 }
  0x7b   : > { %1207 = vmatpush1.bf16.msra.mxu1 %v10998_v4 }
  0x7c   : > { %1208 = vmatprep.subr.bf16.mxu1 %v11005_v6 }
  0x7f   : > { %1209 = vmatpush1.bf16.msra.mxu1 %v11003_v8 }
  0x80   : > { %1210 = vmatprep.subr.bf16.mxu1 %v11010_v10 }
  0x83   : > { %1211 = vmatpush1.bf16.msra.mxu1 %v11008_v13 }
  0x84   : > { %1212 = vmatprep.subr.bf16.mxu1 %v11017_v17 }
  0x87   : > { %1213 = vmatpush1.bf16.msra.mxu1 %v11015_v19 }
  0x88   : > { %1214 = vmatprep.subr.bf16.mxu1 %v11022_v21 }
  0x8b   : > { %1215 = vmatpush1.bf16.msra.mxu1 %v11020_v23 }
  0x8c   : > { %10466 = vmatprep.subr.bf16.mxu1 %v11025_v25 }
 0x121   : > { %v613_v34 = vpop.f32.mrb[0].mxu1 }
 0x122   : > { %v614_v35 = vadd.f32 %v613_v34, %v375_v32  ;;  %v615_v36 = vpop.f32.mrb[1].mxu1 }
 0x123   : > { %v616_v37 = vadd.f32 %v615_v36, %v12725_v33  ;;  %v617_v38 = vpop.f32.mrb[2].mxu1 }
 0x124   : > { %v650_v39 = vmax.f32 %v614_v35, 0.0  ;;  %v618_v40 = vadd.f32 %v617_v38, %v375_v32  ;;  %v619_v41 = vpop.f32.mrb[3].mxu1 }
 0x125   : > { %v651_v42 = vmax.f32 %v616_v37, 0.0  ;;  %v620_v43 = vadd.f32 %v619_v41, %v12725_v33 }
 0x126   : > { %664 = vst [vmem:[#allocation2] sm:$0xff] %v650_v39  ;;  %v652_v44 = vmax.f32 %v618_v40, 0.0 }
 0x127   : > { %665 = vst [vmem:[#allocation2 + $0x8] sm:$0xff] %v651_v42  ;;  %v653_v45 = vmax.f32 %v620_v43, 0.0 }
 0x128   : > { %666 = vst [vmem:[#allocation2 + $0x10] sm:$0xff] %v652_v44 }
 0x129   : > { %667 = vst [vmem:[#allocation2 + $0x18] sm:$0xff] %v653_v45  ;;  %v623_v46 = vpop.f32.mrb[4].mxu1 }
 0x12a   : > { %v624_v47 = vadd.f32 %v623_v46, %v375_v32  ;;  %v625_v48 = vpop.f32.mrb[5].mxu1 }
 0x12b   : > { %v626_v49 = vadd.f32 %v625_v48, %v12725_v33  ;;  %v627_v50 = vpop.f32.mrb[6].mxu1 }
 0x12c   : > { %v654_v51 = vmax.f32 %v624_v47, 0.0  ;;  %v628_v52 = vadd.f32 %v627_v50, %v375_v32  ;;  %v629_v53 = vpop.f32.mrb[7].mxu1 }
 0x12d   : > { %v655_v54 = vmax.f32 %v626_v49, 0.0  ;;  %v630_v55 = vadd.f32 %v629_v53, %v12725_v33 }
 0x12e   : > { %668 = vst [vmem:[#allocation2 + $0x20] sm:$0xff] %v654_v51  ;;  %v656_v56 = vmax.f32 %v628_v52, 0.0  ;;  %v805_v57 = vld [vmem:[#allocation2 + $0x1] ss:$8 sm:$0x3] }
 0x12f   : > { %669 = vst [vmem:[#allocation2 + $0x28] sm:$0xff] %v655_v54  ;;  %v657_v58 = vmax.f32 %v630_v55, 0.0  ;;  %v807_v59 = vld [vmem:[#allocation2 + $0x3] ss:$8 sm:$0x3]  ;;  %v820_v60 = vrot.slane %v805_v57, %v12721_v31  ;;  %v816_v1 = vrot.slane %v805_v57, %v12718_v30 }
 0x130   : > { %670 = vst [vmem:[#allocation2 + $0x30] sm:$0xff] %v656_v56  ;;  %v809_v61 = vld [vmem:[#allocation2 + $0x17] ss:$8 sm:$0x3]  ;;  %v831_v62 = vrot.slane %v807_v59, %v12721_v31  ;;  %v12735_v2 = vrot.slane %v807_v59, %v12718_v30 }
 0x131   : > { %v678_v63 = vld [vmem:[#allocation2] ss:$8 sm:$0x3]  ;;  %671 = vst [vmem:[#allocation2 + $0x38] sm:$0xff] %v657_v58  ;;  %v633_v0 = vpop.f32.mrb[8].mxu1  ;;  %v12738_v3 = vrot.slane %v809_v61, %v12721_v31  ;;  %v12750_v14 = vrot.slane %v809_v61, %v12718_v30 }
 0x132   : > { %v680_v4 = vld [vmem:[#allocation2 + $0x2] ss:$8 sm:$0x3]  ;;  %v693_v5 = vrot.slane %v678_v63, %v12721_v31  ;;  %v634_v6 = vadd.f32 %v633_v0, %v375_v32  ;;  %v635_v7 = vpop.f32.mrb[9].mxu1  ;;  %v689_v9 = vrot.slane %v678_v63, %v12718_v30  ;;  %v857_v15 = vsel %vm729_vm0, %v820_v60, %v831_v62  ;;  %v11033_v0 = vld [vmem:[%s16295_s3 + $0x278] ss:$12 sps:$4 sm:$0xff]  }
 0x133   : > { %v682_v8 = vld [vmem:[#allocation2 + $0x16] ss:$8 sm:$0x3]  ;;  %v12743_v10 = vrot.slane %v680_v4, %v12718_v30  ;;  %v12746_v11 = vrot.slane %v680_v4, %v12721_v31  ;;  %v636_v12 = vadd.f32 %v635_v7, %v12725_v33  ;;  %v637_v13 = vpop.f32.mrb[10].mxu1  ;;  %v856_v25 = vsel %vm729_vm0, %v816_v1, %v12735_v2  ;;  %v11029_v58 = vld [vmem:[%s16295_s3 + $0x260] ss:$12 sps:$4 sm:$0xff]  }
 0x134   : > { %v12754_v16 = vrot.slane %v682_v8, %v12721_v31  ;;  %v12756_v17 = vld [vmem:[#allocation2 + $0x5] ss:$8 sm:$0x3]  ;;  %v658_v18 = vmax.f32 %v634_v6, 0.0  ;;  %v638_v19 = vadd.f32 %v637_v13, %v375_v32  ;;  %v639_v20 = vpop.f32.mrb[11].mxu1  ;;  %v12759_v21 = vrot.slane %v682_v8, %v12718_v30 }
 0x135   : > { %v731_v22 = vsel %vm729_vm0, %v693_v5, %v12746_v11  ;;  %v659_v23 = vmax.f32 %v636_v12, 0.0  ;;  %v640_v24 = vadd.f32 %v639_v20, %v12725_v33  ;;  %v859_v29 = vsel %vm732_vm1, %v857_v15, %v12738_v3  ;;  %v11027_v51 = vld [vmem:[%s16295_s3 + $0x188] ss:$12 sps:$4 sm:$0xff]   ;;  %v11030_v60 = vld [vmem:[%s16295_s3 + $0x560] ss:$12 sps:$4 sm:$0xff]  }
 0x136   : > { %672 = vst [vmem:[#allocation2 + $0x40] sm:$0xff] %v658_v18  ;;  %v660_v26 = vmax.f32 %v638_v19, 0.0  ;;  %v811_v27 = vld [vmem:[#allocation2 + $0x21] ss:$8 sm:$0x3]  ;;  %v730_v32 = vsel %vm729_vm0, %v689_v9, %v12743_v10  ;;  %v2052_v34 = vrot.slane %v12756_v17, %v12721_v31  ;;  %v734_v38 = vsel %vm732_vm1, %v731_v22, %v12754_v16 }
 0x137   : > { %673 = vst [vmem:[#allocation2 + $0x48] sm:$0xff] %v659_v23  ;;  %v661_v35 = vmax.f32 %v640_v24, 0.0  ;;  %v12773_v33 = vrot.slane %v811_v27, %v12718_v30  ;;  %v12776_v36 = vrot.slane %v811_v27, %v12721_v31  ;;  %v684_v37 = vld [vmem:[#allocation2 + $0x20] ss:$8 sm:$0x3]  ;;  %v858_v41 = vsel %vm732_vm1, %v856_v25, %v12750_v14 }
 0x138   : > { %674 = vst [vmem:[#allocation2 + $0x50] sm:$0xff] %v660_v26  ;;  %v12781_v39 = vrot.slane %v684_v37, %v12718_v30  ;;  %v12784_v40 = vrot.slane %v684_v37, %v12721_v31  ;;  %v733_v42 = vsel %vm732_vm1, %v730_v32, %v12759_v21  ;;  %v12790_v43 = vld [vmem:[#allocation2 + $0x23] ss:$8 sm:$0x3]  ;;  %v2067_v47 = vsel %vm729_vm0, %v831_v62, %v2052_v34  ;;  %v11034_v1 = vld [vmem:[%s16295_s3 + $0x578] ss:$12 sps:$4 sm:$0xff]  }
 0x139   : > { %675 = vst [vmem:[#allocation2 + $0x58] sm:$0xff] %v661_v35  ;;  %v861_v44 = vsel %vm735_vm2, %v859_v29, %v12776_v36  ;;  %v860_v45 = vsel %vm735_vm2, %v858_v41, %v12773_v33  ;;  %v12798_v46 = vrot.slane %v12790_v43, %v12721_v31  ;;  %v11028_v55 = vld [vmem:[%s16295_s3 + $0x488] ss:$12 sps:$4 sm:$0xff]   ;;  %v2069_v56 = vsel %vm732_vm1, %v2067_v47, %v12776_v36  ;;  %v11031_v61 = vld [vmem:[%s16295_s3 + $0x1a0] ss:$12 sps:$4 sm:$0xff]  }
 0x13a   : > { %v863_v48 = vpack.c.bf16 %v861_v44, %v861_v44  ;;  %v737_v49 = vsel %vm735_vm2, %v734_v38, %v12784_v40  ;;  %v12803_v50 = vpack.c.bf16 %v860_v45, %v860_v45  ;;  %v736_v52 = vsel %vm735_vm2, %v733_v42, %v12781_v39  ;;  %v1603_v62 = vld [vmem:[#allocation2 + $0x4] ss:$8 sm:$0x3]  ;;  %v11037_v7 = vld [vmem:[%s16295_s3 + $0x290] ss:$12 sps:$4 sm:$0xff]  }
 0x13b   : > { %v12810_v53 = vpack.c.bf16 %v737_v49, %v737_v49  ;;  %v12812_v54 = vpack.c.bf16 %v736_v52, %v736_v52  ;;  %v2071_v57 = vsel %vm735_vm2, %v2069_v56, %v12798_v46  ;;  %v11032_v63 = vld [vmem:[%s16295_s3 + $0x4a0] ss:$12 sps:$4 sm:$0xff]   ;;  %v11035_v4 = vld [vmem:[%s16295_s3 + $0x1b8] ss:$12 sps:$4 sm:$0xff]   ;;  %v1614_v6 = vrot.slane %v1603_v62, %v12721_v31  ;;  %v11038_v15 = vld [vmem:[%s16295_s3 + $0x590] ss:$12 sps:$4 sm:$0xff]  }
 0x13c   : > { %1216 = vmatprep.mubr.bf16.mxu1 %v863_v48  ;;  %v12826_v59 = vpack.c.bf16 %v2071_v57, %v2071_v57  ;;  %v11036_v5 = vld [vmem:[%s16295_s3 + $0x4b8] ss:$12 sps:$4 sm:$0xff]   ;;  %v11039_v19 = vld [vmem:[%s16295_s3 + $0x1d0] ss:$12 sps:$4 sm:$0xff]   ;;  %v1610_v22 = vrot.slane %v1603_v62, %v12718_v30  ;;  %v11041_v29 = vld [vmem:[%s16295_s3 + $0x2a8] ss:$12 sps:$4 sm:$0xff]  }
 0x13d   : > { %1594 = vmatprep.mubr.bf16.mxu0 %v12810_v53  ;;  %1217 = vmatmul.mubr.bf16.vlgmr.msra.gmra.mrb[16].mxu1 %v12803_v50  ;;  %v2481_v8 = vld [vmem:[#allocation2 + $0x11] ss:$8 sm:$0x3]  ;;  %v2485_v9 = vld [vmem:[#allocation2 + $0x27] ss:$8 sm:$0x3]  ;;  %v1629_v12 = vsel %vm729_vm0, %v12746_v11, %v1614_v6 }
 0x13e   : > { %10467 = vmatpush3.bf16.msra.mxu1 %v11027_v51  ;;  %1595 = vmatmul.mubr.bf16.vlgmr.msra.gmra.mrb[0].mxu0 %v12812_v54  ;;  %v3407_v13 = vld [vmem:[#allocation2 + $0x13] ss:$8 sm:$0x3]  ;;  %v12862_v18 = vsel %vm732_vm1, %v1629_v12, %v12784_v40  ;;  %v12868_v20 = vrot.slane %v2481_v8, %v12721_v31  ;;  %v2945_v11 = vld [vmem:[#allocation2 + $0x12] ss:$8 sm:$0x3]  ;;  %v12875_v24 = vrot.slane %v2481_v8, %v12718_v30 }
 0x13f   : > { %10533 = vmatpush3.bf16.msra.mxu0 %v11028_v55  ;;  %1257 = vmatprep.mubr.bf16.mxu1 %v863_v48  ;;  %v11040_v23 = vld [vmem:[%s16295_s3 + $0x4d0] ss:$12 sps:$4 sm:$0xff]   ;;  %v12878_v25 = vrot.slane %v2485_v9, %v12721_v31  ;;  %v3414_v27 = vrot.slane %v3407_v13, %v12718_v30  ;;  %v12885_v32 = vrot.slane %v2485_v9, %v12718_v30  ;;  %v11042_v37 = vld [vmem:[%s16295_s3 + $0x5a8] ss:$12 sps:$4 sm:$0xff]   ;;  %v11045_v55 = vld [vmem:[%s16295_s3 + $0x2c0] ss:$12 sps:$4 sm:$0xff]  }
 0x140   : > { %2467 = vmatprep.mubr.bf16.mxu0 %v12826_v59  ;;  %10468 = vmatprep.subr.bf16.mxu1 %v11029_v58  ;;  %v2949_v26 = vld [vmem:[#allocation2 + $0x30] ss:$8 sm:$0x3]  ;;  %v3418_v34 = vrot.slane %v3407_v13, %v12721_v31  ;;  %v3845_v35 = vld [vmem:[#allocation2 + $0x14] ss:$8 sm:$0x3]  ;;  %v12892_v38 = vrot.slane %v2945_v11, %v12718_v30  ;;  %v12895_v41 = vrot.slane %v2945_v11, %v12721_v31 }
 0x141   : > { %10534 = vmatprep.subr.bf16.mxu0 %v11030_v60  ;;  %v12898_v42 = vrot.slane %v2949_v26, %v12718_v30  ;;  %v1628_v45 = vsel %vm729_vm0, %v12743_v10, %v1610_v22  ;;  %v11043_v47 = vld [vmem:[%s16295_s3 + $0x1e8] ss:$12 sps:$4 sm:$0xff]   ;;  %v3432_v51 = vsel %vm729_vm0, %v12875_v24, %v3414_v27  ;;  %v3852_v52 = vrot.slane %v3845_v35, %v12718_v30  ;;  %v11046_v56 = vld [vmem:[%s16295_s3 + $0x5c0] ss:$12 sps:$4 sm:$0xff]   ;;  %v11051_v12 = vld [vmem:[%s16295_s3 + $0x218] ss:$12 sps:$4 sm:$0xff]  }
 0x142   : > { %10469 = vmatpush3.bf16.msra.mxu1 %v11031_v61  ;;  %v3433_v44 = vsel %vm729_vm0, %v12868_v20, %v3418_v34  ;;  %v12913_v49 = vsel %vm732_vm1, %v1628_v45, %v12781_v39  ;;  %v11044_v10 = vld [vmem:[%s16295_s3 + $0x4e8] ss:$12 sps:$4 sm:$0xff]   ;;  %v12928_v57 = vrot.slane %v2949_v26, %v12721_v31  ;;  %v12932_v58 = vsel %vm732_vm1, %v3432_v51, %v12885_v32  ;;  %v11047_v60 = vld [vmem:[%s16295_s3 + $0x200] ss:$12 sps:$4 sm:$0xff]   ;;  %v11052_v22 = vld [vmem:[%s16295_s3 + $0x518] ss:$12 sps:$4 sm:$0xff]  }
 0x143   : > { %10535 = vmatpush3.bf16.msra.mxu0 %v11032_v63  ;;  %10470 = vmatprep.subr.bf16.mxu1 %v11033_v0  ;;  %v12909_v48 = vsel %vm732_vm1, %v3433_v44, %v12878_v25  ;;  %v1605_v61 = vld [vmem:[#allocation2 + $0x22] ss:$8 sm:$0x3]  ;;  %v3856_v62 = vrot.slane %v3845_v35, %v12721_v31  ;;  %v2048_v63 = vrot.slane %v12756_v17, %v12718_v30  ;;  %v4285_v9 = vld [vmem:[#allocation2 + $0x36] ss:$8 sm:$0x3] }
 0x144   : > { %10536 = vmatprep.subr.bf16.mxu0 %v11034_v1  ;;  %v11048_v0 = vld [vmem:[%s16295_s3 + $0x500] ss:$12 sps:$4 sm:$0xff]   ;;  %v11049_v1 = vld [vmem:[%s16295_s3 + $0x2d8] ss:$12 sps:$4 sm:$0xff]   ;;  %v11053_v11 = vld [vmem:[%s16295_s3 + $0x2f0] ss:$12 sps:$4 sm:$0xff]   ;;  %v12982_v26 = vrot.slane %v1605_v61, %v12721_v31  ;;  %v12992_v27 = vrot.slane %v1605_v61, %v12718_v30  ;;  %v13007_v44 = vrot.slane %v4285_v9, %v12718_v30  ;;  %v13012_v45 = vsel %vm729_vm0, %v12738_v3, %v12776_v36 }
 0x145   : > { %v3871_v6 = vsel %vm729_vm0, %v12895_v41, %v3856_v62  ;;  %v2483_v13 = vld [vmem:[#allocation2 + $0x25] ss:$8 sm:$0x3]  ;;  %v4723_v35 = vld [vmem:[#allocation2 + $0x37] ss:$8 sm:$0x3] }
 0x146   : > { %10471 = vmatpush3.bf16.msra.mxu1 %v11035_v4  ;;  %v3870_v4 = vsel %vm729_vm0, %v12892_v38, %v3852_v52  ;;  %v12961_v8 = vsel %vm732_vm1, %v3871_v6, %v12928_v57  ;;  %v2516_v34 = vrot.slane %v2483_v13, %v12721_v31  ;;  %v11056_v51 = vld [vmem:[%s16295_s3 + $0x530] ss:$12 sps:$4 sm:$0xff]   ;;  %v5172_v3 = vsel %vm729_vm0, %v12784_v40, %v12982_v26 }
 0x147   : > { %10537 = vmatpush3.bf16.msra.mxu0 %v11036_v5  ;;  %10472 = vmatprep.subr.bf16.mxu1 %v11037_v7  ;;  %v11050_v5 = vld [vmem:[%s16295_s3 + $0x5d8] ss:$12 sps:$4 sm:$0xff]   ;;  %v12955_v17 = vsel %vm732_vm1, %v3870_v4, %v12898_v42  ;;  %v13038_v61 = vrot.slane %v4723_v35, %v12721_v31 }
 0x148   : > { %10538 = vmatprep.subr.bf16.mxu0 %v11038_v15  ;;  %v12957_v7 = vld [vmem:[#allocation2 + $0x7] ss:$8 sm:$0x3]  ;;  %v12969_v15 = vsel %vm729_vm0, %v12754_v16, %v12784_v40  ;;  %v12987_v16 = vsel %vm729_vm0, %v12759_v21, %v12781_v39  ;;  %v5171_v40 = vsel %vm729_vm0, %v12781_v39, %v12992_v27 }
 0x149   : > { %v2494_v21 = vrot.slane %v12957_v7, %v12721_v31  ;;  %v11059_v52 = vld [vmem:[%s16295_s3 + $0x4] ss:$12 sps:$4 sm:$0xff]   ;;  %v13053_v4 = vsel %vm732_vm1, %v5171_v40, %v13007_v44  ;;  %v11060_v39 = vld [vmem:[%s16295_s3 + $0x600] ss:$12 sps:$4 sm:$0xff]  }
 0x14a   : > { %10473 = vmatpush3.bf16.msra.mxu1 %v11039_v19  ;;  %v2059_v19 = vrot.slane %v12790_v43, %v12718_v30  ;;  %v11071_v40 = vld [vmem:[%s16295_s3 + $0x34] ss:$12 sps:$4 sm:$0xff]  }
 0x14b   : > { %10539 = vmatpush3.bf16.msra.mxu0 %v11040_v23  ;;  %10474 = vmatprep.subr.bf16.mxu1 %v11041_v29  ;;  %v2066_v23 = vsel %vm729_vm0, %v12735_v2, %v2048_v63  ;;  %v12995_v29 = vrot.slane %v4285_v9, %v12721_v31  ;;  %v11054_v2 = vld [vmem:[%s16295_s3 + $0x5f0] ss:$12 sps:$4 sm:$0xff]   ;;  %v13061_v9 = vrot.slane %v2483_v13, %v12718_v30 }
 0x14c   : > { %10540 = vmatprep.subr.bf16.mxu0 %v11042_v37  ;;  %v2068_v43 = vsel %vm732_vm1, %v2066_v23, %v12773_v33  ;;  %v11055_v37 = vld [vmem:[%s16295_s3 + $0x230] ss:$12 sps:$4 sm:$0xff]  }
 0x14d   : > { %v13042_v62 = vsel %vm732_vm1, %v5172_v3, %v12995_v29  ;;  %v3409_v63 = vld [vmem:[#allocation2 + $0x31] ss:$8 sm:$0x3]  ;;  %v11065_v23 = vld [vmem:[%s16295_s3 + $0x1c] ss:$12 sps:$4 sm:$0xff]  }
 0x14e   : > { %10475 = vmatpush3.bf16.msra.mxu1 %v11043_v47  ;;  %v13017_v47 = vsel %vm729_vm0, %v12750_v14, %v12773_v33  ;;  %v11062_v14 = vld [vmem:[%s16295_s3 + $0x604] ss:$12 sps:$4 sm:$0xff]  }
 0x14f   : > { %10541 = vmatpush3.bf16.msra.mxu0 %v11044_v10  ;;  %10476 = vmatprep.subr.bf16.mxu1 %v11045_v55  ;;  %v2070_v10 = vsel %vm735_vm2, %v2068_v43, %v2059_v19  ;;  %v2531_v55 = vsel %vm729_vm0, %v2494_v21, %v12868_v20  ;;  %v13074_v43 = vrot.slane %v3409_v63, %v12721_v31  ;;  %v11063_v3 = vld [vmem:[%s16295_s3 + $0x18] ss:$12 sps:$4 sm:$0xff]  }
 0x150   : > { %10542 = vmatprep.subr.bf16.mxu0 %v11046_v56  ;;  %v2947_v56 = vld [vmem:[#allocation2 + $0x26] ss:$8 sm:$0x3]  ;;  %v2533_v20 = vsel %vm732_vm1, %v2531_v55, %v2516_v34  ;;  %v13055_v6 = vpack.c.bf16 %v2070_v10, %v2070_v10  ;;  %v13116_v10 = vsel %vm729_vm0, %v13061_v9, %v12885_v32 }
 0x152   : > { %10477 = vmatpush3.bf16.msra.mxu1 %v11047_v60  ;;  %v13035_v60 = vrot.slane %v4723_v35, %v12718_v30 }
 0x153   : > { %10543 = vmatpush3.bf16.msra.mxu0 %v11048_v0  ;;  %10478 = vmatprep.subr.bf16.mxu1 %v11049_v1  ;;  %v3847_v0 = vld [vmem:[#allocation2 + $0x32] ss:$8 sm:$0x3]  ;;  %v11057_v1 = vld [vmem:[%s16295_s3] ss:$12 sps:$4 sm:$0xff]  }
 0x154   : > { %10544 = vmatprep.subr.bf16.mxu0 %v11050_v5  ;;  %v6011_v5 = vld [vmem:[#allocation2 + $0x45] ss:$8 sm:$0x3]  ;;  %v13097_v21 = vrot.slane %v3847_v0, %v12721_v31 }
 0x155   : > { %v13100_v35 = vrot.slane %v6011_v5, %v12721_v31 }
 0x156   : > { %10479 = vmatpush3.bf16.msra.mxu1 %v11051_v12  ;;  %v5597_v12 = vsel %vm729_vm0, %v12776_v36, %v12798_v46  ;;  %v13088_v46 = vrot.slane %v2947_v56, %v12721_v31 }
 0x157   : > { %10545 = vmatpush3.bf16.msra.mxu0 %v11052_v22  ;;  %10480 = vmatprep.subr.bf16.mxu1 %v11053_v11  ;;  %v5596_v22 = vsel %vm729_vm0, %v12773_v33, %v2059_v19  ;;  %v2535_v11 = vsel %vm735_vm2, %v2533_v20, %v12878_v25  ;;  %v13078_v13 = vsel %vm732_vm1, %v5597_v12, %v13038_v61  ;;  %v11077_v12 = vld [vmem:[%s16295_s3 + $0x4c] ss:$12 sps:$4 sm:$0xff]  }
 0x158   : > { %10546 = vmatprep.subr.bf16.mxu0 %v11054_v2  ;;  %v13082_v36 = vsel %vm732_vm1, %v5596_v22, %v13035_v60  ;;  %v13085_v33 = vrot.slane %v2947_v56, %v12718_v30  ;;  %v13091_v19 = vrot.slane %v3409_v63, %v12718_v30  ;;  %v13094_v2 = vrot.slane %v3847_v0, %v12718_v30  ;;  %v11066_v56 = vld [vmem:[%s16295_s3 + $0x618] ss:$12 sps:$4 sm:$0xff]   ;;  %v11075_v22 = vld [vmem:[%s16295_s3 + $0x48] ss:$12 sps:$4 sm:$0xff]  }
 0x159   : > { %v13121_v55 = vsel %vm729_vm0, %v13088_v46, %v12928_v57  ;;  %v7323_v0 = vsel %vm729_vm0, %v12928_v57, %v13097_v21 }
 0x15a   : > { %10481 = vmatpush3.bf16.msra.mxu1 %v11055_v37  ;;  %v13104_v37 = vsel %vm729_vm0, %v2516_v34, %v12878_v25  ;;  %v13129_v34 = vpack.c.bf16 %v2535_v11, %v2535_v11  ;;  %v6897_v63 = vsel %vm729_vm0, %v12885_v32, %v13091_v19  ;;  %v11080_v11 = vld [vmem:[%s16295_s3 + $0x64c] ss:$12 sps:$4 sm:$0xff]  }
 0x15b   : > { %10547 = vmatpush3.bf16.msra.mxu0 %v11056_v51  ;;  %1521 = vmatprep.subr.bf16.mxu1 %v11059_v52  ;;  %v11068_v51 = vld [vmem:[%s16295_s3 + $0x61c] ss:$12 sps:$4 sm:$0xff]   ;;  %v13111_v52 = vrot.slane %v6011_v5, %v12718_v30  ;;  %v7322_v5 = vsel %vm729_vm0, %v12898_v42, %v13094_v2 }
 0x15c   : > { %2858 = vmatprep.subr.bf16.mxu0 %v11062_v14  ;;  %v6898_v14 = vsel %vm729_vm0, %v12878_v25, %v13074_v43  ;;  %v11074_v25 = vld [vmem:[%s16295_s3 + $0x634] ss:$12 sps:$4 sm:$0xff]  }
 0x15d   : > { %1258 = vmatmul.mubr.bf16.vlgmr.msra.gmra.mrb[20].mxu1 %v12803_v50  ;;  %v13126_v50 = vsel %vm729_vm0, %v13085_v33, %v12898_v42  ;;  %v13146_v20 = vsel %vm732_vm1, %v6898_v14, %v13100_v35  ;;  %v11086_v14 = vld [vmem:[%s16295_s3 + $0x664] ss:$12 sps:$4 sm:$0xff]  }
 0x15e   : > { %2468 = vmatmul.mubr.bf16.vlgmr.msra.gmra.mrb[4].mxu0 %v13055_v6  ;;  %1522 = vmatpush1.bf16.msra.mxu1 %v11057_v1  ;;  %v13163_v1 = vsel %vm732_vm1, %v6897_v63, %v13111_v52  ;;  %v11090_v63 = vld [vmem:[%s16295_s3 + $0x678] ss:$12 sps:$4 sm:$0xff]  }
 0x15f   : > { %1553 = vmatprep.mubr.bf16.mxu1 %v12810_v53  ;;  %2859 = vmatpush1.bf16.msra.mxu0 %v11060_v39  ;;  %v11069_v53 = vld [vmem:[%s16295_s3 + $0x30] ss:$12 sps:$4 sm:$0xff]  }
 0x160   : > { %2890 = vmatprep.mubr.bf16.mxu0 %v13129_v34  ;;  %1523 = vmatprep.subr.bf16.mxu1 %v11065_v23  ;;  %v11072_v39 = vld [vmem:[%s16295_s3 + $0x630] ss:$12 sps:$4 sm:$0xff]   ;;  %v11078_v23 = vld [vmem:[%s16295_s3 + $0x648] ss:$12 sps:$4 sm:$0xff]  }
 0x161   : > { %2860 = vmatprep.subr.bf16.mxu0 %v11068_v51  ;;  %v11083_v51 = vld [vmem:[%s16295_s3 + $0x64] ss:$12 sps:$4 sm:$0xff]  }
 0x162   : > { %1524 = vmatpush1.bf16.msra.mxu1 %v11063_v3  ;;  %v11081_v3 = vld [vmem:[%s16295_s3 + $0x60] ss:$12 sps:$4 sm:$0xff]  }
 0x163   : > { %2861 = vmatpush1.bf16.msra.mxu0 %v11066_v56  ;;  %1525 = vmatprep.subr.bf16.mxu1 %v11071_v40  ;;  %v11084_v56 = vld [vmem:[%s16295_s3 + $0x660] ss:$12 sps:$4 sm:$0xff]   ;;  %v11089_v40 = vld [vmem:[%s16295_s3 + $0x7c] ss:$12 sps:$4 sm:$0xff]  }
 0x164   : > { %2862 = vmatprep.subr.bf16.mxu0 %v11074_v25  ;;  %v11092_v25 = vld [vmem:[%s16295_s3 + $0x67c] ss:$12 sps:$4 sm:$0xff]  }
 0x166   : > { %1526 = vmatpush1.bf16.msra.mxu1 %v11069_v53  ;;  %v11087_v53 = vld [vmem:[%s16295_s3 + $0x78] ss:$12 sps:$4 sm:$0xff]  }
 0x167   : > { %2863 = vmatpush1.bf16.msra.mxu0 %v11072_v39  ;;  %1527 = vmatprep.subr.bf16.mxu1 %v11077_v12  ;;  %v11095_v39 = vld [vmem:[%s16295_s3 + $0x94] ss:$12 sps:$4 sm:$0xff]  }
 0x168   : > { %2864 = vmatprep.subr.bf16.mxu0 %v11080_v11  ;;  %v11098_v12 = vld [vmem:[%s16295_s3 + $0x694] ss:$12 sps:$4 sm:$0xff]   ;;  %v6449_v11 = vld [vmem:[#allocation2 + $0x46] ss:$8 sm:$0x3] }
 0x16a   : > { %1528 = vmatpush1.bf16.msra.mxu1 %v11075_v22  ;;  %v11093_v22 = vld [vmem:[%s16295_s3 + $0x90] ss:$12 sps:$4 sm:$0xff]  }
 0x16b   : > { %2865 = vmatpush1.bf16.msra.mxu0 %v11078_v23  ;;  %1529 = vmatprep.subr.bf16.mxu1 %v11083_v51  ;;  %v11096_v23 = vld [vmem:[%s16295_s3 + $0x690] ss:$12 sps:$4 sm:$0xff]   ;;  %v11101_v51 = vld [vmem:[%s16295_s3 + $0xac] ss:$12 sps:$4 sm:$0xff]  }
 0x16c   : > { %2866 = vmatprep.subr.bf16.mxu0 %v11086_v14  ;;  %v13226_v14 = vrot.slane %v6449_v11, %v12721_v31 }
 0x16e   : > { %1530 = vmatpush1.bf16.msra.mxu1 %v11081_v3  ;;  %v13223_v3 = vrot.slane %v6449_v11, %v12718_v30  ;;  %v11116_v11 = vld [vmem:[%s16295_s3 + $0x6dc] ss:$12 sps:$4 sm:$0xff]  }
 0x16f   : > { %2867 = vmatpush1.bf16.msra.mxu0 %v11084_v56  ;;  %1531 = vmatprep.subr.bf16.mxu1 %v11089_v40  ;;  %v11099_v56 = vld [vmem:[%s16295_s3 + $0xa8] ss:$12 sps:$4 sm:$0xff]   ;;  %v11104_v40 = vld [vmem:[%s16295_s3 + $0x6ac] ss:$12 sps:$4 sm:$0xff]  }
 0x170   : > { %2868 = vmatprep.subr.bf16.mxu0 %v11092_v25  ;;  %v13240_v25 = vsel %vm732_vm1, %v7322_v5, %v13223_v3  ;;  %v11110_v5 = vld [vmem:[%s16295_s3 + $0x6c4] ss:$12 sps:$4 sm:$0xff]  }
 0x172   : > { %1532 = vmatpush1.bf16.msra.mxu1 %v11087_v53  ;;  %v13236_v53 = vsel %vm732_vm1, %v7323_v0, %v13226_v14  ;;  %v11105_v0 = vld [vmem:[%s16295_s3 + $0xc0] ss:$12 sps:$4 sm:$0xff]  }
 0x173   : > { %2869 = vmatpush1.bf16.msra.mxu0 %v11090_v63  ;;  %1533 = vmatprep.subr.bf16.mxu1 %v11095_v39  ;;  %v11102_v63 = vld [vmem:[%s16295_s3 + $0x6a8] ss:$12 sps:$4 sm:$0xff]   ;;  %v11107_v39 = vld [vmem:[%s16295_s3 + $0xc4] ss:$12 sps:$4 sm:$0xff]  }
 0x174   : > { %2870 = vmatprep.subr.bf16.mxu0 %v11098_v12  ;;  %v11108_v12 = vld [vmem:[%s16295_s3 + $0x6c0] ss:$12 sps:$4 sm:$0xff]  }
 0x176   : > { %1534 = vmatpush1.bf16.msra.mxu1 %v11093_v22  ;;  %v11113_v22 = vld [vmem:[%s16295_s3 + $0xdc] ss:$12 sps:$4 sm:$0xff]  }
 0x177   : > { %2871 = vmatpush1.bf16.msra.mxu0 %v11096_v23  ;;  %1535 = vmatprep.subr.bf16.mxu1 %v11101_v51  ;;  %v11111_v23 = vld [vmem:[%s16295_s3 + $0xd8] ss:$12 sps:$4 sm:$0xff]  }
 0x178   : > { %2872 = vmatprep.subr.bf16.mxu0 %v11104_v40  ;;  %v11114_v51 = vld [vmem:[%s16295_s3 + $0x6d8] ss:$12 sps:$4 sm:$0xff]   ;;  %v11122_v40 = vld [vmem:[%s16295_s3 + $0x6f4] ss:$12 sps:$4 sm:$0xff]  }
 0x17a   : > { %1536 = vmatpush1.bf16.msra.mxu1 %v11099_v56  ;;  %v11119_v56 = vld [vmem:[%s16295_s3 + $0xf4] ss:$12 sps:$4 sm:$0xff]  }
 0x17b   : > { %2873 = vmatpush1.bf16.msra.mxu0 %v11102_v63  ;;  %1537 = vmatprep.subr.bf16.mxu1 %v11107_v39  ;;  %v11117_v63 = vld [vmem:[%s16295_s3 + $0xf0] ss:$12 sps:$4 sm:$0xff]  }
 0x17c   : > { %2874 = vmatprep.subr.bf16.mxu0 %v11110_v5  ;;  %v11120_v39 = vld [vmem:[%s16295_s3 + $0x6f0] ss:$12 sps:$4 sm:$0xff]   ;;  %v11128_v5 = vld [vmem:[%s16295_s3 + $0x70c] ss:$12 sps:$4 sm:$0xff]  }
 0x17e   : > { %1538 = vmatpush1.bf16.msra.mxu1 %v11105_v0  ;;  %v11125_v0 = vld [vmem:[%s16295_s3 + $0x10c] ss:$12 sps:$4 sm:$0xff]  }
 0x17f   : > { %2875 = vmatpush1.bf16.msra.mxu0 %v11108_v12  ;;  %1539 = vmatprep.subr.bf16.mxu1 %v11113_v22  ;;  %v643_v12 = vpop.f32.mrb[12].mxu1  ;;  %v11123_v22 = vld [vmem:[%s16295_s3 + $0x108] ss:$12 sps:$4 sm:$0xff]  }
 0x180   : > { %2876 = vmatprep.subr.bf16.mxu0 %v11116_v11  ;;  %v11126_v11 = vld [vmem:[%s16295_s3 + $0x708] ss:$12 sps:$4 sm:$0xff]  }
 0x181   : > { %v11140_v12 = vld [vmem:[%s16295_s3 + $0x73c] ss:$12 sps:$4 sm:$0xff]  }
 0x182   : > { %1540 = vmatpush1.bf16.msra.mxu1 %v11111_v23  ;;  %v11131_v23 = vld [vmem:[%s16295_s3 + $0x124] ss:$12 sps:$4 sm:$0xff]  }
 0x183   : > { %2877 = vmatpush1.bf16.msra.mxu0 %v11114_v51  ;;  %1541 = vmatprep.subr.bf16.mxu1 %v11119_v56  ;;  %v645_v51 = vpop.f32.mrb[13].mxu1  ;;  %v11134_v56 = vld [vmem:[%s16295_s3 + $0x724] ss:$12 sps:$4 sm:$0xff]  }
 0x184   : > { %2878 = vmatprep.subr.bf16.mxu0 %v11122_v40  ;;  %v647_v40 = vpop.f32.mrb[14].mxu1  ;;  %v11146_v51 = vld [vmem:[%s16295_s3 + $0x754] ss:$12 sps:$4 sm:$0xff]  }
 0x185   : > { %v13323_v40 = vld [vmem:[#allocation2 + $0x10] ss:$8 sm:$0x3] }
 0x186   : > { %1542 = vmatpush1.bf16.msra.mxu1 %v11117_v63  ;;  %v648_v63 = vpop.f32.mrb[15].mxu1 }
 0x187   : > { %2879 = vmatpush1.bf16.msra.mxu0 %v11120_v39  ;;  %1543 = vmatprep.subr.bf16.mxu1 %v11125_v0  ;;  %v11129_v39 = vld [vmem:[%s16295_s3 + $0x120] ss:$12 sps:$4 sm:$0xff]   ;;  %v11144_v63 = vld [vmem:[%s16295_s3 + $0x750] ss:$12 sps:$4 sm:$0xff]  }
 0x188   : > { %2880 = vmatprep.subr.bf16.mxu0 %v11128_v5  ;;  %v11132_v0 = vld [vmem:[%s16295_s3 + $0x720] ss:$12 sps:$4 sm:$0xff]   ;;  %v11137_v5 = vld [vmem:[%s16295_s3 + $0x13c] ss:$12 sps:$4 sm:$0xff]  }
 0x18a   : > { %1544 = vmatpush1.bf16.msra.mxu1 %v11123_v22  ;;  %v11135_v22 = vld [vmem:[%s16295_s3 + $0x138] ss:$12 sps:$4 sm:$0xff]  }
 0x18b   : > { %2881 = vmatpush1.bf16.msra.mxu0 %v11126_v11  ;;  %1545 = vmatprep.subr.bf16.mxu1 %v11131_v23  ;;  %v11138_v11 = vld [vmem:[%s16295_s3 + $0x738] ss:$12 sps:$4 sm:$0xff]   ;;  %v11143_v23 = vld [vmem:[%s16295_s3 + $0x154] ss:$12 sps:$4 sm:$0xff]  }
 0x18c   : > { %2882 = vmatprep.subr.bf16.mxu0 %v11134_v56  ;;  %v11141_v56 = vld [vmem:[%s16295_s3 + $0x150] ss:$12 sps:$4 sm:$0xff]  }
 0x18e   : > { %1546 = vmatpush1.bf16.msra.mxu1 %v11129_v39  ;;  %v2490_v39 = vrot.slane %v12957_v7, %v12718_v30  ;;  %v11147_v7 = vld [vmem:[%s16295_s3 + $0x168] ss:$12 sps:$4 sm:$0xff]  }
 0x18f   : > { %2883 = vmatpush1.bf16.msra.mxu0 %v11132_v0  ;;  %1547 = vmatprep.subr.bf16.mxu1 %v11137_v5  ;;  %v11149_v0 = vld [vmem:[%s16295_s3 + $0x16c] ss:$12 sps:$4 sm:$0xff]   ;;  %v2958_v5 = vrot.slane %v13323_v40, %v12721_v31 }
 0x190   : > { %2884 = vmatprep.subr.bf16.mxu0 %v11140_v12  ;;  %v11152_v12 = vld [vmem:[%s16295_s3 + $0x76c] ss:$12 sps:$4 sm:$0xff]  }
 0x192   : > { %1548 = vmatpush1.bf16.msra.mxu1 %v11135_v22  ;;  %v2530_v22 = vsel %vm729_vm0, %v2490_v39, %v12875_v24  ;;  %v11156_v24 = vld [vmem:[%s16295_s3 + $0x848] ss:$12 sps:$4 sm:$0xff]  }
 0x193   : > { %2885 = vmatpush1.bf16.msra.mxu0 %v11138_v11  ;;  %1549 = vmatprep.subr.bf16.mxu1 %v11143_v23  ;;  %v2532_v11 = vsel %vm732_vm1, %v2530_v22, %v13061_v9  ;;  %v11150_v23 = vld [vmem:[%s16295_s3 + $0x768] ss:$12 sps:$4 sm:$0xff]   ;;  %v11153_v9 = vld [vmem:[%s16295_s3 + $0x300] ss:$12 sps:$4 sm:$0xff]  }
 0x194   : > { %2886 = vmatprep.subr.bf16.mxu0 %v11146_v51  ;;  %v11155_v51 = vld [vmem:[%s16295_s3 + $0x304] ss:$12 sps:$4 sm:$0xff]   ;;  %v2534_v39 = vsel %vm735_vm2, %v2532_v11, %v12885_v32  ;;  %v11161_v32 = vld [vmem:[%s16295_s3 + $0x860] ss:$12 sps:$4 sm:$0xff]  }
 0x195   : > { %v11162_v22 = vld [vmem:[%s16295_s3 + $0x7a0] ss:$12 sps:$4 sm:$0xff]   ;;  %v11166_v11 = vld [vmem:[%s16295_s3 + $0x878] ss:$12 sps:$4 sm:$0xff]  }
 0x196   : > { %1550 = vmatpush1.bf16.msra.mxu1 %v11141_v56  ;;  %v2995_v56 = vsel %vm729_vm0, %v2958_v5, %v12895_v41  ;;  %v11157_v41 = vld [vmem:[%s16295_s3 + $0x788] ss:$12 sps:$4 sm:$0xff]  }
 0x197   : > { %2887 = vmatpush1.bf16.msra.mxu0 %v11144_v63  ;;  %1551 = vmatprep.subr.bf16.mxu1 %v11149_v0  ;;  %v2997_v63 = vsel %vm732_vm1, %v2995_v56, %v13088_v46  ;;  %v1633_v0 = vsel %vm735_vm2, %v12862_v18, %v12982_v26  ;;  %v11160_v46 = vld [vmem:[%s16295_s3 + $0x31c] ss:$12 sps:$4 sm:$0xff]  }
 0x198   : > { %2888 = vmatprep.subr.bf16.mxu0 %v11152_v12  ;;  %v2999_v5 = vsel %vm735_vm2, %v2997_v63, %v12928_v57  ;;  %v13380_v12 = vpack.c.bf16 %v2534_v39, %v2534_v39  ;;  %v13383_v18 = vpack.c.bf16 %v1633_v0, %v1633_v0  ;;  %v11158_v57 = vld [vmem:[%s16295_s3 + $0x318] ss:$12 sps:$4 sm:$0xff]   ;;  %v11171_v56 = vld [vmem:[%s16295_s3 + $0x890] ss:$12 sps:$4 sm:$0xff]   ;;  %v11173_v39 = vld [vmem:[%s16295_s3 + $0x360] ss:$12 sps:$4 sm:$0xff]  }
 0x199   : > { %v13386_v26 = vpack.c.bf16 %v2999_v5, %v2999_v5  ;;  %v11175_v63 = vld [vmem:[%s16295_s3 + $0x364] ss:$12 sps:$4 sm:$0xff]   ;;  %v11176_v0 = vld [vmem:[%s16295_s3 + $0x8a8] ss:$12 sps:$4 sm:$0xff]  }
 0x19a   : > { %1552 = vmatpush1.bf16.msra.mxu1 %v11147_v7  ;;  %v11163_v7 = vld [vmem:[%s16295_s3 + $0x330] ss:$12 sps:$4 sm:$0xff]  }
 0x19b   : > { %2889 = vmatpush1.bf16.msra.mxu0 %v11150_v23  ;;  %1956 = vmatprep.subr.bf16.mxu1 %v11155_v51  ;;  %v11167_v23 = vld [vmem:[%s16295_s3 + $0x7b8] ss:$12 sps:$4 sm:$0xff]   ;;  %v11180_v5 = vld [vmem:[%s16295_s3 + $0x37c] ss:$12 sps:$4 sm:$0xff]  }
 0x19c   : > { %10576 = vmatprep.subr.bf16.mxu0 %v11156_v24  ;;  %v11170_v51 = vld [vmem:[%s16295_s3 + $0x34c] ss:$12 sps:$4 sm:$0xff]   ;;  %v11168_v24 = vld [vmem:[%s16295_s3 + $0x348] ss:$12 sps:$4 sm:$0xff]  }
 0x19d   : > { %1554 = vmatmul.mubr.bf16.vlgmr.msra.gmra.mrb[24].mxu1 %v12812_v54  ;;  %v11165_v54 = vld [vmem:[%s16295_s3 + $0x334] ss:$12 sps:$4 sm:$0xff]  }
 0x19e   : > { %2891 = vmatmul.mubr.bf16.vlgmr.msra.gmra.mrb[8].mxu0 %v13380_v12  ;;  %1957 = vmatpush1.bf16.msra.mxu1 %v11153_v9  ;;  %v11172_v9 = vld [vmem:[%s16295_s3 + $0x7d0] ss:$12 sps:$4 sm:$0xff]  }
 0x19f   : > { %1988 = vmatprep.mubr.bf16.mxu1 %v13383_v18  ;;  %10577 = vmatpush3.bf16.msra.mxu0 %v11157_v41  ;;  %v11177_v41 = vld [vmem:[%s16295_s3 + $0x7e8] ss:$12 sps:$4 sm:$0xff]  }
 0x1a0   : > { %3395 = vmatprep.mubr.bf16.mxu0 %v13386_v26  ;;  %1958 = vmatprep.subr.bf16.mxu1 %v11160_v46  ;;  %v11178_v46 = vld [vmem:[%s16295_s3 + $0x378] ss:$12 sps:$4 sm:$0xff]  }
 0x1a1   : > { %10578 = vmatprep.subr.bf16.mxu0 %v11161_v32  ;;  %v11181_v32 = vld [vmem:[%s16295_s3 + $0x8c0] ss:$12 sps:$4 sm:$0xff]  }
 0x1a2   : > { %1959 = vmatpush1.bf16.msra.mxu1 %v11158_v57  ;;  %v11182_v57 = vld [vmem:[%s16295_s3 + $0x800] ss:$12 sps:$4 sm:$0xff]  }
 0x1a3   : > { %10579 = vmatpush3.bf16.msra.mxu0 %v11162_v22  ;;  %1960 = vmatprep.subr.bf16.mxu1 %v11165_v54  ;;  %v11185_v22 = vld [vmem:[%s16295_s3 + $0x394] ss:$12 sps:$4 sm:$0xff]   ;;  %v11186_v54 = vld [vmem:[%s16295_s3 + $0x8d8] ss:$12 sps:$4 sm:$0xff]  }
 0x1a4   : > { %10580 = vmatprep.subr.bf16.mxu0 %v11166_v11  ;;  %v2954_v11 = vrot.slane %v13323_v40, %v12718_v30  ;;  %v11188_v40 = vld [vmem:[%s16295_s3 + $0x3a8] ss:$12 sps:$4 sm:$0xff]  }
 0x1a6   : > { %1961 = vmatpush1.bf16.msra.mxu1 %v11163_v7  ;;  %v11183_v7 = vld [vmem:[%s16295_s3 + $0x390] ss:$12 sps:$4 sm:$0xff]  }
 0x1a7   : > { %10581 = vmatpush3.bf16.msra.mxu0 %v11167_v23  ;;  %1962 = vmatprep.subr.bf16.mxu1 %v11170_v51  ;;  %v11187_v23 = vld [vmem:[%s16295_s3 + $0x818] ss:$12 sps:$4 sm:$0xff]  }
 0x1a8   : > { %10582 = vmatprep.subr.bf16.mxu0 %v11171_v56  ;;  %v11190_v51 = vld [vmem:[%s16295_s3 + $0x3ac] ss:$12 sps:$4 sm:$0xff]   ;;  %v2994_v56 = vsel %vm729_vm0, %v2954_v11, %v12892_v38  ;;  %v11208_v11 = vld [vmem:[%s16295_s3 + $0x930] ss:$12 sps:$4 sm:$0xff]  }
 0x1a9   : > { %v11193_v38 = vld [vmem:[%s16295_s3 + $0x3c0] ss:$12 sps:$4 sm:$0xff]  }
 0x1aa   : > { %1963 = vmatpush1.bf16.msra.mxu1 %v11168_v24  ;;  %v11191_v24 = vld [vmem:[%s16295_s3 + $0x8f0] ss:$12 sps:$4 sm:$0xff]  }
 0x1ab   : > { %10583 = vmatpush3.bf16.msra.mxu0 %v11172_v9  ;;  %1964 = vmatprep.subr.bf16.mxu1 %v11175_v63  ;;  %v2996_v9 = vsel %vm732_vm1, %v2994_v56, %v13085_v33  ;;  %v11192_v63 = vld [vmem:[%s16295_s3 + $0x830] ss:$12 sps:$4 sm:$0xff]   ;;  %v11214_v56 = vld [vmem:[%s16295_s3 + $0x948] ss:$12 sps:$4 sm:$0xff]  }
 0x1ac   : > { %10584 = vmatprep.subr.bf16.mxu0 %v11176_v0  ;;  %v11198_v0 = vld [vmem:[%s16295_s3 + $0x904] ss:$12 sps:$4 sm:$0xff]   ;;  %v2998_v33 = vsel %vm735_vm2, %v2996_v9, %v12898_v42  ;;  %v11217_v9 = vld [vmem:[%s16295_s3 + $0x420] ss:$12 sps:$4 sm:$0xff]  }
 0x1ad   : > { %v13497_v42 = vpack.c.bf16 %v2998_v33, %v2998_v33  ;;  %v11228_v33 = vld [vmem:[%s16295_s3 + $0x97c] ss:$12 sps:$4 sm:$0xff]  }
 0x1ae   : > { %1965 = vmatpush1.bf16.msra.mxu1 %v11173_v39  ;;  %v11195_v39 = vld [vmem:[%s16295_s3 + $0x3c4] ss:$12 sps:$4 sm:$0xff]  }
 0x1af   : > { %10585 = vmatpush3.bf16.msra.mxu0 %v11177_v41  ;;  %1966 = vmatprep.subr.bf16.mxu1 %v11180_v5  ;;  %v11196_v41 = vld [vmem:[%s16295_s3 + $0x900] ss:$12 sps:$4 sm:$0xff]   ;;  %v3437_v5 = vsel %vm735_vm2, %v12909_v48, %v13074_v43  ;;  %v11199_v48 = vld [vmem:[%s16295_s3 + $0x3d8] ss:$12 sps:$4 sm:$0xff]  }
 0x1b0   : > { %10586 = vmatprep.subr.bf16.mxu0 %v11181_v32  ;;  %v11204_v32 = vld [vmem:[%s16295_s3 + $0x91c] ss:$12 sps:$4 sm:$0xff]   ;;  %v11202_v43 = vld [vmem:[%s16295_s3 + $0x918] ss:$12 sps:$4 sm:$0xff]  }
 0x1b2   : > { %1967 = vmatpush1.bf16.msra.mxu1 %v11178_v46  ;;  %v11201_v46 = vld [vmem:[%s16295_s3 + $0x3dc] ss:$12 sps:$4 sm:$0xff]  }
 0x1b3   : > { %10587 = vmatpush3.bf16.msra.mxu0 %v11182_v57  ;;  %1968 = vmatprep.subr.bf16.mxu1 %v11185_v22  ;;  %v13499_v57 = vpack.c.bf16 %v3437_v5, %v3437_v5  ;;  %v11207_v22 = vld [vmem:[%s16295_s3 + $0x3f4] ss:$12 sps:$4 sm:$0xff]  }
 0x1b4   : > { %10588 = vmatprep.subr.bf16.mxu0 %v11186_v54  ;;  %v11205_v54 = vld [vmem:[%s16295_s3 + $0x3f0] ss:$12 sps:$4 sm:$0xff]   ;;  %v11231_v5 = vld [vmem:[%s16295_s3 + $0x454] ss:$12 sps:$4 sm:$0xff]  }
 0x1b6   : > { %1969 = vmatpush1.bf16.msra.mxu1 %v11183_v7  ;;  %v11210_v7 = vld [vmem:[%s16295_s3 + $0x934] ss:$12 sps:$4 sm:$0xff]  }
 0x1b7   : > { %10589 = vmatpush3.bf16.msra.mxu0 %v11187_v23  ;;  %1970 = vmatprep.subr.bf16.mxu1 %v11190_v51  ;;  %v11213_v23 = vld [vmem:[%s16295_s3 + $0x40c] ss:$12 sps:$4 sm:$0xff]   ;;  %v11211_v51 = vld [vmem:[%s16295_s3 + $0x408] ss:$12 sps:$4 sm:$0xff]  }
 0x1b8   : > { %10590 = vmatprep.subr.bf16.mxu0 %v11191_v24  ;;  %v11216_v24 = vld [vmem:[%s16295_s3 + $0x94c] ss:$12 sps:$4 sm:$0xff]  }
 0x1ba   : > { %1971 = vmatpush1.bf16.msra.mxu1 %v11188_v40  ;;  %v11219_v40 = vld [vmem:[%s16295_s3 + $0x424] ss:$12 sps:$4 sm:$0xff]  }
 0x1bb   : > { %10591 = vmatpush3.bf16.msra.mxu0 %v11192_v63  ;;  %1972 = vmatprep.subr.bf16.mxu1 %v11195_v39  ;;  %v11222_v63 = vld [vmem:[%s16295_s3 + $0x964] ss:$12 sps:$4 sm:$0xff]   ;;  %v11220_v39 = vld [vmem:[%s16295_s3 + $0x960] ss:$12 sps:$4 sm:$0xff]  }
 0x1bc   : > { %3760 = vmatprep.subr.bf16.mxu0 %v11198_v0  ;;  %v11223_v0 = vld [vmem:[%s16295_s3 + $0x438] ss:$12 sps:$4 sm:$0xff]  }
 0x1be   : > { %3396 = vmatmul.mubr.bf16.vlgmr.msra.gmra.mrb[12].mxu0 %v13497_v42  ;;  %1973 = vmatpush1.bf16.msra.mxu1 %v11193_v38  ;;  %v11225_v38 = vld [vmem:[%s16295_s3 + $0x43c] ss:$12 sps:$4 sm:$0xff]  }
 0x1bf   : > { %3761 = vmatpush1.bf16.msra.mxu0 %v11196_v41  ;;  %3792 = vmatprep.mubr.bf16.mxu0 %v13499_v57  ;;  %v11226_v41 = vld [vmem:[%s16295_s3 + $0x978] ss:$12 sps:$4 sm:$0xff]  }
 0x1c0   : > { %1974 = vmatprep.subr.bf16.mxu1 %v11201_v46  ;;  %3762 = vmatprep.subr.bf16.mxu0 %v11204_v32  ;;  %v11229_v46 = vld [vmem:[%s16295_s3 + $0x450] ss:$12 sps:$4 sm:$0xff]   ;;  %v11234_v32 = vld [vmem:[%s16295_s3 + $0x994] ss:$12 sps:$4 sm:$0xff]  }
 0x1c2   : > { %1975 = vmatpush1.bf16.msra.mxu1 %v11199_v48  ;;  %v11232_v48 = vld [vmem:[%s16295_s3 + $0x990] ss:$12 sps:$4 sm:$0xff]  }
 0x1c3   : > { %3763 = vmatpush1.bf16.msra.mxu0 %v11202_v43  ;;  %1976 = vmatprep.subr.bf16.mxu1 %v11207_v22  ;;  %v11237_v43 = vld [vmem:[%s16295_s3 + $0x46c] ss:$12 sps:$4 sm:$0xff]   ;;  %v11235_v22 = vld [vmem:[%s16295_s3 + $0x468] ss:$12 sps:$4 sm:$0xff]  }
 0x1c4   : > { %3764 = vmatprep.subr.bf16.mxu0 %v11210_v7  ;;  %v11238_v7 = vld [vmem:[%s16295_s3 + $0x9a8] ss:$12 sps:$4 sm:$0xff]  }
 0x1c6   : > { %1977 = vmatpush1.bf16.msra.mxu1 %v11205_v54  ;;  %v11240_v54 = vld [vmem:[%s16295_s3 + $0x9ac] ss:$12 sps:$4 sm:$0xff]  }
 0x1c7   : > { %3765 = vmatpush1.bf16.msra.mxu0 %v11208_v11  ;;  %1978 = vmatprep.subr.bf16.mxu1 %v11213_v23  ;;  %v11241_v11 = vld [vmem:[%s16295_s3 + $0x3c8] ss:$12 sps:$4 sm:$0xff]   ;;  %v11244_v23 = vld [vmem:[%s16295_s3 + $0x9c4] ss:$12 sps:$4 sm:$0xff]  }
 0x1c8   : > { %3766 = vmatprep.subr.bf16.mxu0 %v11216_v24  ;;  %v11245_v24 = vld [vmem:[%s16295_s3 + $0x308] ss:$12 sps:$4 sm:$0xff]  }
 0x1ca   : > { %1979 = vmatpush1.bf16.msra.mxu1 %v11211_v51  ;;  %v1632_v51 = vsel %vm735_vm2, %v12913_v49, %v12992_v27  ;;  %v11247_v49 = vld [vmem:[%s16295_s3 + $0x9d8] ss:$12 sps:$4 sm:$0xff]   ;;  %v11250_v27 = vld [vmem:[%s16295_s3 + $0x320] ss:$12 sps:$4 sm:$0xff]  }
 0x1cb   : > { %3767 = vmatpush1.bf16.msra.mxu0 %v11214_v56  ;;  %1980 = vmatprep.subr.bf16.mxu1 %v11219_v40  ;;  %v11242_v56 = vld [vmem:[%s16295_s3 + $0x9c0] ss:$12 sps:$4 sm:$0xff]  }
 0x1cc   : > { %3768 = vmatprep.subr.bf16.mxu0 %v11222_v63  ;;  %v11246_v40 = vld [vmem:[%s16295_s3 + $0x3e0] ss:$12 sps:$4 sm:$0xff]   ;;  %v13602_v63 = vpack.c.bf16 %v1632_v51, %v1632_v51  ;;  %v11271_v51 = vld [vmem:[%s16295_s3 + $0x458] ss:$12 sps:$4 sm:$0xff]  }
 0x1ce   : > { %1981 = vmatpush1.bf16.msra.mxu1 %v11217_v9  ;;  %v11249_v9 = vld [vmem:[%s16295_s3 + $0x9dc] ss:$12 sps:$4 sm:$0xff]  }
 0x1cf   : > { %3769 = vmatpush1.bf16.msra.mxu0 %v11220_v39  ;;  %1982 = vmatprep.subr.bf16.mxu1 %v11225_v38  ;;  %v11251_v39 = vld [vmem:[%s16295_s3 + $0x3f8] ss:$12 sps:$4 sm:$0xff]   ;;  %v11254_v38 = vld [vmem:[%s16295_s3 + $0x9f4] ss:$12 sps:$4 sm:$0xff]  }
 0x1d0   : > { %3770 = vmatprep.subr.bf16.mxu0 %v11228_v33  ;;  %v11256_v33 = vld [vmem:[%s16295_s3 + $0x410] ss:$12 sps:$4 sm:$0xff]  }
 0x1d2   : > { %1983 = vmatpush1.bf16.msra.mxu1 %v11223_v0  ;;  %v11252_v0 = vld [vmem:[%s16295_s3 + $0x9f0] ss:$12 sps:$4 sm:$0xff]  }
 0x1d3   : > { %3771 = vmatpush1.bf16.msra.mxu0 %v11226_v41  ;;  %1984 = vmatprep.subr.bf16.mxu1 %v11231_v5  ;;  %v11259_v41 = vld [vmem:[%s16295_s3 + $0xa0c] ss:$12 sps:$4 sm:$0xff]   ;;  %v11260_v5 = vld [vmem:[%s16295_s3 + $0x350] ss:$12 sps:$4 sm:$0xff]  }
 0x1d4   : > { %3772 = vmatprep.subr.bf16.mxu0 %v11234_v32  ;;  %v11261_v32 = vld [vmem:[%s16295_s3 + $0x428] ss:$12 sps:$4 sm:$0xff]  }
 0x1d6   : > { %1985 = vmatpush1.bf16.msra.mxu1 %v11229_v46  ;;  %v11257_v46 = vld [vmem:[%s16295_s3 + $0xa08] ss:$12 sps:$4 sm:$0xff]  }
 0x1d7   : > { %3773 = vmatpush1.bf16.msra.mxu0 %v11232_v48  ;;  %1986 = vmatprep.subr.bf16.mxu1 %v11237_v43  ;;  %v11264_v48 = vld [vmem:[%s16295_s3 + $0xa24] ss:$12 sps:$4 sm:$0xff]   ;;  %v11265_v43 = vld [vmem:[%s16295_s3 + $0x368] ss:$12 sps:$4 sm:$0xff]  }
 0x1d8   : > { %3774 = vmatprep.subr.bf16.mxu0 %v11240_v54  ;;  %v11266_v54 = vld [vmem:[%s16295_s3 + $0x440] ss:$12 sps:$4 sm:$0xff]  }
 0x1da   : > { %1987 = vmatpush1.bf16.msra.mxu1 %v11235_v22  ;;  %v11262_v22 = vld [vmem:[%s16295_s3 + $0xa20] ss:$12 sps:$4 sm:$0xff]  }
 0x1db   : > { %3775 = vmatpush1.bf16.msra.mxu0 %v11238_v7  ;;  %10510 = vmatprep.subr.bf16.mxu1 %v11241_v11  ;;  %v11269_v7 = vld [vmem:[%s16295_s3 + $0xa3c] ss:$12 sps:$4 sm:$0xff]   ;;  %v11270_v11 = vld [vmem:[%s16295_s3 + $0x380] ss:$12 sps:$4 sm:$0xff]  }
 0x1dc   : > { %3776 = vmatprep.subr.bf16.mxu0 %v11244_v23  ;;  %v11267_v23 = vld [vmem:[%s16295_s3 + $0xa38] ss:$12 sps:$4 sm:$0xff]  }
 0x1dd   : > { %1989 = vmatmul.mubr.bf16.vlgmr.msra.gmra.mrb[28].mxu1 %v13602_v63 }
 0x1de   : > { %10511 = vmatpush3.bf16.msra.mxu1 %v11245_v24  ;;  %2029 = vmatprep.mubr.bf16.mxu1 %v13383_v18  ;;  %v11255_v18 = vld [vmem:[%s16295_s3 + $0x338] ss:$12 sps:$4 sm:$0xff]   ;;  %v11274_v24 = vld [vmem:[%s16295_s3 + $0xa54] ss:$12 sps:$4 sm:$0xff]  }
 0x1df   : > { %3777 = vmatpush1.bf16.msra.mxu0 %v11242_v56  ;;  %10512 = vmatprep.subr.bf16.mxu1 %v11246_v40  ;;  %v11272_v56 = vld [vmem:[%s16295_s3 + $0xa50] ss:$12 sps:$4 sm:$0xff]   ;;  %v11275_v40 = vld [vmem:[%s16295_s3 + $0x398] ss:$12 sps:$4 sm:$0xff]  }
 0x1e0   : > { %3778 = vmatprep.subr.bf16.mxu0 %v11249_v9  ;;  %v11276_v9 = vld [vmem:[%s16295_s3 + $0x470] ss:$12 sps:$4 sm:$0xff]  }
 0x1e2   : > { %10513 = vmatpush3.bf16.msra.mxu1 %v11250_v27  ;;  %v11280_v27 = vld [vmem:[%s16295_s3 + $0x3b0] ss:$12 sps:$4 sm:$0xff]  }
 0x1e3   : > { %3779 = vmatpush1.bf16.msra.mxu0 %v11247_v49  ;;  %10514 = vmatprep.subr.bf16.mxu1 %v11251_v39  ;;  %v11279_v49 = vld [vmem:[%s16295_s3 + $0xa6c] ss:$12 sps:$4 sm:$0xff]   ;;  %v11277_v39 = vld [vmem:[%s16295_s3 + $0xa68] ss:$12 sps:$4 sm:$0xff]  }
 0x1e4   : > { %3780 = vmatprep.subr.bf16.mxu0 %v11254_v38  ;;  %v11283_v38 = vld [vmem:[%s16295_s3 + $0x484] ss:$12 sps:$4 sm:$0xff]  }
 0x1e6   : > { %10515 = vmatpush3.bf16.msra.mxu1 %v11255_v18  ;;  %v11284_v18 = vld [vmem:[%s16295_s3 + $0xb48] ss:$12 sps:$4 sm:$0xff]  }
 0x1e7   : > { %3781 = vmatpush1.bf16.msra.mxu0 %v11252_v0  ;;  %10516 = vmatprep.subr.bf16.mxu1 %v11256_v33  ;;  %v11281_v0 = vld [vmem:[%s16295_s3 + $0x480] ss:$12 sps:$4 sm:$0xff]   ;;  %v3436_v33 = vsel %vm735_vm2, %v12932_v58, %v13091_v19 }
 0x1e8   : > { %3782 = vmatprep.subr.bf16.mxu0 %v11259_v41  ;;  %v11285_v41 = vld [vmem:[%s16295_s3 + $0xa88] ss:$12 sps:$4 sm:$0xff]   ;;  %v13708_v58 = vpack.c.bf16 %v3436_v33, %v3436_v33 }
 0x1ea   : > { %10517 = vmatpush3.bf16.msra.mxu1 %v11260_v5  ;;  %v3875_v5 = vsel %vm735_vm2, %v12961_v8, %v13097_v21  ;;  %v11286_v8 = vld [vmem:[%s16295_s3 + $0x498] ss:$12 sps:$4 sm:$0xff]   ;;  %v11290_v21 = vld [vmem:[%s16295_s3 + $0xaa0] ss:$12 sps:$4 sm:$0xff]  }
 0x1eb   : > { %3783 = vmatpush1.bf16.msra.mxu0 %v11257_v46  ;;  %10518 = vmatprep.subr.bf16.mxu1 %v11261_v32  ;;  %v11288_v46 = vld [vmem:[%s16295_s3 + $0x49c] ss:$12 sps:$4 sm:$0xff]   ;;  %v11289_v32 = vld [vmem:[%s16295_s3 + $0xb60] ss:$12 sps:$4 sm:$0xff]   ;;  %v13712_v19 = vpack.c.bf16 %v3875_v5, %v3875_v5 }
 0x1ec   : > { %3784 = vmatprep.subr.bf16.mxu0 %v11264_v48  ;;  %v11291_v48 = vld [vmem:[%s16295_s3 + $0x4b0] ss:$12 sps:$4 sm:$0xff]  }
 0x1ed   : > { %v11311_v5 = vld [vmem:[%s16295_s3 + $0x510] ss:$12 sps:$4 sm:$0xff]  }
 0x1ee   : > { %10519 = vmatpush3.bf16.msra.mxu1 %v11265_v43  ;;  %v11295_v43 = vld [vmem:[%s16295_s3 + $0xab8] ss:$12 sps:$4 sm:$0xff]  }
 0x1ef   : > { %3785 = vmatpush1.bf16.msra.mxu0 %v11262_v22  ;;  %10520 = vmatprep.subr.bf16.mxu1 %v11266_v54  ;;  %v11298_v22 = vld [vmem:[%s16295_s3 + $0x4cc] ss:$12 sps:$4 sm:$0xff]   ;;  %v11296_v54 = vld [vmem:[%s16295_s3 + $0x4c8] ss:$12 sps:$4 sm:$0xff]  }
 0x1f0   : > { %3786 = vmatprep.subr.bf16.mxu0 %v11269_v7  ;;  %v11299_v7 = vld [vmem:[%s16295_s3 + $0xb90] ss:$12 sps:$4 sm:$0xff]  }
 0x1f2   : > { %10521 = vmatpush3.bf16.msra.mxu1 %v11270_v11  ;;  %v11300_v11 = vld [vmem:[%s16295_s3 + $0xad0] ss:$12 sps:$4 sm:$0xff]  }
 0x1f3   : > { %3787 = vmatpush1.bf16.msra.mxu0 %v11267_v23  ;;  %10522 = vmatprep.subr.bf16.mxu1 %v11271_v51  ;;  %v11303_v23 = vld [vmem:[%s16295_s3 + $0x4e4] ss:$12 sps:$4 sm:$0xff]   ;;  %v11301_v51 = vld [vmem:[%s16295_s3 + $0x4e0] ss:$12 sps:$4 sm:$0xff]  }
 0x1f4   : > { %3788 = vmatprep.subr.bf16.mxu0 %v11274_v24  ;;  %v11304_v24 = vld [vmem:[%s16295_s3 + $0xba8] ss:$12 sps:$4 sm:$0xff]  }
 0x1f6   : > { %10523 = vmatpush3.bf16.msra.mxu1 %v11275_v40  ;;  %v11308_v40 = vld [vmem:[%s16295_s3 + $0x4fc] ss:$12 sps:$4 sm:$0xff]  }
 0x1f7   : > { %3789 = vmatpush1.bf16.msra.mxu0 %v11272_v56  ;;  %10524 = vmatprep.subr.bf16.mxu1 %v11276_v9  ;;  %v11305_v56 = vld [vmem:[%s16295_s3 + $0xae8] ss:$12 sps:$4 sm:$0xff]   ;;  %v11306_v9 = vld [vmem:[%s16295_s3 + $0x4f8] ss:$12 sps:$4 sm:$0xff]  }
 0x1f8   : > { %3790 = vmatprep.subr.bf16.mxu0 %v11279_v49  ;;  %v11309_v49 = vld [vmem:[%s16295_s3 + $0xbc0] ss:$12 sps:$4 sm:$0xff]  }
 0x1fa   : > { %10525 = vmatpush3.bf16.msra.mxu1 %v11280_v27  ;;  %v11310_v27 = vld [vmem:[%s16295_s3 + $0xb00] ss:$12 sps:$4 sm:$0xff]  }
 0x1fb   : > { %3791 = vmatpush1.bf16.msra.mxu0 %v11277_v39  ;;  %2394 = vmatprep.subr.bf16.mxu1 %v11283_v38  ;;  %v11313_v39 = vld [vmem:[%s16295_s3 + $0x514] ss:$12 sps:$4 sm:$0xff]   ;;  %v11314_v38 = vld [vmem:[%s16295_s3 + $0xbd8] ss:$12 sps:$4 sm:$0xff]  }
 0x1fc   : > { %10620 = vmatprep.subr.bf16.mxu0 %v11284_v18  ;;  %v13776_v18 = vld [vmem:[#allocation2 + $0x34] ss:$8 sm:$0x3] }
 0x1fd   : > { %2030 = vmatmul.mubr.bf16.vlgmr.msra.gmra.mrb[32].mxu1 %v13602_v63  ;;  %v11293_v63 = vld [vmem:[%s16295_s3 + $0x4b4] ss:$12 sps:$4 sm:$0xff]  }
 0x1fe   : > { %3793 = vmatmul.mubr.bf16.vlgmr.msra.gmra.mrb[16].mxu0 %v13708_v58  ;;  %2395 = vmatpush1.bf16.msra.mxu1 %v11281_v0 }
 0x1ff   : > { %2426 = vmatprep.mubr.bf16.mxu1 %v12826_v59  ;;  %10621 = vmatpush3.bf16.msra.mxu0 %v11285_v41  ;;  %v11294_v59 = vld [vmem:[%s16295_s3 + $0xb78] ss:$12 sps:$4 sm:$0xff]  }
 0x200   : > { %4271 = vmatprep.mubr.bf16.mxu0 %v13712_v19  ;;  %2396 = vmatprep.subr.bf16.mxu1 %v11288_v46 }
 0x201   : > { %10622 = vmatprep.subr.bf16.mxu0 %v11289_v32 }
 0x202   : > { %2397 = vmatpush1.bf16.msra.mxu1 %v11286_v8 }
 0x203   : > { %10623 = vmatpush3.bf16.msra.mxu0 %v11290_v21  ;;  %2398 = vmatprep.subr.bf16.mxu1 %v11293_v63 }
 0x204   : > { %10624 = vmatprep.subr.bf16.mxu0 %v11294_v59  ;;  %v11318_v59 = vld [vmem:[%s16295_s3 + $0x52c] ss:$12 sps:$4 sm:$0xff]  }
 0x206   : > { %2399 = vmatpush1.bf16.msra.mxu1 %v11291_v48  ;;  %v11315_v48 = vld [vmem:[%s16295_s3 + $0xb18] ss:$12 sps:$4 sm:$0xff]  }
 0x207   : > { %10625 = vmatpush3.bf16.msra.mxu0 %v11295_v43  ;;  %2400 = vmatprep.subr.bf16.mxu1 %v11298_v22  ;;  %v4294_v43 = vrot.slane %v13776_v18, %v12721_v31 }
 0x208   : > { %10626 = vmatprep.subr.bf16.mxu0 %v11299_v7  ;;  %v11316_v7 = vld [vmem:[%s16295_s3 + $0x528] ss:$12 sps:$4 sm:$0xff]  }
 0x20a   : > { %2401 = vmatpush1.bf16.msra.mxu1 %v11296_v54  ;;  %v11319_v54 = vld [vmem:[%s16295_s3 + $0xbf0] ss:$12 sps:$4 sm:$0xff]  }
 0x20b   : > { %10627 = vmatpush3.bf16.msra.mxu0 %v11300_v11  ;;  %2402 = vmatprep.subr.bf16.mxu1 %v11303_v23  ;;  %v11320_v11 = vld [vmem:[%s16295_s3 + $0xb30] ss:$12 sps:$4 sm:$0xff]  }
 0x20c   : > { %10628 = vmatprep.subr.bf16.mxu0 %v11304_v24  ;;  %v11323_v23 = vld [vmem:[%s16295_s3 + $0x544] ss:$12 sps:$4 sm:$0xff]   ;;  %v11321_v24 = vld [vmem:[%s16295_s3 + $0x540] ss:$12 sps:$4 sm:$0xff]  }
 0x20e   : > { %2403 = vmatpush1.bf16.msra.mxu1 %v11301_v51  ;;  %v4311_v51 = vsel %vm732_vm1, %v12969_v15, %v4294_v43  ;;  %v11345_v43 = vld [vmem:[%s16295_s3 + $0x5a0] ss:$12 sps:$4 sm:$0xff]  }
 0x20f   : > { %10629 = vmatpush3.bf16.msra.mxu0 %v11305_v56  ;;  %2404 = vmatprep.subr.bf16.mxu1 %v11308_v40  ;;  %v11326_v56 = vld [vmem:[%s16295_s3 + $0xc04] ss:$12 sps:$4 sm:$0xff]   ;;  %v3874_v40 = vsel %vm735_vm2, %v12955_v17, %v13094_v2  ;;  %v4313_v15 = vsel %vm735_vm2, %v4311_v51, %v12995_v29 }
 0x210   : > { %v13778_v0 = vpop.f32.mrb[16].mxu1  ;;  %10630 = vmatprep.subr.bf16.mxu0 %v11309_v49  ;;  %v11329_v49 = vld [vmem:[%s16295_s3 + $0x55c] ss:$12 sps:$4 sm:$0xff]   ;;  %v13831_v17 = vpack.c.bf16 %v4313_v15, %v4313_v15  ;;  %v11327_v29 = vld [vmem:[%s16295_s3 + $0x558] ss:$12 sps:$4 sm:$0xff]  }
 0x211   : > { %v10504_v33 = vpop.f32.mrb[0].mxu0  ;;  %v13780_v41 = vpop.f32.mrb[17].mxu1  ;;  %v11330_v2 = vld [vmem:[%s16295_s3 + $0xc18] ss:$12 sps:$4 sm:$0xff]  }
 0x212   : > { %v10505_v46 = vpop.f32.mrb[1].mxu0  ;;  %2405 = vmatpush1.bf16.msra.mxu1 %v11306_v9  ;;  %v1222_v32 = vpop.f32.mrb[18].mxu1  ;;  %v11324_v9 = vld [vmem:[%s16295_s3 + $0xc00] ss:$12 sps:$4 sm:$0xff]   ;;  %v11354_v51 = vld [vmem:[%s16295_s3 + $0xc78] ss:$12 sps:$4 sm:$0xff]  }
 0x213   : > { %v13785_v8 = vadd.f32 %v10505_v46, %v10504_v33  ;;  %10631 = vmatpush3.bf16.msra.mxu0 %v11310_v27  ;;  %v10507_v21 = vpop.f32.mrb[2].mxu0  ;;  %v1223_v63 = vpop.f32.mrb[19].mxu1  ;;  %2406 = vmatprep.subr.bf16.mxu1 %v11313_v39  ;;  %v11332_v27 = vld [vmem:[%s16295_s3 + $0xc1c] ss:$12 sps:$4 sm:$0xff]   ;;  %v13829_v39 = vpack.c.bf16 %v3874_v40, %v3874_v40  ;;  %v11341_v32 = vld [vmem:[%s16295_s3 + $0x58c] ss:$12 sps:$4 sm:$0xff]  }
 0x214   : > { %v10508_v22 = vpop.f32.mrb[3].mxu0  ;;  %10632 = vmatprep.subr.bf16.mxu0 %v11314_v38  ;;  %v11335_v38 = vld [vmem:[%s16295_s3 + $0x574] ss:$12 sps:$4 sm:$0xff]   ;;  %v11333_v33 = vld [vmem:[%s16295_s3 + $0x570] ss:$12 sps:$4 sm:$0xff]  }
 0x215   : > { %v11336_v46 = vld [vmem:[%s16295_s3 + $0xc30] ss:$12 sps:$4 sm:$0xff]   ;;  %v11339_v21 = vld [vmem:[%s16295_s3 + $0x588] ss:$12 sps:$4 sm:$0xff]   ;;  %v11344_v63 = vld [vmem:[%s16295_s3 + $0xc4c] ss:$12 sps:$4 sm:$0xff]  }
 0x216   : > { %2407 = vmatpush1.bf16.msra.mxu1 %v11311_v5  ;;  %v11338_v5 = vld [vmem:[%s16295_s3 + $0xc34] ss:$12 sps:$4 sm:$0xff]   ;;  %v11350_v22 = vld [vmem:[%s16295_s3 + $0xc64] ss:$12 sps:$4 sm:$0xff]  }
 0x217   : > { %10633 = vmatpush3.bf16.msra.mxu0 %v11315_v48  ;;  %2408 = vmatprep.subr.bf16.mxu1 %v11318_v59  ;;  %v11342_v48 = vld [vmem:[%s16295_s3 + $0xc48] ss:$12 sps:$4 sm:$0xff]   ;;  %v11347_v59 = vld [vmem:[%s16295_s3 + $0x5a4] ss:$12 sps:$4 sm:$0xff]  }
 0x218   : > { %10634 = vmatprep.subr.bf16.mxu0 %v11319_v54  ;;  %v11348_v54 = vld [vmem:[%s16295_s3 + $0xc60] ss:$12 sps:$4 sm:$0xff]  }
 0x21a   : > { %2409 = vmatpush1.bf16.msra.mxu1 %v11316_v7  ;;  %v11353_v7 = vld [vmem:[%s16295_s3 + $0x5bc] ss:$12 sps:$4 sm:$0xff]  }
 0x21b   : > { %10635 = vmatpush3.bf16.msra.mxu0 %v11320_v11  ;;  %2410 = vmatprep.subr.bf16.mxu1 %v11323_v23  ;;  %v11351_v11 = vld [vmem:[%s16295_s3 + $0x5b8] ss:$12 sps:$4 sm:$0xff]   ;;  %v11356_v23 = vld [vmem:[%s16295_s3 + $0xc7c] ss:$12 sps:$4 sm:$0xff]  }
 0x21c   : > { %4636 = vmatprep.subr.bf16.mxu0 %v11326_v56  ;;  %v11362_v56 = vld [vmem:[%s16295_s3 + $0xc94] ss:$12 sps:$4 sm:$0xff]  }
 0x21e   : > { %4272 = vmatmul.mubr.bf16.vlgmr.msra.gmra.mrb[20].mxu0 %v13829_v39  ;;  %2411 = vmatpush1.bf16.msra.mxu1 %v11321_v24  ;;  %v11359_v24 = vld [vmem:[%s16295_s3 + $0x5d4] ss:$12 sps:$4 sm:$0xff]  }
 0x21f   : > { %4637 = vmatpush1.bf16.msra.mxu0 %v11324_v9  ;;  %4668 = vmatprep.mubr.bf16.mxu0 %v13831_v17 }
 0x220   : > { %2412 = vmatprep.subr.bf16.mxu1 %v11329_v49  ;;  %4638 = vmatprep.subr.bf16.mxu0 %v11332_v27 }
 0x222   : > { %2413 = vmatpush1.bf16.msra.mxu1 %v11327_v29 }
 0x223   : > { %4639 = vmatpush1.bf16.msra.mxu0 %v11330_v2  ;;  %2414 = vmatprep.subr.bf16.mxu1 %v11335_v38  ;;  %v11357_v2 = vld [vmem:[%s16295_s3 + $0x5d0] ss:$12 sps:$4 sm:$0xff]  }
 0x224   : > { %4640 = vmatprep.subr.bf16.mxu0 %v11338_v5 }
 0x226   : > { %2415 = vmatpush1.bf16.msra.mxu1 %v11333_v33 }
 0x227   : > { %4641 = vmatpush1.bf16.msra.mxu0 %v11336_v46  ;;  %2416 = vmatprep.subr.bf16.mxu1 %v11341_v32  ;;  %v11360_v46 = vld [vmem:[%s16295_s3 + $0xc90] ss:$12 sps:$4 sm:$0xff]   ;;  %v11365_v32 = vld [vmem:[%s16295_s3 + $0x5ec] ss:$12 sps:$4 sm:$0xff]  }
 0x228   : > { %4642 = vmatprep.subr.bf16.mxu0 %v11344_v63 }
 0x22a   : > { %2417 = vmatpush1.bf16.msra.mxu1 %v11339_v21 }
 0x22b   : > { %4643 = vmatpush1.bf16.msra.mxu0 %v11342_v48  ;;  %2418 = vmatprep.subr.bf16.mxu1 %v11347_v59  ;;  %v11368_v48 = vld [vmem:[%s16295_s3 + $0xcac] ss:$12 sps:$4 sm:$0xff]   ;;  %v11363_v59 = vld [vmem:[%s16295_s3 + $0x5e8] ss:$12 sps:$4 sm:$0xff]  }
 0x22c   : > { %4644 = vmatprep.subr.bf16.mxu0 %v11350_v22  ;;  %v11372_v22 = vld [vmem:[%s16295_s3 + $0xcc4] ss:$12 sps:$4 sm:$0xff]  }
 0x22e   : > { %2419 = vmatpush1.bf16.msra.mxu1 %v11345_v43  ;;  %v11366_v43 = vld [vmem:[%s16295_s3 + $0xca8] ss:$12 sps:$4 sm:$0xff]  }
 0x22f   : > { %4645 = vmatpush1.bf16.msra.mxu0 %v11348_v54  ;;  %2420 = vmatprep.subr.bf16.mxu1 %v11353_v7  ;;  %v11373_v54 = vld [vmem:[%s16295_s3 + $0x608] ss:$12 sps:$4 sm:$0xff]   ;;  %v11370_v7 = vld [vmem:[%s16295_s3 + $0xcc0] ss:$12 sps:$4 sm:$0xff]  }
 0x230   : > { %v10482_v40 = vpop.f32.mrb[20].mxu1  ;;  %4646 = vmatprep.subr.bf16.mxu0 %v11356_v23  ;;  %v11377_v23 = vld [vmem:[%s16295_s3 + $0xcdc] ss:$12 sps:$4 sm:$0xff]  }
 0x231   : > { %v10548_v9 = vpop.f32.mrb[4].mxu0  ;;  %v10483_v15 = vpop.f32.mrb[21].mxu1 }
 0x232   : > { %v10484_v49 = vadd.f32 %v10483_v15, %v10482_v40  ;;  %v10549_v27 = vpop.f32.mrb[5].mxu0  ;;  %v10485_v29 = vpop.f32.mrb[22].mxu1  ;;  %2421 = vmatpush1.bf16.msra.mxu1 %v11351_v11  ;;  %v11374_v11 = vld [vmem:[%s16295_s3 + $0x6e0] ss:$12 sps:$4 sm:$0xff]   ;;  %v11380_v40 = vld [vmem:[%s16295_s3 + $0xcf0] ss:$12 sps:$4 sm:$0xff]  }
 0x233   : > { %v13898_v38 = vadd.f32 %v10549_v27, %v10548_v9  ;;  %v10551_v33 = vpop.f32.mrb[6].mxu0  ;;  %4647 = vmatpush1.bf16.msra.mxu0 %v11354_v51  ;;  %v10486_v5 = vpop.f32.mrb[23].mxu1  ;;  %2422 = vmatprep.subr.bf16.mxu1 %v11359_v24  ;;  %v11375_v51 = vld [vmem:[%s16295_s3 + $0xcd8] ss:$12 sps:$4 sm:$0xff]   ;;  %v11378_v24 = vld [vmem:[%s16295_s3 + $0x620] ss:$12 sps:$4 sm:$0xff]  }
 0x234   : > { %v13907_v21 = vadd.f32 %v13785_v8, %v10484_v49  ;;  %v10552_v63 = vpop.f32.mrb[7].mxu0  ;;  %4648 = vmatprep.subr.bf16.mxu0 %v11362_v56  ;;  %v11369_v8 = vld [vmem:[%s16295_s3 + $0x6c8] ss:$12 sps:$4 sm:$0xff]   ;;  %v11379_v56 = vld [vmem:[%s16295_s3 + $0x6f8] ss:$12 sps:$4 sm:$0xff]  }
 0x235   : > { %v11384_v9 = vld [vmem:[%s16295_s3 + $0x710] ss:$12 sps:$4 sm:$0xff]   ;;  %v11387_v15 = vld [vmem:[%s16295_s3 + $0xd0c] ss:$12 sps:$4 sm:$0xff]   ;;  %v11385_v27 = vld [vmem:[%s16295_s3 + $0xd08] ss:$12 sps:$4 sm:$0xff]  }
 0x236   : > { %2423 = vmatpush1.bf16.msra.mxu1 %v11357_v2  ;;  %v11388_v49 = vld [vmem:[%s16295_s3 + $0x650] ss:$12 sps:$4 sm:$0xff]   ;;  %v11389_v29 = vld [vmem:[%s16295_s3 + $0x728] ss:$12 sps:$4 sm:$0xff]   ;;  %v11390_v5 = vld [vmem:[%s16295_s3 + $0xd20] ss:$12 sps:$4 sm:$0xff]  }
 0x237   : > { %4649 = vmatpush1.bf16.msra.mxu0 %v11360_v46  ;;  %2424 = vmatprep.subr.bf16.mxu1 %v11365_v32  ;;  %v11392_v2 = vld [vmem:[%s16295_s3 + $0xd24] ss:$12 sps:$4 sm:$0xff]   ;;  %v11393_v33 = vld [vmem:[%s16295_s3 + $0x668] ss:$12 sps:$4 sm:$0xff]   ;;  %v11394_v46 = vld [vmem:[%s16295_s3 + $0x740] ss:$12 sps:$4 sm:$0xff]  }
 0x238   : > { %4650 = vmatprep.subr.bf16.mxu0 %v11368_v48  ;;  %v11397_v32 = vld [vmem:[%s16295_s3 + $0xd3c] ss:$12 sps:$4 sm:$0xff]   ;;  %v11398_v63 = vld [vmem:[%s16295_s3 + $0x680] ss:$12 sps:$4 sm:$0xff]   ;;  %v11395_v48 = vld [vmem:[%s16295_s3 + $0xd38] ss:$12 sps:$4 sm:$0xff]  }
 0x23a   : > { %2425 = vmatpush1.bf16.msra.mxu1 %v11363_v59  ;;  %v11399_v59 = vld [vmem:[%s16295_s3 + $0x758] ss:$12 sps:$4 sm:$0xff]  }
 0x23b   : > { %4651 = vmatpush1.bf16.msra.mxu0 %v11366_v43  ;;  %10554 = vmatprep.subr.bf16.mxu1 %v11369_v8  ;;  %v11402_v43 = vld [vmem:[%s16295_s3 + $0xd54] ss:$12 sps:$4 sm:$0xff]  }
 0x23c   : > { %4652 = vmatprep.subr.bf16.mxu0 %v11372_v22  ;;  %v13998_v8 = vld [vmem:[#allocation2 + $0x35] ss:$8 sm:$0x3]  ;;  %v11403_v22 = vld [vmem:[%s16295_s3 + $0x698] ss:$12 sps:$4 sm:$0xff]  }
 0x23d   : > { %2427 = vmatmul.mubr.bf16.vlgmr.msra.gmra.mrb[36].mxu1 %v13055_v6  ;;  %v11382_v6 = vld [vmem:[%s16295_s3 + $0xcf4] ss:$12 sps:$4 sm:$0xff]  }
 0x23e   : > { %10555 = vmatpush3.bf16.msra.mxu1 %v11373_v54  ;;  %2931 = vmatprep.mubr.bf16.mxu1 %v13129_v34  ;;  %v11383_v34 = vld [vmem:[%s16295_s3 + $0x638] ss:$12 sps:$4 sm:$0xff]   ;;  %v11400_v54 = vld [vmem:[%s16295_s3 + $0xd50] ss:$12 sps:$4 sm:$0xff]  }
 0x23f   : > { %4653 = vmatpush1.bf16.msra.mxu0 %v11370_v7  ;;  %10556 = vmatprep.subr.bf16.mxu1 %v11374_v11  ;;  %v11404_v7 = vld [vmem:[%s16295_s3 + $0x770] ss:$12 sps:$4 sm:$0xff]   ;;  %v4290_v11 = vrot.slane %v13776_v18, %v12718_v30  ;;  %v11405_v18 = vld [vmem:[%s16295_s3 + $0xd68] ss:$12 sps:$4 sm:$0xff]  }
 0x240   : > { %4654 = vmatprep.subr.bf16.mxu0 %v11377_v23  ;;  %v11407_v23 = vld [vmem:[%s16295_s3 + $0xd6c] ss:$12 sps:$4 sm:$0xff]  }
 0x242   : > { %10557 = vmatpush3.bf16.msra.mxu1 %v11378_v24  ;;  %v11408_v24 = vld [vmem:[%s16295_s3 + $0x6b0] ss:$12 sps:$4 sm:$0xff]  }
 0x243   : > { %4655 = vmatpush1.bf16.msra.mxu0 %v11375_v51  ;;  %10558 = vmatprep.subr.bf16.mxu1 %v11379_v56  ;;  %v4732_v51 = vrot.slane %v13998_v8, %v12721_v31  ;;  %v4310_v56 = vsel %vm732_vm1, %v12987_v16, %v4290_v11  ;;  %v11434_v11 = vld [vmem:[%s16295_s3 + $0x7f8] ss:$12 sps:$4 sm:$0xff]  }
 0x244   : > { %4656 = vmatprep.subr.bf16.mxu0 %v11382_v6  ;;  %v11411_v6 = vld [vmem:[%s16295_s3 + $0x784] ss:$12 sps:$4 sm:$0xff]  }
 0x245   : > { %v4749_v16 = vsel %vm732_vm1, %v13012_v45, %v4732_v51  ;;  %v11417_v45 = vld [vmem:[%s16295_s3 + $0xe60] ss:$12 sps:$4 sm:$0xff]  }
 0x246   : > { %10559 = vmatpush3.bf16.msra.mxu1 %v11383_v34  ;;  %v11412_v34 = vld [vmem:[%s16295_s3 + $0xe48] ss:$12 sps:$4 sm:$0xff]   ;;  %v11438_v51 = vld [vmem:[%s16295_s3 + $0xe00] ss:$12 sps:$4 sm:$0xff]  }
 0x247   : > { %4657 = vmatpush1.bf16.msra.mxu0 %v11380_v40  ;;  %10560 = vmatprep.subr.bf16.mxu1 %v11384_v9  ;;  %v11409_v40 = vld [vmem:[%s16295_s3 + $0x780] ss:$12 sps:$4 sm:$0xff]   ;;  %v4312_v9 = vsel %vm735_vm2, %v4310_v56, %v13007_v44  ;;  %v11442_v56 = vld [vmem:[%s16295_s3 + $0xed8] ss:$12 sps:$4 sm:$0xff]  }
 0x248   : > { %4658 = vmatprep.subr.bf16.mxu0 %v11387_v15  ;;  %v11413_v15 = vld [vmem:[%s16295_s3 + $0xd88] ss:$12 sps:$4 sm:$0xff]  }
 0x24a   : > { %10561 = vmatpush3.bf16.msra.mxu1 %v11388_v49  ;;  %v4751_v49 = vsel %vm735_vm2, %v4749_v16, %v13038_v61  ;;  %v11414_v61 = vld [vmem:[%s16295_s3 + $0x798] ss:$12 sps:$4 sm:$0xff]   ;;  %v11439_v16 = vld [vmem:[%s16295_s3 + $0x810] ss:$12 sps:$4 sm:$0xff]  }
 0x24b   : > { %4659 = vmatpush1.bf16.msra.mxu0 %v11385_v27  ;;  %10562 = vmatprep.subr.bf16.mxu1 %v11389_v29  ;;  %v11416_v27 = vld [vmem:[%s16295_s3 + $0x79c] ss:$12 sps:$4 sm:$0xff]   ;;  %v14048_v29 = vpack.c.bf16 %v4312_v9, %v4312_v9  ;;  %v14052_v44 = vpack.c.bf16 %v4751_v49, %v4751_v49 }
 0x24c   : > { %4660 = vmatprep.subr.bf16.mxu0 %v11392_v2  ;;  %v11418_v2 = vld [vmem:[%s16295_s3 + $0xda0] ss:$12 sps:$4 sm:$0xff]  }
 0x24d   : > { %v14124_v9 = vld [vmem:[#allocation2 + $0x40] ss:$8 sm:$0x3] }
 0x24e   : > { %10563 = vmatpush3.bf16.msra.mxu1 %v11393_v33  ;;  %v11419_v33 = vld [vmem:[%s16295_s3 + $0x7b0] ss:$12 sps:$4 sm:$0xff]  }
 0x24f   : > { %4661 = vmatpush1.bf16.msra.mxu0 %v11390_v5  ;;  %10564 = vmatprep.subr.bf16.mxu1 %v11394_v46  ;;  %v11423_v5 = vld [vmem:[%s16295_s3 + $0xdb8] ss:$12 sps:$4 sm:$0xff]  }
 0x250   : > { %4662 = vmatprep.subr.bf16.mxu0 %v11397_v32  ;;  %v11426_v46 = vld [vmem:[%s16295_s3 + $0x7cc] ss:$12 sps:$4 sm:$0xff]   ;;  %v11424_v32 = vld [vmem:[%s16295_s3 + $0x7c8] ss:$12 sps:$4 sm:$0xff]  }
 0x252   : > { %10565 = vmatpush3.bf16.msra.mxu1 %v11398_v63  ;;  %v11427_v63 = vld [vmem:[%s16295_s3 + $0xe90] ss:$12 sps:$4 sm:$0xff]  }
 0x253   : > { %4663 = vmatpush1.bf16.msra.mxu0 %v11395_v48  ;;  %10566 = vmatprep.subr.bf16.mxu1 %v11399_v59  ;;  %v11428_v48 = vld [vmem:[%s16295_s3 + $0xdd0] ss:$12 sps:$4 sm:$0xff]  }
 0x254   : > { %4664 = vmatprep.subr.bf16.mxu0 %v11402_v43  ;;  %v11431_v59 = vld [vmem:[%s16295_s3 + $0x7e4] ss:$12 sps:$4 sm:$0xff]   ;;  %v11429_v43 = vld [vmem:[%s16295_s3 + $0x7e0] ss:$12 sps:$4 sm:$0xff]  }
 0x256   : > { %10567 = vmatpush3.bf16.msra.mxu1 %v11403_v22  ;;  %v11432_v22 = vld [vmem:[%s16295_s3 + $0xea8] ss:$12 sps:$4 sm:$0xff]  }
 0x257   : > { %4665 = vmatpush1.bf16.msra.mxu0 %v11400_v54  ;;  %10568 = vmatprep.subr.bf16.mxu1 %v11404_v7  ;;  %v11433_v54 = vld [vmem:[%s16295_s3 + $0xde8] ss:$12 sps:$4 sm:$0xff]  }
 0x258   : > { %4666 = vmatprep.subr.bf16.mxu0 %v11407_v23  ;;  %v11436_v7 = vld [vmem:[%s16295_s3 + $0x7fc] ss:$12 sps:$4 sm:$0xff]   ;;  %v11437_v23 = vld [vmem:[%s16295_s3 + $0xec0] ss:$12 sps:$4 sm:$0xff]  }
 0x25a   : > { %10569 = vmatpush3.bf16.msra.mxu1 %v11408_v24  ;;  %v11441_v24 = vld [vmem:[%s16295_s3 + $0x814] ss:$12 sps:$4 sm:$0xff]  }
 0x25b   : > { %4667 = vmatpush1.bf16.msra.mxu0 %v11405_v18  ;;  %3322 = vmatprep.subr.bf16.mxu1 %v11411_v6 }
 0x25c   : > { %10664 = vmatprep.subr.bf16.mxu0 %v11412_v34 }
 0x25d   : > { %2932 = vmatmul.mubr.bf16.vlgmr.msra.gmra.mrb[40].mxu1 %v13380_v12  ;;  %v11421_v12 = vld [vmem:[%s16295_s3 + $0x7b4] ss:$12 sps:$4 sm:$0xff]  }
 0x25e   : > { %4669 = vmatmul.mubr.bf16.vlgmr.msra.gmra.mrb[24].mxu0 %v14048_v29  ;;  %3323 = vmatpush1.bf16.msra.mxu1 %v11409_v40 }
 0x25f   : > { %3354 = vmatprep.mubr.bf16.mxu1 %v13386_v26  ;;  %10665 = vmatpush3.bf16.msra.mxu0 %v11413_v15  ;;  %v11422_v26 = vld [vmem:[%s16295_s3 + $0xe78] ss:$12 sps:$4 sm:$0xff]   ;;  %v4728_v15 = vrot.slane %v13998_v8, %v12718_v30 }
 0x260   : > { %5147 = vmatprep.mubr.bf16.mxu0 %v14052_v44  ;;  %3324 = vmatprep.subr.bf16.mxu1 %v11416_v27 }
 0x261   : > { %10666 = vmatprep.subr.bf16.mxu0 %v11417_v45 }
 0x262   : > { %3325 = vmatpush1.bf16.msra.mxu1 %v11414_v61 }
 0x263   : > { %10667 = vmatpush3.bf16.msra.mxu0 %v11418_v2  ;;  %3326 = vmatprep.subr.bf16.mxu1 %v11421_v12  ;;  %v11443_v2 = vld [vmem:[%s16295_s3 + $0xe18] ss:$12 sps:$4 sm:$0xff]  }
 0x264   : > { %10668 = vmatprep.subr.bf16.mxu0 %v11422_v26  ;;  %v11446_v12 = vld [vmem:[%s16295_s3 + $0x82c] ss:$12 sps:$4 sm:$0xff]   ;;  %v4748_v26 = vsel %vm732_vm1, %v13017_v47, %v4728_v15  ;;  %v11454_v47 = vld [vmem:[%s16295_s3 + $0xf04] ss:$12 sps:$4 sm:$0xff]   ;;  %v11470_v15 = vld [vmem:[%s16295_s3 + $0xf48] ss:$12 sps:$4 sm:$0xff]  }
 0x266   : > { %3327 = vmatpush1.bf16.msra.mxu1 %v11419_v33  ;;  %v11444_v33 = vld [vmem:[%s16295_s3 + $0x828] ss:$12 sps:$4 sm:$0xff]  }
 0x267   : > { %10669 = vmatpush3.bf16.msra.mxu0 %v11423_v5  ;;  %3328 = vmatprep.subr.bf16.mxu1 %v11426_v46  ;;  %v5168_v5 = vrot.slane %v14124_v9, %v12721_v31  ;;  %v11448_v46 = vld [vmem:[%s16295_s3 + $0xe30] ss:$12 sps:$4 sm:$0xff]  }
 0x268   : > { %10670 = vmatprep.subr.bf16.mxu0 %v11427_v63  ;;  %v11449_v63 = vld [vmem:[%s16295_s3 + $0x840] ss:$12 sps:$4 sm:$0xff]  }
 0x26a   : > { %3329 = vmatpush1.bf16.msra.mxu1 %v11424_v32  ;;  %v11451_v32 = vld [vmem:[%s16295_s3 + $0x844] ss:$12 sps:$4 sm:$0xff]  }
 0x26b   : > { %10671 = vmatpush3.bf16.msra.mxu0 %v11428_v48  ;;  %3330 = vmatprep.subr.bf16.mxu1 %v11431_v59  ;;  %v4750_v48 = vsel %vm735_vm2, %v4748_v26, %v13035_v60  ;;  %v11452_v59 = vld [vmem:[%s16295_s3 + $0xf00] ss:$12 sps:$4 sm:$0xff]  }
 0x26c   : > { %10672 = vmatprep.subr.bf16.mxu0 %v11432_v22  ;;  %v11457_v22 = vld [vmem:[%s16295_s3 + $0x85c] ss:$12 sps:$4 sm:$0xff]   ;;  %v11487_v26 = vld [vmem:[%s16295_s3 + $0x8d4] ss:$12 sps:$4 sm:$0xff]  }
 0x26e   : > { %3331 = vmatpush1.bf16.msra.mxu1 %v11429_v43  ;;  %v5176_v43 = vsel %vm735_vm2, %v13042_v62, %v5168_v5  ;;  %v11455_v62 = vld [vmem:[%s16295_s3 + $0x858] ss:$12 sps:$4 sm:$0xff]   ;;  %v11490_v5 = vld [vmem:[%s16295_s3 + $0xf94] ss:$12 sps:$4 sm:$0xff]  }
 0x26f   : > { %10673 = vmatpush3.bf16.msra.mxu0 %v11433_v54  ;;  %3332 = vmatprep.subr.bf16.mxu1 %v11436_v7  ;;  %v11460_v54 = vld [vmem:[%s16295_s3 + $0xf1c] ss:$12 sps:$4 sm:$0xff]   ;;  %v14174_v7 = vpack.c.bf16 %v4750_v48, %v4750_v48  ;;  %v14176_v60 = vpack.c.bf16 %v5176_v43, %v5176_v43  ;;  %v11493_v43 = vld [vmem:[%s16295_s3 + $0x8ec] ss:$12 sps:$4 sm:$0xff]  }
 0x270   : > { %v1555_v18 = vpop.f32.mrb[24].mxu1  ;;  %10674 = vmatprep.subr.bf16.mxu0 %v11437_v23  ;;  %v11463_v23 = vld [vmem:[%s16295_s3 + $0x874] ss:$12 sps:$4 sm:$0xff]  }
 0x271   : > { %v14117_v6 = vadd.f32 %v1555_v18, %v13778_v0  ;;  %v14119_v34 = vpop.f32.mrb[8].mxu0  ;;  %v1557_v40 = vpop.f32.mrb[25].mxu1  ;;  %v11469_v18 = vld [vmem:[%s16295_s3 + $0x88c] ss:$12 sps:$4 sm:$0xff]  }
 0x272   : > { %v14129_v49 = vadd.f32 %v1557_v40, %v13780_v41  ;;  %v14131_v27 = vpop.f32.mrb[9].mxu0  ;;  %v1559_v45 = vpop.f32.mrb[26].mxu1  ;;  %3333 = vmatpush1.bf16.msra.mxu1 %v11434_v11  ;;  %v11447_v41 = vld [vmem:[%s16295_s3 + $0xef0] ss:$12 sps:$4 sm:$0xff]   ;;  %v11458_v11 = vld [vmem:[%s16295_s3 + $0xf18] ss:$12 sps:$4 sm:$0xff]  }
 0x273   : > { %v2896_v0 = vpop.f32.mrb[10].mxu0  ;;  %10675 = vmatpush3.bf16.msra.mxu0 %v11438_v51  ;;  %v1560_v61 = vpop.f32.mrb[27].mxu1  ;;  %3334 = vmatprep.subr.bf16.mxu1 %v11441_v24  ;;  %v11461_v51 = vld [vmem:[%s16295_s3 + $0x870] ss:$12 sps:$4 sm:$0xff]   ;;  %v11466_v24 = vld [vmem:[%s16295_s3 + $0xf34] ss:$12 sps:$4 sm:$0xff]  }
 0x274   : > { %v2897_v8 = vpop.f32.mrb[11].mxu0  ;;  %10676 = vmatprep.subr.bf16.mxu0 %v11442_v56  ;;  %v11464_v56 = vld [vmem:[%s16295_s3 + $0xf30] ss:$12 sps:$4 sm:$0xff]   ;;  %v11472_v40 = vld [vmem:[%s16295_s3 + $0xf4c] ss:$12 sps:$4 sm:$0xff]  }
 0x275   : > { %v11475_v45 = vld [vmem:[%s16295_s3 + $0x8a4] ss:$12 sps:$4 sm:$0xff]   ;;  %v11473_v61 = vld [vmem:[%s16295_s3 + $0x8a0] ss:$12 sps:$4 sm:$0xff]   ;;  %v11484_v8 = vld [vmem:[%s16295_s3 + $0xf7c] ss:$12 sps:$4 sm:$0xff]  }
 0x276   : > { %3335 = vmatpush1.bf16.msra.mxu1 %v11439_v16  ;;  %v11467_v16 = vld [vmem:[%s16295_s3 + $0x888] ss:$12 sps:$4 sm:$0xff]   ;;  %v11478_v0 = vld [vmem:[%s16295_s3 + $0xf64] ss:$12 sps:$4 sm:$0xff]  }
 0x277   : > { %10677 = vmatpush3.bf16.msra.mxu0 %v11443_v2  ;;  %3336 = vmatprep.subr.bf16.mxu1 %v11446_v12  ;;  %v11476_v2 = vld [vmem:[%s16295_s3 + $0xf60] ss:$12 sps:$4 sm:$0xff]   ;;  %v11481_v12 = vld [vmem:[%s16295_s3 + $0x8bc] ss:$12 sps:$4 sm:$0xff]  }
 0x278   : > { %10678 = vmatprep.subr.bf16.mxu0 %v11447_v41  ;;  %v11479_v41 = vld [vmem:[%s16295_s3 + $0x8b8] ss:$12 sps:$4 sm:$0xff]  }
 0x27a   : > { %3337 = vmatpush1.bf16.msra.mxu1 %v11444_v33  ;;  %v11482_v33 = vld [vmem:[%s16295_s3 + $0xf78] ss:$12 sps:$4 sm:$0xff]  }
 0x27b   : > { %10679 = vmatpush3.bf16.msra.mxu0 %v11448_v46  ;;  %3338 = vmatprep.subr.bf16.mxu1 %v11451_v32 }
 0x27c   : > { %5499 = vmatprep.subr.bf16.mxu0 %v11454_v47 }
 0x27e   : > { %5148 = vmatmul.mubr.bf16.vlgmr.msra.gmra.mrb[28].mxu0 %v14174_v7  ;;  %3339 = vmatpush1.bf16.msra.mxu1 %v11449_v63  ;;  %v11485_v63 = vld [vmem:[%s16295_s3 + $0x8d0] ss:$12 sps:$4 sm:$0xff]  }
 0x27f   : > { %5500 = vmatpush1.bf16.msra.mxu0 %v11452_v59  ;;  %5531 = vmatprep.mubr.bf16.mxu0 %v14176_v60  ;;  %v11488_v59 = vld [vmem:[%s16295_s3 + $0xf90] ss:$12 sps:$4 sm:$0xff]  }
 0x280   : > { %3340 = vmatprep.subr.bf16.mxu1 %v11457_v22  ;;  %5501 = vmatprep.subr.bf16.mxu0 %v11460_v54  ;;  %v11496_v54 = vld [vmem:[%s16295_s3 + $0xfac] ss:$12 sps:$4 sm:$0xff]  }
 0x282   : > { %3341 = vmatpush1.bf16.msra.mxu1 %v11455_v62  ;;  %v11491_v62 = vld [vmem:[%s16295_s3 + $0x8e8] ss:$12 sps:$4 sm:$0xff]  }
 0x283   : > { %5502 = vmatpush1.bf16.msra.mxu0 %v11458_v11  ;;  %3342 = vmatprep.subr.bf16.mxu1 %v11463_v23  ;;  %v11494_v11 = vld [vmem:[%s16295_s3 + $0xfa8] ss:$12 sps:$4 sm:$0xff]  }
 0x284   : > { %5503 = vmatprep.subr.bf16.mxu0 %v11466_v24  ;;  %v11497_v23 = vld [vmem:[%s16295_s3 + $0x9c8] ss:$12 sps:$4 sm:$0xff]  }
 0x285   : > { %v11501_v24 = vld [vmem:[%s16295_s3 + $0x908] ss:$12 sps:$4 sm:$0xff]  }
 0x286   : > { %3343 = vmatpush1.bf16.msra.mxu1 %v11461_v51  ;;  %v11500_v51 = vld [vmem:[%s16295_s3 + $0xfc4] ss:$12 sps:$4 sm:$0xff]  }
 0x287   : > { %5504 = vmatpush1.bf16.msra.mxu0 %v11464_v56  ;;  %3344 = vmatprep.subr.bf16.mxu1 %v11469_v18  ;;  %v11498_v56 = vld [vmem:[%s16295_s3 + $0xfc0] ss:$12 sps:$4 sm:$0xff]  }
 0x288   : > { %5505 = vmatprep.subr.bf16.mxu0 %v11472_v40  ;;  %v11502_v18 = vld [vmem:[%s16295_s3 + $0x9e0] ss:$12 sps:$4 sm:$0xff]   ;;  %v11505_v40 = vld [vmem:[%s16295_s3 + $0xfdc] ss:$12 sps:$4 sm:$0xff]  }
 0x28a   : > { %3345 = vmatpush1.bf16.msra.mxu1 %v11467_v16  ;;  %v11506_v16 = vld [vmem:[%s16295_s3 + $0x920] ss:$12 sps:$4 sm:$0xff]  }
 0x28b   : > { %5506 = vmatpush1.bf16.msra.mxu0 %v11470_v15  ;;  %3346 = vmatprep.subr.bf16.mxu1 %v11475_v45  ;;  %v11503_v15 = vld [vmem:[%s16295_s3 + $0xfd8] ss:$12 sps:$4 sm:$0xff]  }
 0x28c   : > { %5507 = vmatprep.subr.bf16.mxu0 %v11478_v0  ;;  %v11507_v45 = vld [vmem:[%s16295_s3 + $0x9f8] ss:$12 sps:$4 sm:$0xff]   ;;  %v11508_v0 = vld [vmem:[%s16295_s3 + $0xff0] ss:$12 sps:$4 sm:$0xff]  }
 0x28e   : > { %3347 = vmatpush1.bf16.msra.mxu1 %v11473_v61  ;;  %v11512_v61 = vld [vmem:[%s16295_s3 + $0xa10] ss:$12 sps:$4 sm:$0xff]  }
 0x28f   : > { %5508 = vmatpush1.bf16.msra.mxu0 %v11476_v2  ;;  %3348 = vmatprep.subr.bf16.mxu1 %v11481_v12  ;;  %v11515_v2 = vld [vmem:[%s16295_s3 + $0x100c] ss:$12 sps:$4 sm:$0xff]   ;;  %v11516_v12 = vld [vmem:[%s16295_s3 + $0x950] ss:$12 sps:$4 sm:$0xff]  }
 0x290   : > { %5509 = vmatprep.subr.bf16.mxu0 %v11484_v8  ;;  %v11513_v8 = vld [vmem:[%s16295_s3 + $0x1008] ss:$12 sps:$4 sm:$0xff]  }
 0x291   : > { %v10592_v46 = vpop.f32.mrb[12].mxu0 }
 0x292   : > { %v10593_v32 = vpop.f32.mrb[13].mxu0  ;;  %3349 = vmatpush1.bf16.msra.mxu1 %v11479_v41  ;;  %v11517_v41 = vld [vmem:[%s16295_s3 + $0xa28] ss:$12 sps:$4 sm:$0xff]  }
 0x293   : > { %v14243_v47 = vadd.f32 %v10593_v32, %v10592_v46  ;;  %v10595_v48 = vpop.f32.mrb[14].mxu0  ;;  %5510 = vmatpush1.bf16.msra.mxu0 %v11482_v33  ;;  %3350 = vmatprep.subr.bf16.mxu1 %v11487_v26  ;;  %v11520_v33 = vld [vmem:[%s16295_s3 + $0x1024] ss:$12 sps:$4 sm:$0xff]   ;;  %v11521_v26 = vld [vmem:[%s16295_s3 + $0x968] ss:$12 sps:$4 sm:$0xff]  }
 0x294   : > { %v10596_v22 = vpop.f32.mrb[15].mxu0  ;;  %5511 = vmatprep.subr.bf16.mxu0 %v11490_v5  ;;  %v11518_v5 = vld [vmem:[%s16295_s3 + $0x1020] ss:$12 sps:$4 sm:$0xff]   ;;  %v11525_v32 = vld [vmem:[%s16295_s3 + $0x103c] ss:$12 sps:$4 sm:$0xff]  }
 0x295   : > { %v11522_v46 = vld [vmem:[%s16295_s3 + $0xa40] ss:$12 sps:$4 sm:$0xff]   ;;  %v11523_v48 = vld [vmem:[%s16295_s3 + $0x1038] ss:$12 sps:$4 sm:$0xff]  }
 0x296   : > { %3351 = vmatpush1.bf16.msra.mxu1 %v11485_v63  ;;  %v11526_v63 = vld [vmem:[%s16295_s3 + $0x980] ss:$12 sps:$4 sm:$0xff]  }
 0x297   : > { %5512 = vmatpush1.bf16.msra.mxu0 %v11488_v59  ;;  %3352 = vmatprep.subr.bf16.mxu1 %v11493_v43  ;;  %v11527_v59 = vld [vmem:[%s16295_s3 + $0xa58] ss:$12 sps:$4 sm:$0xff]   ;;  %v11530_v22 = vld [vmem:[%s16295_s3 + $0x1054] ss:$12 sps:$4 sm:$0xff]  }
 0x298   : > { %5513 = vmatprep.subr.bf16.mxu0 %v11496_v54 }
 0x29a   : > { %3353 = vmatpush1.bf16.msra.mxu1 %v11491_v62 }
 0x29b   : > { %5514 = vmatpush1.bf16.msra.mxu0 %v11494_v11  ;;  %10598 = vmatprep.subr.bf16.mxu1 %v11497_v23 }
 0x29c   : > { %5515 = vmatprep.subr.bf16.mxu0 %v11500_v51  ;;  %v11531_v51 = vld [vmem:[%s16295_s3 + $0x998] ss:$12 sps:$4 sm:$0xff]  }
 0x29d   : > { %3355 = vmatmul.mubr.bf16.vlgmr.msra.gmra.mrb[44].mxu1 %v13497_v42  ;;  %v11510_v42 = vld [vmem:[%s16295_s3 + $0xff4] ss:$12 sps:$4 sm:$0xff]  }
 0x29e   : > { %10599 = vmatpush3.bf16.msra.mxu1 %v11501_v24  ;;  %3833 = vmatprep.mubr.bf16.mxu1 %v13499_v57  ;;  %v11511_v57 = vld [vmem:[%s16295_s3 + $0x938] ss:$12 sps:$4 sm:$0xff]  }
 0x29f   : > { %5516 = vmatpush1.bf16.msra.mxu0 %v11498_v56  ;;  %10600 = vmatprep.subr.bf16.mxu1 %v11502_v18  ;;  %v11528_v56 = vld [vmem:[%s16295_s3 + $0x1050] ss:$12 sps:$4 sm:$0xff]   ;;  %v14358_v18 = vld [vmem:[#allocation2 + $0x41] ss:$8 sm:$0x3] }
 0x2a0   : > { %5517 = vmatprep.subr.bf16.mxu0 %v11505_v40  ;;  %v5164_v40 = vrot.slane %v14124_v9, %v12718_v30  ;;  %v11540_v9 = vld [vmem:[%s16295_s3 + $0x1148] ss:$12 sps:$4 sm:$0xff]  }
 0x2a2   : > { %10601 = vmatpush3.bf16.msra.mxu1 %v11506_v16  ;;  %v11536_v16 = vld [vmem:[%s16295_s3 + $0x9b0] ss:$12 sps:$4 sm:$0xff]  }
 0x2a3   : > { %5518 = vmatpush1.bf16.msra.mxu0 %v11503_v15  ;;  %10602 = vmatprep.subr.bf16.mxu1 %v11507_v45  ;;  %v11533_v15 = vld [vmem:[%s16295_s3 + $0x1068] ss:$12 sps:$4 sm:$0xff]   ;;  %v11539_v45 = vld [vmem:[%s16295_s3 + $0xa84] ss:$12 sps:$4 sm:$0xff]  }
 0x2a4   : > { %5519 = vmatprep.subr.bf16.mxu0 %v11510_v42  ;;  %v5593_v42 = vrot.slane %v14358_v18, %v12721_v31 }
 0x2a6   : > { %10603 = vmatpush3.bf16.msra.mxu1 %v11511_v57  ;;  %v5175_v57 = vsel %vm735_vm2, %v13053_v4, %v5164_v40  ;;  %v11544_v4 = vld [vmem:[%s16295_s3 + $0xa9c] ss:$12 sps:$4 sm:$0xff]   ;;  %v11570_v40 = vld [vmem:[%s16295_s3 + $0x11d8] ss:$12 sps:$4 sm:$0xff]  }
 0x2a7   : > { %5520 = vmatpush1.bf16.msra.mxu0 %v11508_v0  ;;  %10604 = vmatprep.subr.bf16.mxu1 %v11512_v61  ;;  %v11537_v0 = vld [vmem:[%s16295_s3 + $0xa80] ss:$12 sps:$4 sm:$0xff]   ;;  %v11541_v61 = vld [vmem:[%s16295_s3 + $0x1088] ss:$12 sps:$4 sm:$0xff]  }
 0x2a8   : > { %5521 = vmatprep.subr.bf16.mxu0 %v11515_v2  ;;  %v5601_v2 = vsel %vm735_vm2, %v13078_v13, %v5593_v42  ;;  %v11542_v13 = vld [vmem:[%s16295_s3 + $0xa98] ss:$12 sps:$4 sm:$0xff]  }
 0x2aa   : > { %10605 = vmatpush3.bf16.msra.mxu1 %v11516_v12  ;;  %v14386_v12 = vpack.c.bf16 %v5175_v57, %v5175_v57 }
 0x2ab   : > { %5522 = vmatpush1.bf16.msra.mxu0 %v11513_v8  ;;  %10606 = vmatprep.subr.bf16.mxu1 %v11517_v41  ;;  %v11545_v8 = vld [vmem:[%s16295_s3 + $0x1160] ss:$12 sps:$4 sm:$0xff]   ;;  %v14396_v41 = vpack.c.bf16 %v5601_v2, %v5601_v2 }
 0x2ac   : > { %5523 = vmatprep.subr.bf16.mxu0 %v11520_v33  ;;  %v11549_v33 = vld [vmem:[%s16295_s3 + $0xab4] ss:$12 sps:$4 sm:$0xff]  }
 0x2ae   : > { %10607 = vmatpush3.bf16.msra.mxu1 %v11521_v26  ;;  %v11550_v26 = vld [vmem:[%s16295_s3 + $0x1178] ss:$12 sps:$4 sm:$0xff]  }
 0x2af   : > { %5524 = vmatpush1.bf16.msra.mxu0 %v11518_v5  ;;  %10608 = vmatprep.subr.bf16.mxu1 %v11522_v46  ;;  %v11551_v5 = vld [vmem:[%s16295_s3 + $0x10b8] ss:$12 sps:$4 sm:$0xff]  }
 0x2b0   : > { %v1990_v43 = vpop.f32.mrb[28].mxu1  ;;  %5525 = vmatprep.subr.bf16.mxu0 %v11525_v32  ;;  %v11554_v46 = vld [vmem:[%s16295_s3 + $0xacc] ss:$12 sps:$4 sm:$0xff]   ;;  %v11555_v32 = vld [vmem:[%s16295_s3 + $0x1190] ss:$12 sps:$4 sm:$0xff]  }
 0x2b1   : > { %v14341_v54 = vadd.f32 %v1990_v43, %v14117_v6  ;;  %v1992_v62 = vpop.f32.mrb[29].mxu1  ;;  %v11532_v6 = vld [vmem:[%s16295_s3 + $0xa70] ss:$12 sps:$4 sm:$0xff]   ;;  %v11560_v43 = vld [vmem:[%s16295_s3 + $0x11a8] ss:$12 sps:$4 sm:$0xff]  }
 0x2b2   : > { %v14344_v11 = vadd.f32 %v1992_v62, %v14129_v49  ;;  %v1994_v23 = vpop.f32.mrb[30].mxu1  ;;  %10609 = vmatpush3.bf16.msra.mxu1 %v11526_v63  ;;  %v11535_v49 = vld [vmem:[%s16295_s3 + $0x106c] ss:$12 sps:$4 sm:$0xff]   ;;  %v11552_v63 = vld [vmem:[%s16295_s3 + $0xac8] ss:$12 sps:$4 sm:$0xff]  }
 0x2b3   : > { %5526 = vmatpush1.bf16.msra.mxu0 %v11523_v48  ;;  %v1995_v24 = vpop.f32.mrb[31].mxu1  ;;  %10610 = vmatprep.subr.bf16.mxu1 %v11527_v59  ;;  %v11556_v48 = vld [vmem:[%s16295_s3 + $0x10d0] ss:$12 sps:$4 sm:$0xff]   ;;  %v11561_v62 = vld [vmem:[%s16295_s3 + $0x10e8] ss:$12 sps:$4 sm:$0xff]  }
 0x2b4   : > { %5527 = vmatprep.subr.bf16.mxu0 %v11530_v22  ;;  %v11559_v59 = vld [vmem:[%s16295_s3 + $0xae4] ss:$12 sps:$4 sm:$0xff]   ;;  %v11557_v22 = vld [vmem:[%s16295_s3 + $0xae0] ss:$12 sps:$4 sm:$0xff]   ;;  %v11564_v23 = vld [vmem:[%s16295_s3 + $0xafc] ss:$12 sps:$4 sm:$0xff]  }
 0x2b5   : > { %v11562_v24 = vld [vmem:[%s16295_s3 + $0xaf8] ss:$12 sps:$4 sm:$0xff]  }
 0x2b6   : > { %10611 = vmatpush3.bf16.msra.mxu1 %v11531_v51  ;;  %v11565_v51 = vld [vmem:[%s16295_s3 + $0x11c0] ss:$12 sps:$4 sm:$0xff]  }
 0x2b7   : > { %5528 = vmatpush1.bf16.msra.mxu0 %v11528_v56  ;;  %10612 = vmatprep.subr.bf16.mxu1 %v11532_v6  ;;  %v11566_v56 = vld [vmem:[%s16295_s3 + $0x1100] ss:$12 sps:$4 sm:$0xff]  }
 0x2b8   : > { %5529 = vmatprep.subr.bf16.mxu0 %v11535_v49  ;;  %v11569_v6 = vld [vmem:[%s16295_s3 + $0xb14] ss:$12 sps:$4 sm:$0xff]  }
 0x2ba   : > { %10613 = vmatpush3.bf16.msra.mxu1 %v11536_v16  ;;  %v14460_v16 = vld [vmem:[#allocation2 + $0x43] ss:$8 sm:$0x3] }
 0x2bb   : > { %5530 = vmatpush1.bf16.msra.mxu0 %v11533_v15  ;;  %4198 = vmatprep.subr.bf16.mxu1 %v11539_v45 }
 0x2bc   : > { %10708 = vmatprep.subr.bf16.mxu0 %v11540_v9 }
 0x2bd   : > { %3834 = vmatmul.mubr.bf16.vlgmr.msra.gmra.mrb[48].mxu1 %v13708_v58  ;;  %v11546_v58 = vld [vmem:[%s16295_s3 + $0x10a0] ss:$12 sps:$4 sm:$0xff]  }
 0x2be   : > { %5532 = vmatmul.mubr.bf16.vlgmr.msra.gmra.mrb[32].mxu0 %v14386_v12  ;;  %4199 = vmatpush1.bf16.msra.mxu1 %v11537_v0  ;;  %v11567_v0 = vld [vmem:[%s16295_s3 + $0xb10] ss:$12 sps:$4 sm:$0xff]  }
 0x2bf   : > { %4230 = vmatprep.mubr.bf16.mxu1 %v13712_v19  ;;  %10709 = vmatpush3.bf16.msra.mxu0 %v11541_v61  ;;  %v11547_v19 = vld [vmem:[%s16295_s3 + $0xab0] ss:$12 sps:$4 sm:$0xff]  }
 0x2c0   : > { %5997 = vmatprep.mubr.bf16.mxu0 %v14396_v41  ;;  %4200 = vmatprep.subr.bf16.mxu1 %v11544_v4  ;;  %v11571_v4 = vld [vmem:[%s16295_s3 + $0x1118] ss:$12 sps:$4 sm:$0xff]  }
 0x2c1   : > { %10710 = vmatprep.subr.bf16.mxu0 %v11545_v8  ;;  %v11574_v8 = vld [vmem:[%s16295_s3 + $0xb2c] ss:$12 sps:$4 sm:$0xff]  }
 0x2c2   : > { %4201 = vmatpush1.bf16.msra.mxu1 %v11542_v13  ;;  %v6020_v13 = vrot.slane %v14460_v16, %v12721_v31 }
 0x2c3   : > { %10711 = vmatpush3.bf16.msra.mxu0 %v11546_v58  ;;  %4202 = vmatprep.subr.bf16.mxu1 %v11549_v33 }
 0x2c4   : > { %10712 = vmatprep.subr.bf16.mxu0 %v11550_v26  ;;  %v11575_v26 = vld [vmem:[%s16295_s3 + $0x11f0] ss:$12 sps:$4 sm:$0xff]  }
 0x2c6   : > { %4203 = vmatpush1.bf16.msra.mxu1 %v11547_v19  ;;  %v5589_v19 = vrot.slane %v14358_v18, %v12718_v30  ;;  %v6037_v18 = vsel %vm732_vm1, %v13104_v37, %v6020_v13  ;;  %v11580_v37 = vld [vmem:[%s16295_s3 + $0x1200] ss:$12 sps:$4 sm:$0xff]   ;;  %v11607_v13 = vld [vmem:[%s16295_s3 + $0xbb8] ss:$12 sps:$4 sm:$0xff]  }
 0x2c7   : > { %10713 = vmatpush3.bf16.msra.mxu0 %v11551_v5  ;;  %4204 = vmatprep.subr.bf16.mxu1 %v11554_v46  ;;  %v11572_v5 = vld [vmem:[%s16295_s3 + $0xb28] ss:$12 sps:$4 sm:$0xff]  }
 0x2c8   : > { %10714 = vmatprep.subr.bf16.mxu0 %v11555_v32  ;;  %v11579_v32 = vld [vmem:[%s16295_s3 + $0xb44] ss:$12 sps:$4 sm:$0xff]  }
 0x2ca   : > { %4205 = vmatpush1.bf16.msra.mxu1 %v11552_v63  ;;  %v11582_v63 = vld [vmem:[%s16295_s3 + $0x1204] ss:$12 sps:$4 sm:$0xff]  }
 0x2cb   : > { %10715 = vmatpush3.bf16.msra.mxu0 %v11556_v48  ;;  %4206 = vmatprep.subr.bf16.mxu1 %v11559_v59  ;;  %v11577_v48 = vld [vmem:[%s16295_s3 + $0xb40] ss:$12 sps:$4 sm:$0xff]   ;;  %v6039_v59 = vsel %vm735_vm2, %v6037_v18, %v13100_v35  ;;  %v11583_v35 = vld [vmem:[%s16295_s3 + $0xb58] ss:$12 sps:$4 sm:$0xff]  }
 0x2cc   : > { %10716 = vmatprep.subr.bf16.mxu0 %v11560_v43 }
 0x2ce   : > { %4207 = vmatpush1.bf16.msra.mxu1 %v11557_v22  ;;  %v11588_v22 = vld [vmem:[%s16295_s3 + $0x121c] ss:$12 sps:$4 sm:$0xff]  }
 0x2cf   : > { %10717 = vmatpush3.bf16.msra.mxu0 %v11561_v62  ;;  %4208 = vmatprep.subr.bf16.mxu1 %v11564_v23  ;;  %v14518_v62 = vpack.c.bf16 %v6039_v59, %v6039_v59  ;;  %v11586_v23 = vld [vmem:[%s16295_s3 + $0x1218] ss:$12 sps:$4 sm:$0xff]  }
 0x2d0   : > { %v10526_v49 = vpop.f32.mrb[32].mxu1  ;;  %10718 = vmatprep.subr.bf16.mxu0 %v11565_v51  ;;  %v11591_v51 = vld [vmem:[%s16295_s3 + $0xb74] ss:$12 sps:$4 sm:$0xff]   ;;  %v11624_v59 = vld [vmem:[%s16295_s3 + $0x12ac] ss:$12 sps:$4 sm:$0xff]  }
 0x2d1   : > { %v14462_v15 = vpop.f32.mrb[16].mxu0  ;;  %v10527_v45 = vpop.f32.mrb[33].mxu1 }
 0x2d2   : > { %v10528_v42 = vadd.f32 %v10527_v45, %v10526_v49  ;;  %v14464_v9 = vpop.f32.mrb[17].mxu0  ;;  %v10529_v57 = vpop.f32.mrb[34].mxu1  ;;  %4209 = vmatpush1.bf16.msra.mxu1 %v11562_v24  ;;  %v11594_v24 = vld [vmem:[%s16295_s3 + $0x1234] ss:$12 sps:$4 sm:$0xff]   ;;  %v11597_v49 = vld [vmem:[%s16295_s3 + $0xb8c] ss:$12 sps:$4 sm:$0xff]  }
 0x2d3   : > { %v3798_v61 = vpop.f32.mrb[18].mxu0  ;;  %10719 = vmatpush3.bf16.msra.mxu0 %v11566_v56  ;;  %v10530_v2 = vpop.f32.mrb[35].mxu1  ;;  %4210 = vmatprep.subr.bf16.mxu1 %v11569_v6  ;;  %v11589_v56 = vld [vmem:[%s16295_s3 + $0xb70] ss:$12 sps:$4 sm:$0xff]   ;;  %v11595_v45 = vld [vmem:[%s16295_s3 + $0xb88] ss:$12 sps:$4 sm:$0xff]  }
 0x2d4   : > { %v2039_v58 = vadd.f32 %v10528_v42, %v13907_v21  ;;  %v3799_v33 = vpop.f32.mrb[19].mxu0  ;;  %10720 = vmatprep.subr.bf16.mxu0 %v11570_v40  ;;  %v11576_v21 = vld [vmem:[%s16295_s3 + $0x1130] ss:$12 sps:$4 sm:$0xff]   ;;  %v11600_v40 = vld [vmem:[%s16295_s3 + $0x124c] ss:$12 sps:$4 sm:$0xff]  }
 0x2d5   : > { %v11592_v6 = vld [vmem:[%s16295_s3 + $0x1230] ss:$12 sps:$4 sm:$0xff]   ;;  %v11598_v42 = vld [vmem:[%s16295_s3 + $0x1248] ss:$12 sps:$4 sm:$0xff]   ;;  %v11601_v61 = vld [vmem:[%s16295_s3 + $0xba0] ss:$12 sps:$4 sm:$0xff]  }
 0x2d6   : > { %4211 = vmatpush1.bf16.msra.mxu1 %v11567_v0  ;;  %v14487_v46 = vadd.f32 %v13898_v38, %v2039_v58  ;;  %v5600_v38 = vsel %vm735_vm2, %v13082_v36, %v5589_v19  ;;  %v11585_v36 = vld [vmem:[%s16295_s3 + $0xb5c] ss:$12 sps:$4 sm:$0xff]   ;;  %v11603_v57 = vld [vmem:[%s16295_s3 + $0xba4] ss:$12 sps:$4 sm:$0xff]   ;;  %v11604_v2 = vld [vmem:[%s16295_s3 + $0x1260] ss:$12 sps:$4 sm:$0xff]  }
 0x2d7   : > { %10721 = vmatpush3.bf16.msra.mxu0 %v11571_v4  ;;  %4212 = vmatprep.subr.bf16.mxu1 %v11574_v8  ;;  %v14510_v43 = vpack.c.bf16 %v5600_v38, %v5600_v38  ;;  %v11606_v0 = vld [vmem:[%s16295_s3 + $0x1264] ss:$12 sps:$4 sm:$0xff]   ;;  %v11609_v4 = vld [vmem:[%s16295_s3 + $0xbbc] ss:$12 sps:$4 sm:$0xff]   ;;  %v11615_v33 = vld [vmem:[%s16295_s3 + $0xbd4] ss:$12 sps:$4 sm:$0xff]  }
 0x2d8   : > { %10722 = vmatprep.subr.bf16.mxu0 %v11575_v26  ;;  %v11612_v8 = vld [vmem:[%s16295_s3 + $0x127c] ss:$12 sps:$4 sm:$0xff]   ;;  %v11610_v58 = vld [vmem:[%s16295_s3 + $0x1278] ss:$12 sps:$4 sm:$0xff]   ;;  %v11618_v26 = vld [vmem:[%s16295_s3 + $0x1294] ss:$12 sps:$4 sm:$0xff]  }
 0x2d9   : > { %v11621_v38 = vld [vmem:[%s16295_s3 + $0xbec] ss:$12 sps:$4 sm:$0xff]  }
 0x2da   : > { %4213 = vmatpush1.bf16.msra.mxu1 %v11572_v5 }
 0x2db   : > { %10723 = vmatpush3.bf16.msra.mxu0 %v11576_v21  ;;  %4214 = vmatprep.subr.bf16.mxu1 %v11579_v32  ;;  %v11613_v21 = vld [vmem:[%s16295_s3 + $0xbd0] ss:$12 sps:$4 sm:$0xff]  }
 0x2dc   : > { %6362 = vmatprep.subr.bf16.mxu0 %v11582_v63  ;;  %v11616_v63 = vld [vmem:[%s16295_s3 + $0x1290] ss:$12 sps:$4 sm:$0xff]  }
 0x2de   : > { %5998 = vmatmul.mubr.bf16.vlgmr.msra.gmra.mrb[36].mxu0 %v14510_v43  ;;  %4215 = vmatpush1.bf16.msra.mxu1 %v11577_v48 }
 0x2df   : > { %6363 = vmatpush1.bf16.msra.mxu0 %v11580_v37  ;;  %6394 = vmatprep.mubr.bf16.mxu0 %v14518_v62  ;;  %v11619_v37 = vld [vmem:[%s16295_s3 + $0xbe8] ss:$12 sps:$4 sm:$0xff]  }
 0x2e0   : > { %4216 = vmatprep.subr.bf16.mxu1 %v11585_v36  ;;  %6364 = vmatprep.subr.bf16.mxu0 %v11588_v22  ;;  %v11622_v36 = vld [vmem:[%s16295_s3 + $0x12a8] ss:$12 sps:$4 sm:$0xff]  }
 0x2e1   : > { %v11625_v22 = vld [vmem:[%s16295_s3 + $0xcc8] ss:$12 sps:$4 sm:$0xff]  }
 0x2e2   : > { %4217 = vmatpush1.bf16.msra.mxu1 %v11583_v35  ;;  %v11628_v35 = vld [vmem:[%s16295_s3 + $0x12c4] ss:$12 sps:$4 sm:$0xff]  }
 0x2e3   : > { %6365 = vmatpush1.bf16.msra.mxu0 %v11586_v23  ;;  %4218 = vmatprep.subr.bf16.mxu1 %v11591_v51  ;;  %v11629_v23 = vld [vmem:[%s16295_s3 + $0xc08] ss:$12 sps:$4 sm:$0xff]   ;;  %v11626_v51 = vld [vmem:[%s16295_s3 + $0x12c0] ss:$12 sps:$4 sm:$0xff]  }
 0x2e4   : > { %6366 = vmatprep.subr.bf16.mxu0 %v11594_v24  ;;  %v11630_v24 = vld [vmem:[%s16295_s3 + $0xce0] ss:$12 sps:$4 sm:$0xff]  }
 0x2e6   : > { %4219 = vmatpush1.bf16.msra.mxu1 %v11589_v56  ;;  %v11633_v56 = vld [vmem:[%s16295_s3 + $0x12dc] ss:$12 sps:$4 sm:$0xff]  }
 0x2e7   : > { %6367 = vmatpush1.bf16.msra.mxu0 %v11592_v6  ;;  %4220 = vmatprep.subr.bf16.mxu1 %v11597_v49  ;;  %v11634_v6 = vld [vmem:[%s16295_s3 + $0xc20] ss:$12 sps:$4 sm:$0xff]   ;;  %v11631_v49 = vld [vmem:[%s16295_s3 + $0x12d8] ss:$12 sps:$4 sm:$0xff]  }
 0x2e8   : > { %6368 = vmatprep.subr.bf16.mxu0 %v11600_v40  ;;  %v11635_v40 = vld [vmem:[%s16295_s3 + $0xcf8] ss:$12 sps:$4 sm:$0xff]  }
 0x2ea   : > { %4221 = vmatpush1.bf16.msra.mxu1 %v11595_v45  ;;  %v11636_v45 = vld [vmem:[%s16295_s3 + $0x12f0] ss:$12 sps:$4 sm:$0xff]  }
 0x2eb   : > { %6369 = vmatpush1.bf16.msra.mxu0 %v11598_v42  ;;  %4222 = vmatprep.subr.bf16.mxu1 %v11603_v57  ;;  %v11640_v42 = vld [vmem:[%s16295_s3 + $0xd10] ss:$12 sps:$4 sm:$0xff]   ;;  %v11643_v57 = vld [vmem:[%s16295_s3 + $0x130c] ss:$12 sps:$4 sm:$0xff]  }
 0x2ec   : > { %6370 = vmatprep.subr.bf16.mxu0 %v11606_v0  ;;  %v11644_v0 = vld [vmem:[%s16295_s3 + $0xc50] ss:$12 sps:$4 sm:$0xff]  }
 0x2ee   : > { %4223 = vmatpush1.bf16.msra.mxu1 %v11601_v61  ;;  %v11641_v61 = vld [vmem:[%s16295_s3 + $0x1308] ss:$12 sps:$4 sm:$0xff]  }
 0x2ef   : > { %6371 = vmatpush1.bf16.msra.mxu0 %v11604_v2  ;;  %4224 = vmatprep.subr.bf16.mxu1 %v11609_v4  ;;  %v11645_v2 = vld [vmem:[%s16295_s3 + $0xd28] ss:$12 sps:$4 sm:$0xff]   ;;  %v11648_v4 = vld [vmem:[%s16295_s3 + $0x1324] ss:$12 sps:$4 sm:$0xff]  }
 0x2f0   : > { %6372 = vmatprep.subr.bf16.mxu0 %v11612_v8  ;;  %v11649_v8 = vld [vmem:[%s16295_s3 + $0xc68] ss:$12 sps:$4 sm:$0xff]  }
 0x2f1   : > { %v10636_v19 = vpop.f32.mrb[20].mxu0 }
 0x2f2   : > { %v10637_v5 = vpop.f32.mrb[21].mxu0  ;;  %4225 = vmatpush1.bf16.msra.mxu1 %v11607_v13  ;;  %v11646_v13 = vld [vmem:[%s16295_s3 + $0x1320] ss:$12 sps:$4 sm:$0xff]  }
 0x2f3   : > { %v14585_v32 = vadd.f32 %v10637_v5, %v10636_v19  ;;  %v10639_v18 = vpop.f32.mrb[22].mxu0  ;;  %6373 = vmatpush1.bf16.msra.mxu0 %v11610_v58  ;;  %4226 = vmatprep.subr.bf16.mxu1 %v11615_v33  ;;  %v11650_v58 = vld [vmem:[%s16295_s3 + $0xd40] ss:$12 sps:$4 sm:$0xff]   ;;  %v11653_v33 = vld [vmem:[%s16295_s3 + $0x133c] ss:$12 sps:$4 sm:$0xff]  }
 0x2f4   : > { %v10640_v48 = vpop.f32.mrb[23].mxu0  ;;  %6374 = vmatprep.subr.bf16.mxu0 %v11618_v26  ;;  %v11654_v26 = vld [vmem:[%s16295_s3 + $0xc80] ss:$12 sps:$4 sm:$0xff]   ;;  %v11651_v19 = vld [vmem:[%s16295_s3 + $0x1338] ss:$12 sps:$4 sm:$0xff]  }
 0x2f5   : > { %v11655_v5 = vld [vmem:[%s16295_s3 + $0xd58] ss:$12 sps:$4 sm:$0xff]   ;;  %v11658_v18 = vld [vmem:[%s16295_s3 + $0x1354] ss:$12 sps:$4 sm:$0xff]  }
 0x2f6   : > { %4227 = vmatpush1.bf16.msra.mxu1 %v11613_v21  ;;  %v14683_v48 = vld [vmem:[#allocation2 + $0x44] ss:$8 sm:$0x3] }
 0x2f7   : > { %6375 = vmatpush1.bf16.msra.mxu0 %v11616_v63  ;;  %4228 = vmatprep.subr.bf16.mxu1 %v11621_v38 }
 0x2f8   : > { %6376 = vmatprep.subr.bf16.mxu0 %v11624_v59  ;;  %v6016_v59 = vrot.slane %v14460_v16, %v12718_v30 }
 0x2fa   : > { %4229 = vmatpush1.bf16.msra.mxu1 %v11619_v37 }
 0x2fb   : > { %6377 = vmatpush1.bf16.msra.mxu0 %v11622_v36  ;;  %10642 = vmatprep.subr.bf16.mxu1 %v11625_v22  ;;  %v11659_v22 = vld [vmem:[%s16295_s3 + $0xc98] ss:$12 sps:$4 sm:$0xff]  }
 0x2fc   : > { %6378 = vmatprep.subr.bf16.mxu0 %v11628_v35 }
 0x2fd   : > { %4231 = vmatmul.mubr.bf16.vlgmr.msra.gmra.mrb[52].mxu1 %v13829_v39  ;;  %v11638_v39 = vld [vmem:[%s16295_s3 + $0x12f4] ss:$12 sps:$4 sm:$0xff]  }
 0x2fe   : > { %10643 = vmatpush3.bf16.msra.mxu1 %v11629_v23  ;;  %4709 = vmatprep.mubr.bf16.mxu1 %v13831_v17  ;;  %v11639_v17 = vld [vmem:[%s16295_s3 + $0xc38] ss:$12 sps:$4 sm:$0xff]   ;;  %v11660_v23 = vld [vmem:[%s16295_s3 + $0xd70] ss:$12 sps:$4 sm:$0xff]  }
 0x2ff   : > { %6379 = vmatpush1.bf16.msra.mxu0 %v11626_v51  ;;  %10644 = vmatprep.subr.bf16.mxu1 %v11630_v24  ;;  %v6458_v51 = vrot.slane %v14683_v48, %v12721_v31 }
 0x300   : > { %6380 = vmatprep.subr.bf16.mxu0 %v11633_v56  ;;  %v11664_v56 = vld [vmem:[%s16295_s3 + $0xcb0] ss:$12 sps:$4 sm:$0xff]  }
 0x302   : > { %10645 = vmatpush3.bf16.msra.mxu1 %v11634_v6  ;;  %v11661_v6 = vld [vmem:[%s16295_s3 + $0x1368] ss:$12 sps:$4 sm:$0xff]  }
 0x303   : > { %6381 = vmatpush1.bf16.msra.mxu0 %v11631_v49  ;;  %10646 = vmatprep.subr.bf16.mxu1 %v11635_v40  ;;  %v11667_v49 = vld [vmem:[%s16295_s3 + $0xd84] ss:$12 sps:$4 sm:$0xff]   ;;  %v6475_v40 = vsel %vm732_vm1, %v13121_v55, %v6458_v51  ;;  %v11673_v55 = vld [vmem:[%s16295_s3 + $0x1460] ss:$12 sps:$4 sm:$0xff]  }
 0x304   : > { %6382 = vmatprep.subr.bf16.mxu0 %v11638_v39  ;;  %v11665_v39 = vld [vmem:[%s16295_s3 + $0xd80] ss:$12 sps:$4 sm:$0xff]  }
 0x306   : > { %10647 = vmatpush3.bf16.msra.mxu1 %v11639_v17  ;;  %v11669_v17 = vld [vmem:[%s16295_s3 + $0x1388] ss:$12 sps:$4 sm:$0xff]  }
 0x307   : > { %6383 = vmatpush1.bf16.msra.mxu0 %v11636_v45  ;;  %10648 = vmatprep.subr.bf16.mxu1 %v11640_v42  ;;  %v6477_v45 = vsel %vm735_vm2, %v6475_v40, %v13226_v14  ;;  %v11670_v14 = vld [vmem:[%s16295_s3 + $0xd98] ss:$12 sps:$4 sm:$0xff]  }
 0x308   : > { %6384 = vmatprep.subr.bf16.mxu0 %v11643_v57  ;;  %v14744_v57 = vpack.c.bf16 %v6477_v45, %v6477_v45 }
 0x30a   : > { %10649 = vmatpush3.bf16.msra.mxu1 %v11644_v0  ;;  %v11677_v0 = vld [vmem:[%s16295_s3 + $0xdb4] ss:$12 sps:$4 sm:$0xff]  }
 0x30b   : > { %6385 = vmatpush1.bf16.msra.mxu0 %v11641_v61  ;;  %10650 = vmatprep.subr.bf16.mxu1 %v11645_v2  ;;  %v11678_v61 = vld [vmem:[%s16295_s3 + $0x1478] ss:$12 sps:$4 sm:$0xff]  }
 0x30c   : > { %6386 = vmatprep.subr.bf16.mxu0 %v11648_v4  ;;  %v11679_v2 = vld [vmem:[%s16295_s3 + $0x13b8] ss:$12 sps:$4 sm:$0xff]  }
 0x30d   : > { %v11682_v4 = vld [vmem:[%s16295_s3 + $0xdcc] ss:$12 sps:$4 sm:$0xff]  }
 0x30e   : > { %10651 = vmatpush3.bf16.msra.mxu1 %v11649_v8  ;;  %v11683_v8 = vld [vmem:[%s16295_s3 + $0x1490] ss:$12 sps:$4 sm:$0xff]  }
 0x30f   : > { %6387 = vmatpush1.bf16.msra.mxu0 %v11646_v13  ;;  %10652 = vmatprep.subr.bf16.mxu1 %v11650_v58  ;;  %v11680_v13 = vld [vmem:[%s16295_s3 + $0xdc8] ss:$12 sps:$4 sm:$0xff]   ;;  %v11684_v58 = vld [vmem:[%s16295_s3 + $0x13d0] ss:$12 sps:$4 sm:$0xff]  }
 0x310   : > { %v2428_v21 = vpop.f32.mrb[36].mxu1  ;;  %6388 = vmatprep.subr.bf16.mxu0 %v11653_v33  ;;  %v11687_v33 = vld [vmem:[%s16295_s3 + $0xde4] ss:$12 sps:$4 sm:$0xff]  }
 0x311   : > { %v2475_v63 = vadd.f32 %v2428_v21, %v14341_v54  ;;  %v2430_v38 = vpop.f32.mrb[37].mxu1  ;;  %v11656_v54 = vld [vmem:[%s16295_s3 + $0x1350] ss:$12 sps:$4 sm:$0xff]  }
 0x312   : > { %v2476_v37 = vadd.f32 %v2430_v38, %v14344_v11  ;;  %v2432_v36 = vpop.f32.mrb[38].mxu1  ;;  %10653 = vmatpush3.bf16.msra.mxu1 %v11654_v26  ;;  %v11663_v11 = vld [vmem:[%s16295_s3 + $0x136c] ss:$12 sps:$4 sm:$0xff]   ;;  %v11688_v26 = vld [vmem:[%s16295_s3 + $0x14a8] ss:$12 sps:$4 sm:$0xff]  }
 0x313   : > { %6389 = vmatpush1.bf16.msra.mxu0 %v11651_v19  ;;  %v2433_v35 = vpop.f32.mrb[39].mxu1  ;;  %10654 = vmatprep.subr.bf16.mxu1 %v11655_v5  ;;  %v14698_v16 = vadd.f32 %v14119_v34, %v2475_v63  ;;  %v6036_v34 = vsel %vm732_vm1, %v13116_v10, %v6016_v59  ;;  %v11685_v19 = vld [vmem:[%s16295_s3 + $0xde0] ss:$12 sps:$4 sm:$0xff]   ;;  %v11689_v5 = vld [vmem:[%s16295_s3 + $0x13e8] ss:$12 sps:$4 sm:$0xff]  }
 0x314   : > { %6390 = vmatprep.subr.bf16.mxu0 %v11658_v18  ;;  %v14706_v24 = vadd.f32 %v14131_v27, %v2476_v37  ;;  %v11668_v27 = vld [vmem:[%s16295_s3 + $0x1448] ss:$12 sps:$4 sm:$0xff]   ;;  %v6038_v10 = vsel %vm735_vm2, %v6036_v34, %v13111_v52  ;;  %v11693_v18 = vld [vmem:[%s16295_s3 + $0x14c0] ss:$12 sps:$4 sm:$0xff]   ;;  %v11690_v63 = vld [vmem:[%s16295_s3 + $0xdf8] ss:$12 sps:$4 sm:$0xff]  }
 0x315   : > { %v14734_v42 = vpack.c.bf16 %v6038_v10, %v6038_v10  ;;  %v11672_v52 = vld [vmem:[%s16295_s3 + $0xd9c] ss:$12 sps:$4 sm:$0xff]   ;;  %v11694_v38 = vld [vmem:[%s16295_s3 + $0x1400] ss:$12 sps:$4 sm:$0xff]   ;;  %v11698_v36 = vld [vmem:[%s16295_s3 + $0x14d8] ss:$12 sps:$4 sm:$0xff]  }
 0x316   : > { %10655 = vmatpush3.bf16.msra.mxu1 %v11659_v22  ;;  %v11692_v21 = vld [vmem:[%s16295_s3 + $0xdfc] ss:$12 sps:$4 sm:$0xff]   ;;  %v11697_v59 = vld [vmem:[%s16295_s3 + $0xe14] ss:$12 sps:$4 sm:$0xff]  }
 0x317   : > { %6391 = vmatpush1.bf16.msra.mxu0 %v11656_v54  ;;  %10656 = vmatprep.subr.bf16.mxu1 %v11660_v23  ;;  %v14810_v54 = vld [vmem:[#allocation2 + $0x47] ss:$8 sm:$0x3]  ;;  %v6454_v23 = vrot.slane %v14683_v48, %v12718_v30  ;;  %v11695_v34 = vld [vmem:[%s16295_s3 + $0xe10] ss:$12 sps:$4 sm:$0xff]  }
 0x318   : > { %6392 = vmatprep.subr.bf16.mxu0 %v11663_v11  ;;  %v11702_v48 = vld [vmem:[%s16295_s3 + $0xe2c] ss:$12 sps:$4 sm:$0xff]  }
 0x319   : > { %v6474_v45 = vsel %vm732_vm1, %v13126_v50, %v6454_v23  ;;  %v11710_v50 = vld [vmem:[%s16295_s3 + $0x1504] ss:$12 sps:$4 sm:$0xff]  }
 0x31a   : > { %10657 = vmatpush3.bf16.msra.mxu1 %v11664_v56  ;;  %v11735_v23 = vld [vmem:[%s16295_s3 + $0xeb8] ss:$12 sps:$4 sm:$0xff]  }
 0x31b   : > { %6393 = vmatpush1.bf16.msra.mxu0 %v11661_v6  ;;  %5074 = vmatprep.subr.bf16.mxu1 %v11667_v49 }
 0x31c   : > { %10752 = vmatprep.subr.bf16.mxu0 %v11668_v27  ;;  %v11699_v27 = vld [vmem:[%s16295_s3 + $0x1418] ss:$12 sps:$4 sm:$0xff]  }
 0x31d   : > { %4710 = vmatmul.mubr.bf16.vlgmr.msra.gmra.mrb[56].mxu1 %v14048_v29  ;;  %v11674_v29 = vld [vmem:[%s16295_s3 + $0x13a0] ss:$12 sps:$4 sm:$0xff]  }
 0x31e   : > { %6395 = vmatmul.mubr.bf16.vlgmr.msra.gmra.mrb[40].mxu0 %v14734_v42  ;;  %5075 = vmatpush1.bf16.msra.mxu1 %v11665_v39  ;;  %v11703_v39 = vld [vmem:[%s16295_s3 + $0x14f0] ss:$12 sps:$4 sm:$0xff]  }
 0x31f   : > { %5106 = vmatprep.mubr.bf16.mxu1 %v14052_v44  ;;  %10753 = vmatpush3.bf16.msra.mxu0 %v11669_v17  ;;  %v11675_v44 = vld [vmem:[%s16295_s3 + $0xdb0] ss:$12 sps:$4 sm:$0xff]   ;;  %v11700_v17 = vld [vmem:[%s16295_s3 + $0xe28] ss:$12 sps:$4 sm:$0xff]  }
 0x320   : > { %6873 = vmatprep.mubr.bf16.mxu0 %v14744_v57  ;;  %5076 = vmatprep.subr.bf16.mxu1 %v11672_v52  ;;  %v6894_v52 = vrot.slane %v14810_v54, %v12721_v31 }
 0x321   : > { %10754 = vmatprep.subr.bf16.mxu0 %v11673_v55 }
 0x322   : > { %5077 = vmatpush1.bf16.msra.mxu1 %v11670_v14  ;;  %v11707_v14 = vld [vmem:[%s16295_s3 + $0xe44] ss:$12 sps:$4 sm:$0xff]  }
 0x323   : > { %10755 = vmatpush3.bf16.msra.mxu0 %v11674_v29  ;;  %5078 = vmatprep.subr.bf16.mxu1 %v11677_v0  ;;  %v6476_v29 = vsel %vm735_vm2, %v6474_v45, %v13223_v3  ;;  %v6902_v0 = vsel %vm735_vm2, %v13146_v20, %v6894_v52  ;;  %v11713_v3 = vld [vmem:[%s16295_s3 + $0xe5c] ss:$12 sps:$4 sm:$0xff]   ;;  %v11711_v20 = vld [vmem:[%s16295_s3 + $0xe58] ss:$12 sps:$4 sm:$0xff]  }
 0x324   : > { %10756 = vmatprep.subr.bf16.mxu0 %v11678_v61  ;;  %v11708_v61 = vld [vmem:[%s16295_s3 + $0x1500] ss:$12 sps:$4 sm:$0xff]   ;;  %v11747_v52 = vld [vmem:[%s16295_s3 + $0xee8] ss:$12 sps:$4 sm:$0xff]  }
 0x325   : > { %v11752_v45 = vld [vmem:[%s16295_s3 + $0x15ac] ss:$12 sps:$4 sm:$0xff]  }
 0x326   : > { %5079 = vmatpush1.bf16.msra.mxu1 %v11675_v44  ;;  %v14858_v44 = vpack.c.bf16 %v6476_v29, %v6476_v29  ;;  %v11757_v29 = vld [vmem:[%s16295_s3 + $0xf08] ss:$12 sps:$4 sm:$0xff]  }
 0x327   : > { %10757 = vmatpush3.bf16.msra.mxu0 %v11679_v2  ;;  %5080 = vmatprep.subr.bf16.mxu1 %v11682_v4  ;;  %v11716_v2 = vld [vmem:[%s16295_s3 + $0x151c] ss:$12 sps:$4 sm:$0xff]   ;;  %v14866_v4 = vpack.c.bf16 %v6902_v0, %v6902_v0  ;;  %v11758_v0 = vld [vmem:[%s16295_s3 + $0xfe0] ss:$12 sps:$4 sm:$0xff]  }
 0x328   : > { %10758 = vmatprep.subr.bf16.mxu0 %v11683_v8  ;;  %v11714_v8 = vld [vmem:[%s16295_s3 + $0x1518] ss:$12 sps:$4 sm:$0xff]  }
 0x32a   : > { %5081 = vmatpush1.bf16.msra.mxu1 %v11680_v13  ;;  %v11719_v13 = vld [vmem:[%s16295_s3 + $0xe74] ss:$12 sps:$4 sm:$0xff]  }
 0x32b   : > { %10759 = vmatpush3.bf16.msra.mxu0 %v11684_v58  ;;  %5082 = vmatprep.subr.bf16.mxu1 %v11687_v33  ;;  %v11722_v58 = vld [vmem:[%s16295_s3 + $0x1534] ss:$12 sps:$4 sm:$0xff]   ;;  %v11717_v33 = vld [vmem:[%s16295_s3 + $0xe70] ss:$12 sps:$4 sm:$0xff]  }
 0x32c   : > { %10760 = vmatprep.subr.bf16.mxu0 %v11688_v26  ;;  %v11720_v26 = vld [vmem:[%s16295_s3 + $0x1530] ss:$12 sps:$4 sm:$0xff]  }
 0x32e   : > { %5083 = vmatpush1.bf16.msra.mxu1 %v11685_v19  ;;  %v11725_v19 = vld [vmem:[%s16295_s3 + $0xe8c] ss:$12 sps:$4 sm:$0xff]  }
 0x32f   : > { %10761 = vmatpush3.bf16.msra.mxu0 %v11689_v5  ;;  %5084 = vmatprep.subr.bf16.mxu1 %v11692_v21  ;;  %v11728_v5 = vld [vmem:[%s16295_s3 + $0x154c] ss:$12 sps:$4 sm:$0xff]   ;;  %v11723_v21 = vld [vmem:[%s16295_s3 + $0xe88] ss:$12 sps:$4 sm:$0xff]  }
 0x330   : > { %v10570_v37 = vpop.f32.mrb[40].mxu1  ;;  %10762 = vmatprep.subr.bf16.mxu0 %v11693_v18  ;;  %v11726_v18 = vld [vmem:[%s16295_s3 + $0x1548] ss:$12 sps:$4 sm:$0xff]  }
 0x331   : > { %v14808_v22 = vpop.f32.mrb[24].mxu0  ;;  %v10571_v35 = vpop.f32.mrb[41].mxu1 }
 0x332   : > { %v10572_v11 = vadd.f32 %v10571_v35, %v10570_v37  ;;  %v14814_v51 = vpop.f32.mrb[25].mxu0  ;;  %v10573_v56 = vpop.f32.mrb[42].mxu1  ;;  %5085 = vmatpush1.bf16.msra.mxu1 %v11690_v63  ;;  %v11731_v63 = vld [vmem:[%s16295_s3 + $0xea4] ss:$12 sps:$4 sm:$0xff]   ;;  %v11732_v37 = vld [vmem:[%s16295_s3 + $0x1560] ss:$12 sps:$4 sm:$0xff]  }
 0x333   : > { %v4674_v6 = vpop.f32.mrb[26].mxu0  ;;  %10763 = vmatpush3.bf16.msra.mxu0 %v11694_v38  ;;  %v10574_v49 = vpop.f32.mrb[43].mxu1  ;;  %5086 = vmatprep.subr.bf16.mxu1 %v11697_v59  ;;  %v11734_v38 = vld [vmem:[%s16295_s3 + $0x1564] ss:$12 sps:$4 sm:$0xff]   ;;  %v11729_v59 = vld [vmem:[%s16295_s3 + $0xea0] ss:$12 sps:$4 sm:$0xff]  }
 0x334   : > { %v2941_v40 = vadd.f32 %v10572_v11, %v14487_v46  ;;  %v4675_v10 = vpop.f32.mrb[27].mxu0  ;;  %10764 = vmatprep.subr.bf16.mxu0 %v11698_v36  ;;  %v11704_v46 = vld [vmem:[%s16295_s3 + $0x1430] ss:$12 sps:$4 sm:$0xff]   ;;  %v11738_v11 = vld [vmem:[%s16295_s3 + $0x1578] ss:$12 sps:$4 sm:$0xff]  }
 0x335   : > { %v11737_v36 = vld [vmem:[%s16295_s3 + $0xebc] ss:$12 sps:$4 sm:$0xff]   ;;  %v11743_v56 = vld [vmem:[%s16295_s3 + $0xed4] ss:$12 sps:$4 sm:$0xff]  }
 0x336   : > { %5087 = vmatpush1.bf16.msra.mxu1 %v11695_v34  ;;  %v14837_v55 = vadd.f32 %v14243_v47, %v2941_v40  ;;  %v11705_v47 = vld [vmem:[%s16295_s3 + $0xe40] ss:$12 sps:$4 sm:$0xff]   ;;  %v11740_v35 = vld [vmem:[%s16295_s3 + $0x157c] ss:$12 sps:$4 sm:$0xff]  }
 0x337   : > { %10765 = vmatpush3.bf16.msra.mxu0 %v11699_v27  ;;  %5088 = vmatprep.subr.bf16.mxu1 %v11702_v48  ;;  %v11746_v34 = vld [vmem:[%s16295_s3 + $0x1594] ss:$12 sps:$4 sm:$0xff]   ;;  %v11741_v27 = vld [vmem:[%s16295_s3 + $0xed0] ss:$12 sps:$4 sm:$0xff]  }
 0x338   : > { %10766 = vmatprep.subr.bf16.mxu0 %v11703_v39  ;;  %v11744_v10 = vld [vmem:[%s16295_s3 + $0x1590] ss:$12 sps:$4 sm:$0xff]   ;;  %v11749_v39 = vld [vmem:[%s16295_s3 + $0xeec] ss:$12 sps:$4 sm:$0xff]  }
 0x33a   : > { %5089 = vmatpush1.bf16.msra.mxu1 %v11700_v17 }
 0x33b   : > { %10767 = vmatpush3.bf16.msra.mxu0 %v11704_v46  ;;  %5090 = vmatprep.subr.bf16.mxu1 %v11707_v14  ;;  %v11750_v46 = vld [vmem:[%s16295_s3 + $0x15a8] ss:$12 sps:$4 sm:$0xff]  }
 0x33c   : > { %7225 = vmatprep.subr.bf16.mxu0 %v11710_v50  ;;  %v11753_v14 = vld [vmem:[%s16295_s3 + $0xfc8] ss:$12 sps:$4 sm:$0xff]   ;;  %v11756_v50 = vld [vmem:[%s16295_s3 + $0x15c4] ss:$12 sps:$4 sm:$0xff]  }
 0x33e   : > { %6874 = vmatmul.mubr.bf16.vlgmr.msra.gmra.mrb[44].mxu0 %v14858_v44  ;;  %5091 = vmatpush1.bf16.msra.mxu1 %v11705_v47  ;;  %v11754_v47 = vld [vmem:[%s16295_s3 + $0x15c0] ss:$12 sps:$4 sm:$0xff]  }
 0x33f   : > { %7226 = vmatpush1.bf16.msra.mxu0 %v11708_v61  ;;  %7257 = vmatprep.mubr.bf16.mxu0 %v14866_v4  ;;  %v11761_v61 = vld [vmem:[%s16295_s3 + $0x15dc] ss:$12 sps:$4 sm:$0xff]  }
 0x340   : > { %5092 = vmatprep.subr.bf16.mxu1 %v11713_v3  ;;  %7227 = vmatprep.subr.bf16.mxu0 %v11716_v2  ;;  %v11762_v3 = vld [vmem:[%s16295_s3 + $0xf20] ss:$12 sps:$4 sm:$0xff]   ;;  %v11759_v2 = vld [vmem:[%s16295_s3 + $0x15d8] ss:$12 sps:$4 sm:$0xff]  }
 0x342   : > { %5093 = vmatpush1.bf16.msra.mxu1 %v11711_v20  ;;  %v11763_v20 = vld [vmem:[%s16295_s3 + $0xff8] ss:$12 sps:$4 sm:$0xff]  }
 0x343   : > { %7228 = vmatpush1.bf16.msra.mxu0 %v11714_v8  ;;  %5094 = vmatprep.subr.bf16.mxu1 %v11719_v13  ;;  %v11764_v8 = vld [vmem:[%s16295_s3 + $0x15f0] ss:$12 sps:$4 sm:$0xff]  }
 0x344   : > { %7229 = vmatprep.subr.bf16.mxu0 %v11722_v58  ;;  %v11768_v13 = vld [vmem:[%s16295_s3 + $0x1010] ss:$12 sps:$4 sm:$0xff]   ;;  %v11771_v58 = vld [vmem:[%s16295_s3 + $0x160c] ss:$12 sps:$4 sm:$0xff]  }
 0x346   : > { %5095 = vmatpush1.bf16.msra.mxu1 %v11717_v33  ;;  %v11772_v33 = vld [vmem:[%s16295_s3 + $0xf50] ss:$12 sps:$4 sm:$0xff]  }
 0x347   : > { %7230 = vmatpush1.bf16.msra.mxu0 %v11720_v26  ;;  %5096 = vmatprep.subr.bf16.mxu1 %v11725_v19  ;;  %v11769_v26 = vld [vmem:[%s16295_s3 + $0x1608] ss:$12 sps:$4 sm:$0xff]  }
 0x348   : > { %7231 = vmatprep.subr.bf16.mxu0 %v11728_v5  ;;  %v11773_v19 = vld [vmem:[%s16295_s3 + $0x1028] ss:$12 sps:$4 sm:$0xff]   ;;  %v11776_v5 = vld [vmem:[%s16295_s3 + $0x1624] ss:$12 sps:$4 sm:$0xff]  }
 0x34a   : > { %5097 = vmatpush1.bf16.msra.mxu1 %v11723_v21  ;;  %v11777_v21 = vld [vmem:[%s16295_s3 + $0xf68] ss:$12 sps:$4 sm:$0xff]  }
 0x34b   : > { %7232 = vmatpush1.bf16.msra.mxu0 %v11726_v18  ;;  %5098 = vmatprep.subr.bf16.mxu1 %v11731_v63  ;;  %v11774_v18 = vld [vmem:[%s16295_s3 + $0x1620] ss:$12 sps:$4 sm:$0xff]  }
 0x34c   : > { %7233 = vmatprep.subr.bf16.mxu0 %v11734_v38  ;;  %v11778_v63 = vld [vmem:[%s16295_s3 + $0x1040] ss:$12 sps:$4 sm:$0xff]   ;;  %v11781_v38 = vld [vmem:[%s16295_s3 + $0x163c] ss:$12 sps:$4 sm:$0xff]  }
 0x34e   : > { %5099 = vmatpush1.bf16.msra.mxu1 %v11729_v59  ;;  %v11782_v59 = vld [vmem:[%s16295_s3 + $0xf80] ss:$12 sps:$4 sm:$0xff]  }
 0x34f   : > { %7234 = vmatpush1.bf16.msra.mxu0 %v11732_v37  ;;  %5100 = vmatprep.subr.bf16.mxu1 %v11737_v36  ;;  %v11779_v37 = vld [vmem:[%s16295_s3 + $0x1638] ss:$12 sps:$4 sm:$0xff]  }
 0x350   : > { %7235 = vmatprep.subr.bf16.mxu0 %v11740_v35  ;;  %v11783_v36 = vld [vmem:[%s16295_s3 + $0x1058] ss:$12 sps:$4 sm:$0xff]  }
 0x351   : > { %v10680_v6 = vpop.f32.mrb[28].mxu0 }
 0x352   : > { %v10681_v49 = vpop.f32.mrb[29].mxu0  ;;  %5101 = vmatpush1.bf16.msra.mxu1 %v11735_v23  ;;  %v11786_v23 = vld [vmem:[%s16295_s3 + $0x1654] ss:$12 sps:$4 sm:$0xff]  }
 0x353   : > { %v14933_v48 = vadd.f32 %v10681_v49, %v10680_v6  ;;  %v10683_v40 = vpop.f32.mrb[30].mxu0  ;;  %7236 = vmatpush1.bf16.msra.mxu0 %v11738_v11  ;;  %5102 = vmatprep.subr.bf16.mxu1 %v11743_v56  ;;  %v11787_v49 = vld [vmem:[%s16295_s3 + $0xf98] ss:$12 sps:$4 sm:$0xff]  }
 0x354   : > { %v10684_v17 = vpop.f32.mrb[31].mxu0  ;;  %7237 = vmatprep.subr.bf16.mxu0 %v11746_v34  ;;  %v11784_v40 = vld [vmem:[%s16295_s3 + $0x1650] ss:$12 sps:$4 sm:$0xff]  }
 0x356   : > { %5103 = vmatpush1.bf16.msra.mxu1 %v11741_v27 }
 0x357   : > { %7238 = vmatpush1.bf16.msra.mxu0 %v11744_v10  ;;  %5104 = vmatprep.subr.bf16.mxu1 %v11749_v39  ;;  %v15047_v39 = vld [vmem:[#allocation2 + $0x50] ss:$8 sm:$0x3] }
 0x358   : > { %7239 = vmatprep.subr.bf16.mxu0 %v11752_v45  ;;  %v6890_v45 = vrot.slane %v14810_v54, %v12718_v30  ;;  %v11796_v54 = vld [vmem:[%s16295_s3 + $0x1748] ss:$12 sps:$4 sm:$0xff]  }
 0x35a   : > { %5105 = vmatpush1.bf16.msra.mxu1 %v11747_v52  ;;  %v11792_v52 = vld [vmem:[%s16295_s3 + $0xfb0] ss:$12 sps:$4 sm:$0xff]  }
 0x35b   : > { %7240 = vmatpush1.bf16.msra.mxu0 %v11750_v46  ;;  %10686 = vmatprep.subr.bf16.mxu1 %v11753_v14  ;;  %v11795_v46 = vld [vmem:[%s16295_s3 + $0x1084] ss:$12 sps:$4 sm:$0xff]   ;;  %v6901_v14 = vsel %vm735_vm2, %v13163_v1, %v6890_v45  ;;  %v11800_v1 = vld [vmem:[%s16295_s3 + $0x109c] ss:$12 sps:$4 sm:$0xff]  }
 0x35c   : > { %7241 = vmatprep.subr.bf16.mxu0 %v11756_v50  ;;  %v11793_v50 = vld [vmem:[%s16295_s3 + $0x1080] ss:$12 sps:$4 sm:$0xff]  }
 0x35d   : > { %5107 = vmatmul.mubr.bf16.vlgmr.msra.gmra.mrb[60].mxu1 %v14174_v7  ;;  %v11766_v7 = vld [vmem:[%s16295_s3 + $0x15f4] ss:$12 sps:$4 sm:$0xff]  }
 0x35e   : > { %10687 = vmatpush3.bf16.msra.mxu1 %v11757_v29  ;;  %5572 = vmatprep.mubr.bf16.mxu1 %v14176_v60  ;;  %v11767_v60 = vld [vmem:[%s16295_s3 + $0xf38] ss:$12 sps:$4 sm:$0xff]   ;;  %v11797_v29 = vld [vmem:[%s16295_s3 + $0x1688] ss:$12 sps:$4 sm:$0xff]  }
 0x35f   : > { %7242 = vmatpush1.bf16.msra.mxu0 %v11754_v47  ;;  %10688 = vmatprep.subr.bf16.mxu1 %v11758_v0  ;;  %v15078_v0 = vpack.c.bf16 %v6901_v14, %v6901_v14  ;;  %v11838_v14 = vld [vmem:[%s16295_s3 + $0x115c] ss:$12 sps:$4 sm:$0xff]  }
 0x360   : > { %7243 = vmatprep.subr.bf16.mxu0 %v11761_v61  ;;  %v11801_v61 = vld [vmem:[%s16295_s3 + $0x1760] ss:$12 sps:$4 sm:$0xff]  }
 0x362   : > { %10689 = vmatpush3.bf16.msra.mxu1 %v11762_v3 }
 0x363   : > { %7244 = vmatpush1.bf16.msra.mxu0 %v11759_v2  ;;  %10690 = vmatprep.subr.bf16.mxu1 %v11763_v20  ;;  %v11805_v2 = vld [vmem:[%s16295_s3 + $0x10b4] ss:$12 sps:$4 sm:$0xff]   ;;  %v11806_v20 = vld [vmem:[%s16295_s3 + $0x1778] ss:$12 sps:$4 sm:$0xff]  }
 0x364   : > { %7245 = vmatprep.subr.bf16.mxu0 %v11766_v7  ;;  %v11807_v7 = vld [vmem:[%s16295_s3 + $0x16b8] ss:$12 sps:$4 sm:$0xff]  }
 0x366   : > { %10691 = vmatpush3.bf16.msra.mxu1 %v11767_v60  ;;  %v11810_v60 = vld [vmem:[%s16295_s3 + $0x10cc] ss:$12 sps:$4 sm:$0xff]  }
 0x367   : > { %7246 = vmatpush1.bf16.msra.mxu0 %v11764_v8  ;;  %10692 = vmatprep.subr.bf16.mxu1 %v11768_v13  ;;  %v11811_v8 = vld [vmem:[%s16295_s3 + $0x1790] ss:$12 sps:$4 sm:$0xff]   ;;  %v11808_v13 = vld [vmem:[%s16295_s3 + $0x10c8] ss:$12 sps:$4 sm:$0xff]  }
 0x368   : > { %7247 = vmatprep.subr.bf16.mxu0 %v11771_v58  ;;  %v11812_v58 = vld [vmem:[%s16295_s3 + $0x16d0] ss:$12 sps:$4 sm:$0xff]  }
 0x36a   : > { %10693 = vmatpush3.bf16.msra.mxu1 %v11772_v33  ;;  %v11815_v33 = vld [vmem:[%s16295_s3 + $0x10e4] ss:$12 sps:$4 sm:$0xff]  }
 0x36b   : > { %7248 = vmatpush1.bf16.msra.mxu0 %v11769_v26  ;;  %10694 = vmatprep.subr.bf16.mxu1 %v11773_v19  ;;  %v11816_v26 = vld [vmem:[%s16295_s3 + $0x17a8] ss:$12 sps:$4 sm:$0xff]   ;;  %v11813_v19 = vld [vmem:[%s16295_s3 + $0x10e0] ss:$12 sps:$4 sm:$0xff]  }
 0x36c   : > { %7249 = vmatprep.subr.bf16.mxu0 %v11776_v5  ;;  %v11817_v5 = vld [vmem:[%s16295_s3 + $0x16e8] ss:$12 sps:$4 sm:$0xff]  }
 0x36e   : > { %10695 = vmatpush3.bf16.msra.mxu1 %v11777_v21  ;;  %v11820_v21 = vld [vmem:[%s16295_s3 + $0x10fc] ss:$12 sps:$4 sm:$0xff]  }
 0x36f   : > { %7250 = vmatpush1.bf16.msra.mxu0 %v11774_v18  ;;  %10696 = vmatprep.subr.bf16.mxu1 %v11778_v63  ;;  %v11821_v18 = vld [vmem:[%s16295_s3 + $0x17c0] ss:$12 sps:$4 sm:$0xff]   ;;  %v11818_v63 = vld [vmem:[%s16295_s3 + $0x10f8] ss:$12 sps:$4 sm:$0xff]  }
 0x370   : > { %v3356_v35 = vpop.f32.mrb[44].mxu1  ;;  %7251 = vmatprep.subr.bf16.mxu0 %v11781_v38  ;;  %v11822_v38 = vld [vmem:[%s16295_s3 + $0x1700] ss:$12 sps:$4 sm:$0xff]  }
 0x371   : > { %v3403_v11 = vadd.f32 %v3356_v35, %v14698_v16  ;;  %v3358_v56 = vpop.f32.mrb[45].mxu1  ;;  %v11788_v16 = vld [vmem:[%s16295_s3 + $0x1070] ss:$12 sps:$4 sm:$0xff]  }
 0x372   : > { %v3404_v34 = vadd.f32 %v3358_v56, %v14706_v24  ;;  %v3360_v6 = vpop.f32.mrb[46].mxu1  ;;  %10697 = vmatpush3.bf16.msra.mxu1 %v11782_v59  ;;  %v11791_v24 = vld [vmem:[%s16295_s3 + $0x166c] ss:$12 sps:$4 sm:$0xff]   ;;  %v11825_v59 = vld [vmem:[%s16295_s3 + $0x1114] ss:$12 sps:$4 sm:$0xff]  }
 0x373   : > { %7252 = vmatpush1.bf16.msra.mxu0 %v11779_v37  ;;  %v3361_v27 = vpop.f32.mrb[47].mxu1  ;;  %10698 = vmatprep.subr.bf16.mxu1 %v11783_v36  ;;  %v15042_v10 = vadd.f32 %v14462_v15, %v3403_v11  ;;  %v11789_v15 = vld [vmem:[%s16295_s3 + $0x1668] ss:$12 sps:$4 sm:$0xff]   ;;  %v11826_v36 = vld [vmem:[%s16295_s3 + $0x17d8] ss:$12 sps:$4 sm:$0xff]  }
 0x374   : > { %7253 = vmatprep.subr.bf16.mxu0 %v11786_v23  ;;  %v15050_v17 = vadd.f32 %v14464_v9, %v3404_v34  ;;  %v7319_v9 = vrot.slane %v15047_v39, %v12721_v31  ;;  %v11823_v6 = vld [vmem:[%s16295_s3 + $0x1110] ss:$12 sps:$4 sm:$0xff]  }
 0x376   : > { %10699 = vmatpush3.bf16.msra.mxu1 %v11787_v49  ;;  %v7327_v47 = vsel %vm735_vm2, %v13236_v53, %v7319_v9  ;;  %v11798_v53 = vld [vmem:[%s16295_s3 + $0x1098] ss:$12 sps:$4 sm:$0xff]  }
 0x377   : > { %7254 = vmatpush1.bf16.msra.mxu0 %v11784_v40  ;;  %10700 = vmatprep.subr.bf16.mxu1 %v11788_v16  ;;  %v15088_v3 = vpack.c.bf16 %v7327_v47, %v7327_v47  ;;  %v11827_v40 = vld [vmem:[%s16295_s3 + $0x1718] ss:$12 sps:$4 sm:$0xff]   ;;  %v11839_v47 = vld [vmem:[%s16295_s3 + $0x1170] ss:$12 sps:$4 sm:$0xff]  }
 0x378   : > { %7255 = vmatprep.subr.bf16.mxu0 %v11791_v24  ;;  %v11830_v16 = vld [vmem:[%s16295_s3 + $0x112c] ss:$12 sps:$4 sm:$0xff]  }
 0x37a   : > { %10701 = vmatpush3.bf16.msra.mxu1 %v11792_v52  ;;  %v11831_v52 = vld [vmem:[%s16295_s3 + $0x17f0] ss:$12 sps:$4 sm:$0xff]  }
 0x37b   : > { %7256 = vmatpush1.bf16.msra.mxu0 %v11789_v15  ;;  %5924 = vmatprep.subr.bf16.mxu1 %v11795_v46  ;;  %v7315_v15 = vrot.slane %v15047_v39, %v12718_v30  ;;  %v11828_v46 = vld [vmem:[%s16295_s3 + $0x1128] ss:$12 sps:$4 sm:$0xff]  }
 0x37c   : > { %10796 = vmatprep.subr.bf16.mxu0 %v11796_v54  ;;  %v11835_v54 = vld [vmem:[%s16295_s3 + $0x1144] ss:$12 sps:$4 sm:$0xff]  }
 0x37d   : > { %5573 = vmatmul.mubr.bf16.vlgmr.msra.gmra.mrb[64].mxu1 %v14386_v12  ;;  %v11802_v12 = vld [vmem:[%s16295_s3 + $0x16a0] ss:$12 sps:$4 sm:$0xff]   ;;  %v7326_v39 = vsel %vm735_vm2, %v13240_v25, %v7315_v15  ;;  %v11836_v25 = vld [vmem:[%s16295_s3 + $0x1158] ss:$12 sps:$4 sm:$0xff]  }
 0x37e   : > { %7258 = vmatmul.mubr.bf16.vlgmr.msra.gmra.mrb[48].mxu0 %v15078_v0  ;;  %5925 = vmatpush1.bf16.msra.mxu1 %v11793_v50  ;;  %v15191_v50 = vpack.c.bf16 %v7326_v39, %v7326_v39  ;;  %v11879_v39 = vld [vmem:[%s16295_s3 + $0x13b0] ss:$12 sps:$4 sm:$0xff]  }
 0x37f   : > { %5956 = vmatprep.mubr.bf16.mxu1 %v14396_v41  ;;  %10797 = vmatpush3.bf16.msra.mxu0 %v11797_v29  ;;  %v11803_v41 = vld [vmem:[%s16295_s3 + $0x10b0] ss:$12 sps:$4 sm:$0xff]   ;;  %v11841_v29 = vld [vmem:[%s16295_s3 + $0x1174] ss:$12 sps:$4 sm:$0xff]  }
 0x380   : > { %7723 = vmatprep.mubr.bf16.mxu0 %v15088_v3  ;;  %5926 = vmatprep.subr.bf16.mxu1 %v11800_v1  ;;  %v11844_v1 = vld [vmem:[%s16295_s3 + $0x118c] ss:$12 sps:$4 sm:$0xff]  }
 0x381   : > { %10798 = vmatprep.subr.bf16.mxu0 %v11801_v61  ;;  %v11842_v61 = vld [vmem:[%s16295_s3 + $0x1188] ss:$12 sps:$4 sm:$0xff]  }
 0x382   : > { %5927 = vmatpush1.bf16.msra.mxu1 %v11798_v53  ;;  %v11847_v53 = vld [vmem:[%s16295_s3 + $0x11a4] ss:$12 sps:$4 sm:$0xff]  }
 0x383   : > { %10799 = vmatpush3.bf16.msra.mxu0 %v11802_v12  ;;  %5928 = vmatprep.subr.bf16.mxu1 %v11805_v2  ;;  %v11845_v12 = vld [vmem:[%s16295_s3 + $0x11a0] ss:$12 sps:$4 sm:$0xff]   ;;  %v11850_v2 = vld [vmem:[%s16295_s3 + $0x11bc] ss:$12 sps:$4 sm:$0xff]  }
 0x384   : > { %10800 = vmatprep.subr.bf16.mxu0 %v11806_v20  ;;  %v11848_v20 = vld [vmem:[%s16295_s3 + $0x11b8] ss:$12 sps:$4 sm:$0xff]  }
 0x386   : > { %5929 = vmatpush1.bf16.msra.mxu1 %v11803_v41  ;;  %v11853_v41 = vld [vmem:[%s16295_s3 + $0x11d4] ss:$12 sps:$4 sm:$0xff]  }
 0x387   : > { %10801 = vmatpush3.bf16.msra.mxu0 %v11807_v7  ;;  %5930 = vmatprep.subr.bf16.mxu1 %v11810_v60 }
 0x388   : > { %10802 = vmatprep.subr.bf16.mxu0 %v11811_v8  ;;  %v11851_v8 = vld [vmem:[%s16295_s3 + $0x11d0] ss:$12 sps:$4 sm:$0xff]  }
 0x38a   : > { %5931 = vmatpush1.bf16.msra.mxu1 %v11808_v13 }
 0x38b   : > { %10803 = vmatpush3.bf16.msra.mxu0 %v11812_v58  ;;  %5932 = vmatprep.subr.bf16.mxu1 %v11815_v33  ;;  %v11856_v33 = vld [vmem:[%s16295_s3 + $0x11ec] ss:$12 sps:$4 sm:$0xff]  }
 0x38c   : > { %10804 = vmatprep.subr.bf16.mxu0 %v11816_v26 }
 0x38e   : > { %5933 = vmatpush1.bf16.msra.mxu1 %v11813_v19  ;;  %v11854_v19 = vld [vmem:[%s16295_s3 + $0x11e8] ss:$12 sps:$4 sm:$0xff]  }
 0x38f   : > { %10805 = vmatpush3.bf16.msra.mxu0 %v11817_v5  ;;  %5934 = vmatprep.subr.bf16.mxu1 %v11820_v21  ;;  %v11857_v5 = vld [vmem:[%s16295_s3 + $0x12c8] ss:$12 sps:$4 sm:$0xff]  }
 0x390   : > { %v10614_v37 = vpop.f32.mrb[48].mxu1  ;;  %10806 = vmatprep.subr.bf16.mxu0 %v11821_v18  ;;  %v11858_v21 = vld [vmem:[%s16295_s3 + $0x1208] ss:$12 sps:$4 sm:$0xff]   ;;  %v11859_v18 = vld [vmem:[%s16295_s3 + $0x12e0] ss:$12 sps:$4 sm:$0xff]  }
 0x391   : > { %v15152_v35 = vpop.f32.mrb[32].mxu0  ;;  %v10615_v23 = vpop.f32.mrb[49].mxu1 }
 0x392   : > { %v10616_v11 = vadd.f32 %v10615_v23, %v10614_v37  ;;  %v15154_v56 = vpop.f32.mrb[33].mxu0  ;;  %v10617_v34 = vpop.f32.mrb[50].mxu1  ;;  %5935 = vmatpush1.bf16.msra.mxu1 %v11818_v63  ;;  %v11860_v63 = vld [vmem:[%s16295_s3 + $0x1220] ss:$12 sps:$4 sm:$0xff]   ;;  %v11865_v37 = vld [vmem:[%s16295_s3 + $0x1328] ss:$12 sps:$4 sm:$0xff]  }
 0x393   : > { %v5537_v49 = vpop.f32.mrb[34].mxu0  ;;  %10807 = vmatpush3.bf16.msra.mxu0 %v11822_v38  ;;  %v10618_v27 = vpop.f32.mrb[51].mxu1  ;;  %5936 = vmatprep.subr.bf16.mxu1 %v11825_v59  ;;  %v11861_v38 = vld [vmem:[%s16295_s3 + $0x12f8] ss:$12 sps:$4 sm:$0xff]   ;;  %v11867_v23 = vld [vmem:[%s16295_s3 + $0x1340] ss:$12 sps:$4 sm:$0xff]  }
 0x394   : > { %v3843_v24 = vadd.f32 %v10616_v11, %v14837_v55  ;;  %v5538_v45 = vpop.f32.mrb[35].mxu0  ;;  %10808 = vmatprep.subr.bf16.mxu0 %v11826_v36  ;;  %v11832_v55 = vld [vmem:[%s16295_s3 + $0x1730] ss:$12 sps:$4 sm:$0xff]   ;;  %v11862_v59 = vld [vmem:[%s16295_s3 + $0x1238] ss:$12 sps:$4 sm:$0xff]  }
 0x395   : > { %v11866_v36 = vld [vmem:[%s16295_s3 + $0x1268] ss:$12 sps:$4 sm:$0xff]   ;;  %v11868_v11 = vld [vmem:[%s16295_s3 + $0x1280] ss:$12 sps:$4 sm:$0xff]   ;;  %v11869_v34 = vld [vmem:[%s16295_s3 + $0x1358] ss:$12 sps:$4 sm:$0xff]  }
 0x396   : > { %5937 = vmatpush1.bf16.msra.mxu1 %v11823_v6  ;;  %v15175_v9 = vadd.f32 %v14585_v32, %v3843_v24  ;;  %v11833_v32 = vld [vmem:[%s16295_s3 + $0x1140] ss:$12 sps:$4 sm:$0xff]   ;;  %v11870_v24 = vld [vmem:[%s16295_s3 + $0x1298] ss:$12 sps:$4 sm:$0xff]  }
 0x397   : > { %10809 = vmatpush3.bf16.msra.mxu0 %v11827_v40  ;;  %5938 = vmatprep.subr.bf16.mxu1 %v11830_v16 }
 0x398   : > { %10810 = vmatprep.subr.bf16.mxu0 %v11831_v52  ;;  %v11871_v52 = vld [vmem:[%s16295_s3 + $0x1370] ss:$12 sps:$4 sm:$0xff]  }
 0x39a   : > { %5939 = vmatpush1.bf16.msra.mxu1 %v11828_v46  ;;  %v11875_v46 = vld [vmem:[%s16295_s3 + $0x1384] ss:$12 sps:$4 sm:$0xff]  }
 0x39b   : > { %10811 = vmatpush3.bf16.msra.mxu0 %v11832_v55  ;;  %5940 = vmatprep.subr.bf16.mxu1 %v11835_v54  ;;  %v11873_v55 = vld [vmem:[%s16295_s3 + $0x1380] ss:$12 sps:$4 sm:$0xff]  }
 0x39c   : > { %v11881_v54 = vld [vmem:[%s16295_s3 + $0x13b4] ss:$12 sps:$4 sm:$0xff]  }
 0x39e   : > { %7724 = vmatmul.mubr.bf16.vlgmr.msra.gmra.mrb[52].mxu0 %v15191_v50  ;;  %5941 = vmatpush1.bf16.msra.mxu1 %v11833_v32  ;;  %v11887_v32 = vld [vmem:[%s16295_s3 + $0x13e4] ss:$12 sps:$4 sm:$0xff]  }
 0x39f   : > { %5942 = vmatprep.subr.bf16.mxu1 %v11838_v14  ;;  %v11885_v14 = vld [vmem:[%s16295_s3 + $0x13e0] ss:$12 sps:$4 sm:$0xff]  }
 0x3a2   : > { %5943 = vmatpush1.bf16.msra.mxu1 %v11836_v25  ;;  %v11890_v25 = vld [vmem:[%s16295_s3 + $0x13fc] ss:$12 sps:$4 sm:$0xff]  }
 0x3a3   : > { %5944 = vmatprep.subr.bf16.mxu1 %v11841_v29  ;;  %v11888_v29 = vld [vmem:[%s16295_s3 + $0x13f8] ss:$12 sps:$4 sm:$0xff]  }
 0x3a6   : > { %5945 = vmatpush1.bf16.msra.mxu1 %v11839_v47  ;;  %v11893_v47 = vld [vmem:[%s16295_s3 + $0x1414] ss:$12 sps:$4 sm:$0xff]  }
 0x3a7   : > { %5946 = vmatprep.subr.bf16.mxu1 %v11844_v1 }
 0x3aa   : > { %5947 = vmatpush1.bf16.msra.mxu1 %v11842_v61 }
 0x3ab   : > { %5948 = vmatprep.subr.bf16.mxu1 %v11847_v53 }
 0x3ae   : > { %5949 = vmatpush1.bf16.msra.mxu1 %v11845_v12 }
 0x3af   : > { %5950 = vmatprep.subr.bf16.mxu1 %v11850_v2 }
 0x3b1   : > { %v10724_v7 = vpop.f32.mrb[36].mxu0 }
 0x3b2   : > { %v10725_v60 = vpop.f32.mrb[37].mxu0  ;;  %5951 = vmatpush1.bf16.msra.mxu1 %v11848_v20 }
 0x3b3   : > { %v15227_v13 = vadd.f32 %v10725_v60, %v10724_v7  ;;  %v10727_v58 = vpop.f32.mrb[38].mxu0  ;;  %5952 = vmatprep.subr.bf16.mxu1 %v11853_v41  ;;  %v11891_v41 = vld [vmem:[%s16295_s3 + $0x1410] ss:$12 sps:$4 sm:$0xff]  }
 0x3b4   : > { %v10728_v26 = vpop.f32.mrb[39].mxu0 }
 0x3b5   : > { %v11894_v26 = vld [vmem:[%s16295_s3 + $0x1428] ss:$12 sps:$4 sm:$0xff]  }
 0x3b6   : > { %5953 = vmatpush1.bf16.msra.mxu1 %v11851_v8  ;;  %v11896_v8 = vld [vmem:[%s16295_s3 + $0x142c] ss:$12 sps:$4 sm:$0xff]  }
 0x3b7   : > { %5954 = vmatprep.subr.bf16.mxu1 %v11856_v33 }
 0x3ba   : > { %5955 = vmatpush1.bf16.msra.mxu1 %v11854_v19 }
 0x3bb   : > { %10730 = vmatprep.subr.bf16.mxu1 %v11857_v5  ;;  %v11899_v5 = vld [vmem:[%s16295_s3 + $0x1444] ss:$12 sps:$4 sm:$0xff]  }
 0x3bd   : > { %5957 = vmatmul.mubr.bf16.vlgmr.msra.gmra.mrb[68].mxu1 %v14510_v43  ;;  %v11863_v43 = vld [vmem:[%s16295_s3 + $0x1310] ss:$12 sps:$4 sm:$0xff]  }
 0x3be   : > { %10731 = vmatpush3.bf16.msra.mxu1 %v11858_v21  ;;  %6435 = vmatprep.mubr.bf16.mxu1 %v14518_v62  ;;  %v11864_v62 = vld [vmem:[%s16295_s3 + $0x1250] ss:$12 sps:$4 sm:$0xff]   ;;  %v11897_v21 = vld [vmem:[%s16295_s3 + $0x1440] ss:$12 sps:$4 sm:$0xff]  }
 0x3bf   : > { %10732 = vmatprep.subr.bf16.mxu1 %v11859_v18  ;;  %v11905_v18 = vld [vmem:[%s16295_s3 + $0x1474] ss:$12 sps:$4 sm:$0xff]  }
 0x3c2   : > { %10733 = vmatpush3.bf16.msra.mxu1 %v11860_v63  ;;  %v11903_v63 = vld [vmem:[%s16295_s3 + $0x1470] ss:$12 sps:$4 sm:$0xff]  }
 0x3c3   : > { %10734 = vmatprep.subr.bf16.mxu1 %v11861_v38  ;;  %v11908_v38 = vld [vmem:[%s16295_s3 + $0x148c] ss:$12 sps:$4 sm:$0xff]  }
 0x3c6   : > { %10735 = vmatpush3.bf16.msra.mxu1 %v11862_v59  ;;  %v11906_v59 = vld [vmem:[%s16295_s3 + $0x1488] ss:$12 sps:$4 sm:$0xff]  }
 0x3c7   : > { %10736 = vmatprep.subr.bf16.mxu1 %v11863_v43  ;;  %v11911_v43 = vld [vmem:[%s16295_s3 + $0x14a4] ss:$12 sps:$4 sm:$0xff]  }
 0x3ca   : > { %10737 = vmatpush3.bf16.msra.mxu1 %v11864_v62  ;;  %v11909_v62 = vld [vmem:[%s16295_s3 + $0x14a0] ss:$12 sps:$4 sm:$0xff]  }
 0x3cb   : > { %10738 = vmatprep.subr.bf16.mxu1 %v11865_v37  ;;  %v11914_v37 = vld [vmem:[%s16295_s3 + $0x14bc] ss:$12 sps:$4 sm:$0xff]  }
 0x3ce   : > { %10739 = vmatpush3.bf16.msra.mxu1 %v11866_v36  ;;  %v11912_v36 = vld [vmem:[%s16295_s3 + $0x14b8] ss:$12 sps:$4 sm:$0xff]  }
 0x3cf   : > { %10740 = vmatprep.subr.bf16.mxu1 %v11867_v23  ;;  %v11917_v23 = vld [vmem:[%s16295_s3 + $0x14d4] ss:$12 sps:$4 sm:$0xff]  }
 0x3d0   : > { %v4232_v6 = vpop.f32.mrb[52].mxu1 }
 0x3d1   : > { %v4279_v49 = vadd.f32 %v4232_v6, %v15042_v10  ;;  %v4234_v27 = vpop.f32.mrb[53].mxu1  ;;  %v11915_v6 = vld [vmem:[%s16295_s3 + $0x14d0] ss:$12 sps:$4 sm:$0xff]  }
 0x3d2   : > { %v4280_v40 = vadd.f32 %v4234_v27, %v15050_v17  ;;  %v4236_v16 = vpop.f32.mrb[54].mxu1  ;;  %10741 = vmatpush3.bf16.msra.mxu1 %v11868_v11  ;;  %v11872_v17 = vld [vmem:[%s16295_s3 + $0x12b0] ss:$12 sps:$4 sm:$0xff]  }
 0x3d3   : > { %v4237_v45 = vpop.f32.mrb[55].mxu1  ;;  %10742 = vmatprep.subr.bf16.mxu1 %v11869_v34  ;;  %v15285_v15 = vadd.f32 %v14808_v22, %v4279_v49  ;;  %v11878_v22 = vld [vmem:[%s16295_s3 + $0x139c] ss:$12 sps:$4 sm:$0xff]  }
 0x3d4   : > { %v15288_v10 = vadd.f32 %v14814_v51, %v4280_v40  ;;  %v11876_v51 = vld [vmem:[%s16295_s3 + $0x1398] ss:$12 sps:$4 sm:$0xff]   ;;  %v11921_v45 = vld [vmem:[%s16295_s3 + $0x15c8] ss:$12 sps:$4 sm:$0xff]  }
 0x3d5   : > { %v11920_v40 = vld [vmem:[%s16295_s3 + $0x14ec] ss:$12 sps:$4 sm:$0xff]  }
 0x3d6   : > { %10743 = vmatpush3.bf16.msra.mxu1 %v11870_v24  ;;  %v11918_v24 = vld [vmem:[%s16295_s3 + $0x14e8] ss:$12 sps:$4 sm:$0xff]  }
 0x3d7   : > { %10744 = vmatprep.subr.bf16.mxu1 %v11871_v52  ;;  %v11922_v52 = vld [vmem:[%s16295_s3 + $0x1508] ss:$12 sps:$4 sm:$0xff]  }
 0x3da   : > { %10745 = vmatpush3.bf16.msra.mxu1 %v11872_v17  ;;  %v11923_v17 = vld [vmem:[%s16295_s3 + $0x15e0] ss:$12 sps:$4 sm:$0xff]  }
 0x3db   : > { %6800 = vmatprep.subr.bf16.mxu1 %v11875_v46  ;;  %v11924_v46 = vld [vmem:[%s16295_s3 + $0x1520] ss:$12 sps:$4 sm:$0xff]  }
 0x3dd   : > { %6436 = vmatmul.mubr.bf16.vlgmr.msra.gmra.mrb[72].mxu1 %v14734_v42  ;;  %v11884_v42 = vld [vmem:[%s16295_s3 + $0x13cc] ss:$12 sps:$4 sm:$0xff]  }
 0x3de   : > { %6801 = vmatpush1.bf16.msra.mxu1 %v11873_v55  ;;  %6832 = vmatprep.mubr.bf16.mxu1 %v14744_v57  ;;  %v11882_v57 = vld [vmem:[%s16295_s3 + $0x13c8] ss:$12 sps:$4 sm:$0xff]   ;;  %v11925_v55 = vld [vmem:[%s16295_s3 + $0x15f8] ss:$12 sps:$4 sm:$0xff]  }
 0x3df   : > { %6802 = vmatprep.subr.bf16.mxu1 %v11878_v22  ;;  %v11926_v22 = vld [vmem:[%s16295_s3 + $0x1538] ss:$12 sps:$4 sm:$0xff]  }
 0x3e2   : > { %6803 = vmatpush1.bf16.msra.mxu1 %v11876_v51  ;;  %v11929_v51 = vld [vmem:[%s16295_s3 + $0x1628] ss:$12 sps:$4 sm:$0xff]  }
 0x3e3   : > { %6804 = vmatprep.subr.bf16.mxu1 %v11881_v54  ;;  %v11930_v54 = vld [vmem:[%s16295_s3 + $0x1568] ss:$12 sps:$4 sm:$0xff]  }
 0x3e6   : > { %6805 = vmatpush1.bf16.msra.mxu1 %v11879_v39  ;;  %v11931_v39 = vld [vmem:[%s16295_s3 + $0x1640] ss:$12 sps:$4 sm:$0xff]  }
 0x3e7   : > { %6806 = vmatprep.subr.bf16.mxu1 %v11884_v42  ;;  %v11932_v42 = vld [vmem:[%s16295_s3 + $0x1580] ss:$12 sps:$4 sm:$0xff]  }
 0x3ea   : > { %6807 = vmatpush1.bf16.msra.mxu1 %v11882_v57  ;;  %v11933_v57 = vld [vmem:[%s16295_s3 + $0x1658] ss:$12 sps:$4 sm:$0xff]  }
 0x3eb   : > { %6808 = vmatprep.subr.bf16.mxu1 %v11887_v32 }
 0x3ee   : > { %6809 = vmatpush1.bf16.msra.mxu1 %v11885_v14 }
 0x3ef   : > { %6810 = vmatprep.subr.bf16.mxu1 %v11890_v25 }
 0x3f0   : > { %v10658_v1 = vpop.f32.mrb[56].mxu1 }
 0x3f1   : > { %v15334_v61 = vpop.f32.mrb[40].mxu0  ;;  %v10659_v53 = vpop.f32.mrb[57].mxu1 }
 0x3f2   : > { %v10660_v12 = vadd.f32 %v10659_v53, %v10658_v1  ;;  %v15336_v2 = vpop.f32.mrb[41].mxu0  ;;  %v10661_v20 = vpop.f32.mrb[58].mxu1  ;;  %6811 = vmatpush1.bf16.msra.mxu1 %v11888_v29  ;;  %v11934_v1 = vld [vmem:[%s16295_s3 + $0x1598] ss:$12 sps:$4 sm:$0xff]  }
 0x3f3   : > { %v6400_v7 = vpop.f32.mrb[42].mxu0  ;;  %v10662_v60 = vpop.f32.mrb[59].mxu1  ;;  %6812 = vmatprep.subr.bf16.mxu1 %v11893_v47 }
 0x3f4   : > { %v4719_v58 = vadd.f32 %v10660_v12, %v15175_v9  ;;  %v6401_v33 = vpop.f32.mrb[43].mxu0  ;;  %v11902_v9 = vld [vmem:[%s16295_s3 + $0x145c] ss:$12 sps:$4 sm:$0xff]   ;;  %v11937_v7 = vld [vmem:[%s16295_s3 + $0x1680] ss:$12 sps:$4 sm:$0xff]  }
 0x3f5   : > { %v11935_v12 = vld [vmem:[%s16295_s3 + $0x1670] ss:$12 sps:$4 sm:$0xff]   ;;  %v11945_v60 = vld [vmem:[%s16295_s3 + $0x16b4] ss:$12 sps:$4 sm:$0xff]  }
 0x3f6   : > { %6813 = vmatpush1.bf16.msra.mxu1 %v11891_v41  ;;  %v15349_v19 = vadd.f32 %v14933_v48, %v4719_v58  ;;  %v11900_v48 = vld [vmem:[%s16295_s3 + $0x1458] ss:$12 sps:$4 sm:$0xff]   ;;  %v11949_v33 = vld [vmem:[%s16295_s3 + $0x16e0] ss:$12 sps:$4 sm:$0xff]  }
 0x3f7   : > { %6814 = vmatprep.subr.bf16.mxu1 %v11896_v8  ;;  %v11939_v41 = vld [vmem:[%s16295_s3 + $0x1684] ss:$12 sps:$4 sm:$0xff]  }
 0x3f8   : > { %v11943_v8 = vld [vmem:[%s16295_s3 + $0x16b0] ss:$12 sps:$4 sm:$0xff]  }
 0x3f9   : > { %v11951_v58 = vld [vmem:[%s16295_s3 + $0x16e4] ss:$12 sps:$4 sm:$0xff]  }
 0x3fa   : > { %6815 = vmatpush1.bf16.msra.mxu1 %v11894_v26  ;;  %v11954_v26 = vld [vmem:[%s16295_s3 + $0x16fc] ss:$12 sps:$4 sm:$0xff]  }
 0x3fb   : > { %6816 = vmatprep.subr.bf16.mxu1 %v11899_v5  ;;  %v11952_v5 = vld [vmem:[%s16295_s3 + $0x16f8] ss:$12 sps:$4 sm:$0xff]  }
 0x3fe   : > { %6817 = vmatpush1.bf16.msra.mxu1 %v11897_v21  ;;  %v11957_v21 = vld [vmem:[%s16295_s3 + $0x1714] ss:$12 sps:$4 sm:$0xff]  }
 0x3ff   : > { %6818 = vmatprep.subr.bf16.mxu1 %v11902_v9 }
 0x402   : > { %6819 = vmatpush1.bf16.msra.mxu1 %v11900_v48 }
 0x403   : > { %6820 = vmatprep.subr.bf16.mxu1 %v11905_v18 }
 0x406   : > { %6821 = vmatpush1.bf16.msra.mxu1 %v11903_v63 }
 0x407   : > { %6822 = vmatprep.subr.bf16.mxu1 %v11908_v38 }
 0x40a   : > { %6823 = vmatpush1.bf16.msra.mxu1 %v11906_v59 }
 0x40b   : > { %6824 = vmatprep.subr.bf16.mxu1 %v11911_v43  ;;  %v11955_v43 = vld [vmem:[%s16295_s3 + $0x1710] ss:$12 sps:$4 sm:$0xff]  }
 0x40e   : > { %6825 = vmatpush1.bf16.msra.mxu1 %v11909_v62 }
 0x40f   : > { %6826 = vmatprep.subr.bf16.mxu1 %v11914_v37 }
 0x411   : > { %v10768_v11 = vpop.f32.mrb[44].mxu0 }
 0x412   : > { %v10769_v34 = vpop.f32.mrb[45].mxu0  ;;  %6827 = vmatpush1.bf16.msra.mxu1 %v11912_v36  ;;  %v11960_v36 = vld [vmem:[%s16295_s3 + $0x172c] ss:$12 sps:$4 sm:$0xff]  }
 0x413   : > { %v15393_v49 = vadd.f32 %v10769_v34, %v10768_v11  ;;  %v10771_v27 = vpop.f32.mrb[46].mxu0  ;;  %6828 = vmatprep.subr.bf16.mxu1 %v11917_v23  ;;  %v11958_v34 = vld [vmem:[%s16295_s3 + $0x1728] ss:$12 sps:$4 sm:$0xff]  }
 0x414   : > { %v10772_v16 = vpop.f32.mrb[47].mxu0  ;;  %v11963_v27 = vld [vmem:[%s16295_s3 + $0x1744] ss:$12 sps:$4 sm:$0xff]  }
 0x415   : > { %v11969_v16 = vld [vmem:[%s16295_s3 + $0x1774] ss:$12 sps:$4 sm:$0xff]  }
 0x416   : > { %6829 = vmatpush1.bf16.msra.mxu1 %v11915_v6 }
 0x417   : > { %6830 = vmatprep.subr.bf16.mxu1 %v11920_v40  ;;  %v11961_v40 = vld [vmem:[%s16295_s3 + $0x1740] ss:$12 sps:$4 sm:$0xff]  }
 0x41a   : > { %6831 = vmatpush1.bf16.msra.mxu1 %v11918_v24  ;;  %v11967_v24 = vld [vmem:[%s16295_s3 + $0x1770] ss:$12 sps:$4 sm:$0xff]  }
 0x41b   : > { %10774 = vmatprep.subr.bf16.mxu1 %v11921_v45  ;;  %v11972_v45 = vld [vmem:[%s16295_s3 + $0x178c] ss:$12 sps:$4 sm:$0xff]  }
 0x41d   : > { %6833 = vmatmul.mubr.bf16.vlgmr.msra.gmra.mrb[76].mxu1 %v14858_v44  ;;  %v11927_v44 = vld [vmem:[%s16295_s3 + $0x1610] ss:$12 sps:$4 sm:$0xff]  }
 0x41e   : > { %10775 = vmatpush3.bf16.msra.mxu1 %v11922_v52  ;;  %7298 = vmatprep.mubr.bf16.mxu1 %v14866_v4  ;;  %v11928_v4 = vld [vmem:[%s16295_s3 + $0x1550] ss:$12 sps:$4 sm:$0xff]   ;;  %v11970_v52 = vld [vmem:[%s16295_s3 + $0x1788] ss:$12 sps:$4 sm:$0xff]  }
 0x41f   : > { %10776 = vmatprep.subr.bf16.mxu1 %v11923_v17  ;;  %v11975_v17 = vld [vmem:[%s16295_s3 + $0x17a4] ss:$12 sps:$4 sm:$0xff]  }
 0x422   : > { %10777 = vmatpush3.bf16.msra.mxu1 %v11924_v46  ;;  %v11973_v46 = vld [vmem:[%s16295_s3 + $0x17a0] ss:$12 sps:$4 sm:$0xff]  }
 0x423   : > { %10778 = vmatprep.subr.bf16.mxu1 %v11925_v55  ;;  %v11978_v55 = vld [vmem:[%s16295_s3 + $0x17bc] ss:$12 sps:$4 sm:$0xff]  }
 0x426   : > { %10779 = vmatpush3.bf16.msra.mxu1 %v11926_v22  ;;  %v11976_v22 = vld [vmem:[%s16295_s3 + $0x17b8] ss:$12 sps:$4 sm:$0xff]  }
 0x427   : > { %10780 = vmatprep.subr.bf16.mxu1 %v11927_v44  ;;  %v11981_v44 = vld [vmem:[%s16295_s3 + $0x17d4] ss:$12 sps:$4 sm:$0xff]  }
 0x42a   : > { %10781 = vmatpush3.bf16.msra.mxu1 %v11928_v4 }
 0x42b   : > { %10782 = vmatprep.subr.bf16.mxu1 %v11929_v51 }
 0x42e   : > { %10783 = vmatpush3.bf16.msra.mxu1 %v11930_v54  ;;  %v11979_v54 = vld [vmem:[%s16295_s3 + $0x17d0] ss:$12 sps:$4 sm:$0xff]  }
 0x42f   : > { %10784 = vmatprep.subr.bf16.mxu1 %v11931_v39 }
 0x430   : > { %v5108_v32 = vpop.f32.mrb[60].mxu1 }
 0x431   : > { %v5155_v14 = vadd.f32 %v5108_v32, %v15285_v15  ;;  %v5110_v25 = vpop.f32.mrb[61].mxu1 }
 0x432   : > { %v5156_v29 = vadd.f32 %v5110_v25, %v15288_v10  ;;  %v5112_v47 = vpop.f32.mrb[62].mxu1  ;;  %10785 = vmatpush3.bf16.msra.mxu1 %v11932_v42  ;;  %v11936_v10 = vld [vmem:[%s16295_s3 + $0x15b0] ss:$12 sps:$4 sm:$0xff]  }
 0x433   : > { %v5113_v53 = vpop.f32.mrb[63].mxu1  ;;  %10786 = vmatprep.subr.bf16.mxu1 %v11933_v57  ;;  %v15451_v20 = vadd.f32 %v15152_v35, %v5155_v14  ;;  %v11942_v35 = vld [vmem:[%s16295_s3 + $0x169c] ss:$12 sps:$4 sm:$0xff]   ;;  %v11984_v57 = vld [vmem:[%s16295_s3 + $0x17ec] ss:$12 sps:$4 sm:$0xff]  }
 0x434   : > { %v15454_v15 = vadd.f32 %v15154_v56, %v5156_v29  ;;  %v11940_v56 = vld [vmem:[%s16295_s3 + $0x1698] ss:$12 sps:$4 sm:$0xff]   ;;  %v11982_v14 = vld [vmem:[%s16295_s3 + $0x17e8] ss:$12 sps:$4 sm:$0xff]  }
 0x436   : > { %10787 = vmatpush3.bf16.msra.mxu1 %v11934_v1 }
 0x437   : > { %10788 = vmatprep.subr.bf16.mxu1 %v11935_v12 }
 0x43a   : > { %10789 = vmatpush3.bf16.msra.mxu1 %v11936_v10 }
 0x43b   : > { %7650 = vmatprep.subr.bf16.mxu1 %v11939_v41 }
 0x43d   : > { %7299 = vmatmul.mubr.bf16.vlgmr.msra.gmra.mrb[80].mxu1 %v15078_v0  ;;  %v11948_v0 = vld [vmem:[%s16295_s3 + $0x16cc] ss:$12 sps:$4 sm:$0xff]  }
 0x43e   : > { %7651 = vmatpush1.bf16.msra.mxu1 %v11937_v7  ;;  %7682 = vmatprep.mubr.bf16.mxu1 %v15088_v3  ;;  %v11946_v3 = vld [vmem:[%s16295_s3 + $0x16c8] ss:$12 sps:$4 sm:$0xff]  }
 0x43f   : > { %7652 = vmatprep.subr.bf16.mxu1 %v11942_v35  ;;  %v11985_v7 = vld [vmem:[%s16297_s5] ss:$8 sps:$4 sm:$0xff]   ;;  %v11996_v35 = vld [vmem:[%s16297_s5 + $0x34] ss:$8 sps:$4 sm:$0xff]  }
 0x442   : > { %7653 = vmatpush1.bf16.msra.mxu1 %v11940_v56  ;;  %v11994_v56 = vld [vmem:[%s16297_s5 + $0x30] ss:$8 sps:$4 sm:$0xff]  }
 0x443   : > { %7654 = vmatprep.subr.bf16.mxu1 %v11945_v60  ;;  %v11999_v60 = vld [vmem:[%s16297_s5 + $0x44] ss:$8 sps:$4 sm:$0xff]  }
 0x446   : > { %7655 = vmatpush1.bf16.msra.mxu1 %v11943_v8  ;;  %v11997_v8 = vld [vmem:[%s16297_s5 + $0x40] ss:$8 sps:$4 sm:$0xff]  }
 0x447   : > { %7656 = vmatprep.subr.bf16.mxu1 %v11948_v0  ;;  %v12002_v0 = vld [vmem:[%s16297_s5 + $0x54] ss:$8 sps:$4 sm:$0xff]  }
 0x44a   : > { %7657 = vmatpush1.bf16.msra.mxu1 %v11946_v3  ;;  %v12000_v3 = vld [vmem:[%s16297_s5 + $0x50] ss:$8 sps:$4 sm:$0xff]  }
 0x44b   : > { %7658 = vmatprep.subr.bf16.mxu1 %v11951_v58  ;;  %v12005_v58 = vld [vmem:[%s16297_s5 + $0x64] ss:$8 sps:$4 sm:$0xff]  }
 0x44e   : > { %7659 = vmatpush1.bf16.msra.mxu1 %v11949_v33 }
 0x44f   : > { %7660 = vmatprep.subr.bf16.mxu1 %v11954_v26 }
 0x450   : > { %v10702_v9 = vpop.f32.mrb[64].mxu1 }
 0x451   : > { %v15500_v48 = vpop.f32.mrb[48].mxu0  ;;  %v10703_v18 = vpop.f32.mrb[65].mxu1 }
 0x452   : > { %v10704_v63 = vadd.f32 %v10703_v18, %v10702_v9  ;;  %v15502_v38 = vpop.f32.mrb[49].mxu0  ;;  %v10705_v59 = vpop.f32.mrb[66].mxu1  ;;  %7661 = vmatpush1.bf16.msra.mxu1 %v11952_v5  ;;  %v12003_v5 = vld [vmem:[%s16297_s5 + $0x60] ss:$8 sps:$4 sm:$0xff]   ;;  %v12008_v18 = vld [vmem:[%s16297_s5 + $0x74] ss:$8 sps:$4 sm:$0xff]  }
 0x453   : > { %v7263_v62 = vpop.f32.mrb[50].mxu0  ;;  %v10706_v37 = vpop.f32.mrb[67].mxu1  ;;  %7662 = vmatprep.subr.bf16.mxu1 %v11957_v21 }
 0x454   : > { %v5582_v23 = vadd.f32 %v10704_v63, %v15349_v19  ;;  %v7264_v11 = vpop.f32.mrb[51].mxu0  ;;  %v11966_v19 = vld [vmem:[%s16295_s3 + $0x175c] ss:$12 sps:$4 sm:$0xff]   ;;  %v12011_v37 = vld [vmem:[%s16297_s5 + $0x84] ss:$8 sps:$4 sm:$0xff]  }
 0x455   : > { %v12017_v11 = vld [vmem:[%s16297_s5 + $0xa4] ss:$8 sps:$4 sm:$0xff]  }
 0x456   : > { %7663 = vmatpush1.bf16.msra.mxu1 %v11955_v43  ;;  %v15515_v6 = vadd.f32 %v15227_v13, %v5582_v23  ;;  %v11964_v13 = vld [vmem:[%s16295_s3 + $0x1758] ss:$12 sps:$4 sm:$0xff]   ;;  %v12014_v23 = vld [vmem:[%s16297_s5 + $0x94] ss:$8 sps:$4 sm:$0xff]  }
 0x457   : > { %7664 = vmatprep.subr.bf16.mxu1 %v11960_v36  ;;  %v12006_v43 = vld [vmem:[%s16297_s5 + $0x70] ss:$8 sps:$4 sm:$0xff]   ;;  %v12009_v36 = vld [vmem:[%s16297_s5 + $0x80] ss:$8 sps:$4 sm:$0xff]  }
 0x45a   : > { %7665 = vmatpush1.bf16.msra.mxu1 %v11958_v34  ;;  %v12015_v34 = vld [vmem:[%s16297_s5 + $0xa0] ss:$8 sps:$4 sm:$0xff]  }
 0x45b   : > { %7666 = vmatprep.subr.bf16.mxu1 %v11963_v27  ;;  %v12018_v27 = vld [vmem:[%s16297_s5 + $0xb0] ss:$8 sps:$4 sm:$0xff]  }
 0x45e   : > { %7667 = vmatpush1.bf16.msra.mxu1 %v11961_v40  ;;  %v12023_v40 = vld [vmem:[%s16297_s5 + $0xc4] ss:$8 sps:$4 sm:$0xff]  }
 0x45f   : > { %7668 = vmatprep.subr.bf16.mxu1 %v11966_v19  ;;  %v12021_v19 = vld [vmem:[%s16297_s5 + $0xc0] ss:$8 sps:$4 sm:$0xff]  }
 0x462   : > { %7669 = vmatpush1.bf16.msra.mxu1 %v11964_v13  ;;  %v12026_v13 = vld [vmem:[%s16297_s5 + $0xd4] ss:$8 sps:$4 sm:$0xff]  }
 0x463   : > { %7670 = vmatprep.subr.bf16.mxu1 %v11969_v16  ;;  %v12024_v16 = vld [vmem:[%s16297_s5 + $0xd0] ss:$8 sps:$4 sm:$0xff]  }
 0x466   : > { %7671 = vmatpush1.bf16.msra.mxu1 %v11967_v24  ;;  %v12027_v24 = vld [vmem:[%s16297_s5 + $0xe0] ss:$8 sps:$4 sm:$0xff]  }
 0x467   : > { %7672 = vmatprep.subr.bf16.mxu1 %v11972_v45  ;;  %v12029_v45 = vld [vmem:[%s16297_s5 + $0xe4] ss:$8 sps:$4 sm:$0xff]  }
 0x46a   : > { %7673 = vmatpush1.bf16.msra.mxu1 %v11970_v52  ;;  %v12032_v52 = vld [vmem:[%s16297_s5 + $0xf4] ss:$8 sps:$4 sm:$0xff]  }
 0x46b   : > { %7674 = vmatprep.subr.bf16.mxu1 %v11975_v17  ;;  %v12030_v17 = vld [vmem:[%s16297_s5 + $0xf0] ss:$8 sps:$4 sm:$0xff]  }
 0x46e   : > { %7675 = vmatpush1.bf16.msra.mxu1 %v11973_v46  ;;  %v12035_v46 = vld [vmem:[%s16297_s5 + $0x104] ss:$8 sps:$4 sm:$0xff]  }
 0x46f   : > { %7676 = vmatprep.subr.bf16.mxu1 %v11978_v55 }
 0x471   : > { %v10812_v4 = vpop.f32.mrb[52].mxu0 }
 0x472   : > { %v10813_v51 = vpop.f32.mrb[53].mxu0  ;;  %7677 = vmatpush1.bf16.msra.mxu1 %v11976_v22 }
 0x473   : > { %v15559_v39 = vadd.f32 %v10813_v51, %v10812_v4  ;;  %v10815_v42 = vpop.f32.mrb[54].mxu0  ;;  %7678 = vmatprep.subr.bf16.mxu1 %v11981_v44 }
 0x474   : > { %v10816_v32 = vpop.f32.mrb[55].mxu0 }
 0x476   : > { %7679 = vmatpush1.bf16.msra.mxu1 %v11979_v54 }
 0x477   : > { %7680 = vmatprep.subr.bf16.mxu1 %v11984_v57 }
 0x47a   : > { %7681 = vmatpush1.bf16.msra.mxu1 %v11982_v14  ;;  %v7746_v14 = vsub.s32 2, %v12712_v28 }
 0x47d   : > { %7683 = vmatmul.mubr.bf16.vlgmr.msra.gmra.mrb[84].mxu1 %v15191_v50  ;;  %v11987_v50 = vld [vmem:[%s16297_s5 + $0x4] ss:$8 sps:$4 sm:$0xff]  }
 0x47e   : > { %8954 = vmatprep.subr.bf16.mxu0 %v11987_v50 }
 0x47f   : > { %8955 = vmatpush1.bf16.msra.mxu0 %v11985_v7 }
 0x490   : > { %v5958_v25 = vpop.f32.mrb[68].mxu1 }
 0x491   : > { %v6005_v29 = vadd.f32 %v5958_v25, %v15451_v20  ;;  %v5960_v47 = vpop.f32.mrb[69].mxu1  ;;  %v11990_v20 = vld [vmem:[%s16297_s5 + $0x14] ss:$8 sps:$4 sm:$0xff]  }
 0x492   : > { %v6006_v1 = vadd.f32 %v5960_v47, %v15454_v15  ;;  %v5962_v53 = vpop.f32.mrb[70].mxu1  ;;  %8956 = vmatprep.subr.bf16.mxu0 %v11990_v20  ;;  %v11991_v15 = vld [vmem:[%s16297_s5 + $0x20] ss:$8 sps:$4 sm:$0xff]  }
 0x493   : > { %v5963_v12 = vpop.f32.mrb[71].mxu1  ;;  %v15571_v10 = vadd.f32 %v15334_v61, %v6005_v29  ;;  %v11988_v61 = vld [vmem:[%s16297_s5 + $0x10] ss:$8 sps:$4 sm:$0xff]   ;;  %v7734_v29 = vld [vmem:[%s16296_s4] sm:$0x7] }
 0x494   : > { %v15574_v41 = vadd.f32 %v15336_v2, %v6006_v1  ;;  %v11993_v2 = vld [vmem:[%s16297_s5 + $0x24] ss:$8 sps:$4 sm:$0xff]   ;;  %8957 = vmatpush1.bf16.msra.mxu0 %v11988_v61  ;;  %v7743_v50 = vrot.slane %v7734_v29, %v12721_v31 }
 0x495   : > { %8958 = vmatprep.subr.bf16.mxu0 %v11993_v2 }
 0x498   : > { %8959 = vmatpush1.bf16.msra.mxu0 %v11991_v15 }
 0x499   : > { %8960 = vmatprep.subr.bf16.mxu0 %v11996_v35 }
 0x49c   : > { %8961 = vmatpush1.bf16.msra.mxu0 %v11994_v56 }
 0x49d   : > { %8962 = vmatprep.subr.bf16.mxu0 %v11999_v60 }
 0x4a0   : > { %8963 = vmatpush1.bf16.msra.mxu0 %v11997_v8 }
 0x4a1   : > { %8964 = vmatprep.subr.bf16.mxu0 %v12002_v0 }
 0x4a4   : > { %8965 = vmatpush1.bf16.msra.mxu0 %v12000_v3  ;;  %v12033_v3 = vld [vmem:[%s16297_s5 + $0x100] ss:$8 sps:$4 sm:$0xff]  }
 0x4a5   : > { %8966 = vmatprep.subr.bf16.mxu0 %v12005_v58 }
 0x4a8   : > { %8967 = vmatpush1.bf16.msra.mxu0 %v12003_v5  ;;  %v12036_v5 = vld [vmem:[%s16297_s5 + $0x110] ss:$8 sps:$4 sm:$0xff]  }
 0x4a9   : > { %8968 = vmatprep.subr.bf16.mxu0 %v12008_v18  ;;  %v12044_v18 = vld [vmem:[%s16297_s5 + $0x134] ss:$8 sps:$4 sm:$0xff]  }
 0x4ac   : > { %8969 = vmatpush1.bf16.msra.mxu0 %v12006_v43  ;;  %v12045_v43 = vld [vmem:[%s16297_s5 + $0x140] ss:$8 sps:$4 sm:$0xff]  }
 0x4ad   : > { %8970 = vmatprep.subr.bf16.mxu0 %v12011_v37  ;;  %v12048_v37 = vld [vmem:[%s16297_s5 + $0x150] ss:$8 sps:$4 sm:$0xff]  }
 0x4b0   : > { %v10746_v33 = vpop.f32.mrb[72].mxu1  ;;  %8971 = vmatpush1.bf16.msra.mxu0 %v12009_v36  ;;  %v12053_v36 = vld [vmem:[%s16297_s5 + $0x164] ss:$8 sps:$4 sm:$0xff]  }
 0x4b1   : > { %v10747_v26 = vpop.f32.mrb[73].mxu1  ;;  %8972 = vmatprep.subr.bf16.mxu0 %v12014_v23  ;;  %v12051_v23 = vld [vmem:[%s16297_s5 + $0x160] ss:$8 sps:$4 sm:$0xff]  }
 0x4b2   : > { %v10748_v21 = vadd.f32 %v10747_v26, %v10746_v33  ;;  %v10749_v9 = vpop.f32.mrb[74].mxu1  ;;  %v12038_v26 = vld [vmem:[%s16297_s5 + $0x114] ss:$8 sps:$4 sm:$0xff]  }
 0x4b3   : > { %v10750_v63 = vpop.f32.mrb[75].mxu1  ;;  %v12039_v9 = vld [vmem:[%s16297_s5 + $0x120] ss:$8 sps:$4 sm:$0xff]  }
 0x4b4   : > { %v6445_v59 = vadd.f32 %v10748_v21, %v15515_v6  ;;  %v12020_v6 = vld [vmem:[%s16297_s5 + $0xb4] ss:$8 sps:$4 sm:$0xff]   ;;  %v12041_v21 = vld [vmem:[%s16297_s5 + $0x124] ss:$8 sps:$4 sm:$0xff]   ;;  %v12042_v63 = vld [vmem:[%s16297_s5 + $0x130] ss:$8 sps:$4 sm:$0xff]  }
 0x4b6   : > { %v6883_v62 = vadd.f32 %v15393_v49, %v6445_v59  ;;  %v12012_v49 = vld [vmem:[%s16297_s5 + $0x90] ss:$8 sps:$4 sm:$0xff]   ;;  %v12047_v59 = vld [vmem:[%s16297_s5 + $0x144] ss:$8 sps:$4 sm:$0xff]  }
 0x4b7   : > { %8973 = vmatpush1.bf16.msra.mxu0 %v12012_v49  ;;  %v12056_v49 = vld [vmem:[%s16297_s5 + $0x174] ss:$8 sps:$4 sm:$0xff]  }
 0x4b8   : > { %8974 = vmatprep.subr.bf16.mxu0 %v12017_v11  ;;  %v12054_v11 = vld [vmem:[%s16297_s5 + $0x170] ss:$8 sps:$4 sm:$0xff]  }
 0x4bb   : > { %8975 = vmatpush1.bf16.msra.mxu0 %v12015_v34  ;;  %v12059_v34 = vld [vmem:[%s16297_s5 + $0x184] ss:$8 sps:$4 sm:$0xff]  }
 0x4bc   : > { %8976 = vmatprep.subr.bf16.mxu0 %v12020_v6  ;;  %v12057_v6 = vld [vmem:[%s16297_s5 + $0x180] ss:$8 sps:$4 sm:$0xff]  }
 0x4bf   : > { %8977 = vmatpush1.bf16.msra.mxu0 %v12018_v27  ;;  %v12062_v27 = vld [vmem:[%s16297_s5 + $0x194] ss:$8 sps:$4 sm:$0xff]  }
 0x4c0   : > { %8978 = vmatprep.subr.bf16.mxu0 %v12023_v40  ;;  %v12060_v40 = vld [vmem:[%s16297_s5 + $0x190] ss:$8 sps:$4 sm:$0xff]  }
 0x4c3   : > { %8979 = vmatpush1.bf16.msra.mxu0 %v12021_v19  ;;  %v12065_v19 = vld [vmem:[%s16297_s5 + $0x1a4] ss:$8 sps:$4 sm:$0xff]  }
 0x4c4   : > { %8980 = vmatprep.subr.bf16.mxu0 %v12026_v13  ;;  %v12063_v13 = vld [vmem:[%s16297_s5 + $0x1a0] ss:$8 sps:$4 sm:$0xff]  }
 0x4c7   : > { %8981 = vmatpush1.bf16.msra.mxu0 %v12024_v16  ;;  %v12068_v16 = vld [vmem:[%s16297_s5 + $0x1b4] ss:$8 sps:$4 sm:$0xff]  }
 0x4c8   : > { %8982 = vmatprep.subr.bf16.mxu0 %v12029_v45  ;;  %v12071_v45 = vld [vmem:[%s16297_s5 + $0x1c4] ss:$8 sps:$4 sm:$0xff]  }
 0x4cb   : > { %8983 = vmatpush1.bf16.msra.mxu0 %v12027_v24  ;;  %v12066_v24 = vld [vmem:[%s16297_s5 + $0x1b0] ss:$8 sps:$4 sm:$0xff]  }
 0x4cc   : > { %8984 = vmatprep.subr.bf16.mxu0 %v12032_v52  ;;  %v12069_v52 = vld [vmem:[%s16297_s5 + $0x1c0] ss:$8 sps:$4 sm:$0xff]  }
 0x4cf   : > { %8985 = vmatpush1.bf16.msra.mxu0 %v12030_v17  ;;  %v12074_v17 = vld [vmem:[%s16297_s5 + $0x1d4] ss:$8 sps:$4 sm:$0xff]  }
 0x4d0   : > { %8995 = vmatprep.subr.bf16.mxu0 %v12035_v46  ;;  %v12072_v46 = vld [vmem:[%s16297_s5 + $0x1d0] ss:$8 sps:$4 sm:$0xff]  }
 0x4f0   : > { %v6834_v55 = vpop.f32.mrb[76].mxu1 }
 0x4f1   : > { %v6881_v22 = vadd.f32 %v6834_v55, %v15571_v10  ;;  %v6836_v44 = vpop.f32.mrb[77].mxu1  ;;  %v7747_v10 = vrot.slane %v7734_v29, %v7746_v14  ;;  %v12077_v55 = vld [vmem:[%s16297_s5 + $0x1e4] ss:$8 sps:$4 sm:$0xff]   ;;  %v12086_v14 = vld [vmem:[%s16297_s5 + $0x214] ss:$8 sps:$4 sm:$0xff]  }
 0x4f2   : > { %v6882_v4 = vadd.f32 %v6836_v44, %v15574_v41  ;;  %v6838_v51 = vpop.f32.mrb[78].mxu1  ;;  %v12080_v44 = vld [vmem:[%s16297_s5 + $0x1f4] ss:$8 sps:$4 sm:$0xff]  }
 0x4f3   : > { %v6839_v54 = vpop.f32.mrb[79].mxu1  ;;  %v7306_v42 = vadd.f32 %v15500_v48, %v6881_v22  ;;  %v7739_v48 = vrot.slane %v7734_v29, %v12718_v30  ;;  %v12075_v22 = vld [vmem:[%s16297_s5 + $0x1e0] ss:$8 sps:$4 sm:$0xff]   ;;  %v12078_v51 = vld [vmem:[%s16297_s5 + $0x1f0] ss:$8 sps:$4 sm:$0xff]  }
 0x4f4   : > { %v7307_v57 = vadd.f32 %v15502_v38, %v6882_v4  ;;  %v12083_v54 = vld [vmem:[%s16297_s5 + $0x204] ss:$8 sps:$4 sm:$0xff]   ;;  %v12084_v29 = vld [vmem:[%s16297_s5 + $0x210] ss:$8 sps:$4 sm:$0xff]  }
 0x510   : > { %v10790_v32 = vpop.f32.mrb[80].mxu1 }
 0x511   : > { %v10791_v25 = vpop.f32.mrb[81].mxu1 }
 0x512   : > { %v10792_v47 = vadd.f32 %v10791_v25, %v10790_v32  ;;  %v10793_v1 = vpop.f32.mrb[82].mxu1 }
 0x513   : > { %v10794_v53 = vpop.f32.mrb[83].mxu1  ;;  %v12087_v1 = vld [vmem:[%s16297_s5 + $0x220] ss:$8 sps:$4 sm:$0xff]  }
 0x514   : > { %v7308_v12 = vadd.f32 %v10792_v47, %v6883_v62  ;;  %v12050_v62 = vld [vmem:[%s16297_s5 + $0x154] ss:$8 sps:$4 sm:$0xff]   ;;  %v12089_v47 = vld [vmem:[%s16297_s5 + $0x224] ss:$8 sps:$4 sm:$0xff]  }
 0x515   : > { %v12092_v53 = vld [vmem:[%s16297_s5 + $0x234] ss:$8 sps:$4 sm:$0xff]  }
 0x516   : > { %v7733_v41 = vadd.f32 %v15559_v39, %v7308_v12  ;;  %v12090_v12 = vld [vmem:[%s16297_s5 + $0x230] ss:$8 sps:$4 sm:$0xff]  }
 0x518   : > { %v15686_v7 = vadd.f32 %v7747_v10, %v7733_v41  ;;  %v12095_v10 = vld [vmem:[%s16297_s5 + $0x244] ss:$8 sps:$4 sm:$0xff]   ;;  %v12093_v41 = vld [vmem:[%s16297_s5 + $0x240] ss:$8 sps:$4 sm:$0xff]  }
 0x51a   : > { %v15790_v4 = vmax.f32 %v15686_v7, 0.0  ;;  %v12098_v7 = vld [vmem:[%s16297_s5 + $0x254] ss:$8 sps:$4 sm:$0xff]  }
 0x51c   : > { %v7780_v32 = vpack.c.bf16 %v15790_v4, %v15790_v4 }
 0x550   : > { %v7684_v38 = vpop.f32.mrb[84].mxu1 }
 0x551   : > { %v7731_v28 = vadd.f32 %v7684_v38, %v7306_v42  ;;  %v7686_v20 = vpop.f32.mrb[85].mxu1  ;;  %v7762_v42 = vrot.slane %v15790_v4, 1  ;;  %v12101_v38 = vld [vmem:[%s16297_s5 + $0x264] ss:$8 sps:$4 sm:$0xff]  }
 0x552   : > { %v7732_v61 = vadd.f32 %v7686_v20, %v7307_v57  ;;  %v7688_v2 = vpop.f32.mrb[86].mxu1  ;;  %v12081_v57 = vld [vmem:[%s16297_s5 + $0x200] ss:$8 sps:$4 sm:$0xff]   ;;  %v12102_v20 = vld [vmem:[%s16297_s5 + $0x270] ss:$8 sps:$4 sm:$0xff]  }
 0x553   : > { %v7751_v15 = vadd.f32 %v7739_v48, %v7731_v28  ;;  %v7689_v35 = vpop.f32.mrb[87].mxu1  ;;  %v7783_v25 = vpack.c.bf16 %v7762_v42, %v7762_v42  ;;  %v12096_v48 = vld [vmem:[%s16297_s5 + $0x250] ss:$8 sps:$4 sm:$0xff]   ;;  %v12104_v28 = vld [vmem:[%s16297_s5 + $0x274] ss:$8 sps:$4 sm:$0xff]  }
 0x554   : > { %v7752_v56 = vadd.f32 %v7743_v50, %v7732_v61  ;;  %v12099_v50 = vld [vmem:[%s16297_s5 + $0x260] ss:$8 sps:$4 sm:$0xff]   ;;  %v12107_v61 = vld [vmem:[%s16297_s5 + $0x284] ss:$8 sps:$4 sm:$0xff]   ;;  %v12108_v35 = vld [vmem:[%s16297_s5 + $0x290] ss:$8 sps:$4 sm:$0xff]  }
 0x555   : > { %v15690_v60 = vmax.f32 %v7751_v15, 0.0  ;;  %v12105_v2 = vld [vmem:[%s16297_s5 + $0x280] ss:$8 sps:$4 sm:$0xff]   ;;  %v12110_v15 = vld [vmem:[%s16297_s5 + $0x294] ss:$8 sps:$4 sm:$0xff]  }
 0x556   : > { %v15692_v8 = vmax.f32 %v7752_v56, 0.0  ;;  %v12113_v56 = vld [vmem:[%s16297_s5 + $0x2a4] ss:$8 sps:$4 sm:$0xff]   ;;  %v12159_v42 = vld [vmem:[%s16297_s5 + $0x3a0] ss:$8 sps:$4 sm:$0xff]  }
 0x557   : > { %v7760_v39 = vrot.slane %v15690_v60, 1  ;;  %v7778_v58 = vpack.c.bf16 %v15690_v60, %v15690_v60 }
 0x558   : > { %v7779_v0 = vpack.c.bf16 %v15692_v8, %v15692_v8 }
 0x559   : > { %v7781_v33 = vpack.c.bf16 %v7760_v39, %v7760_v39  ;;  %v12111_v39 = vld [vmem:[%s16297_s5 + $0x2a0] ss:$8 sps:$4 sm:$0xff]  }
 0x55a   : > { %8986 = vmatprep.mubr.bf16.mxu0 %v7779_v0  ;;  %v12116_v0 = vld [vmem:[%s16297_s5 + $0x2b4] ss:$8 sps:$4 sm:$0xff]  }
 0x55b   : > { %8987 = vmatmul.mubr.bf16.vlgmr.msra.gmra.mrb[56].mxu0 %v7778_v58  ;;  %v12119_v58 = vld [vmem:[%s16297_s5 + $0x2c4] ss:$8 sps:$4 sm:$0xff]  }
 0x55c   : > { %8996 = vmatpush1.bf16.msra.mxu0 %v12033_v3  ;;  %9027 = vmatprep.mubr.bf16.mxu0 %v7781_v33  ;;  %v12114_v3 = vld [vmem:[%s16297_s5 + $0x2b0] ss:$8 sps:$4 sm:$0xff]   ;;  %v12117_v33 = vld [vmem:[%s16297_s5 + $0x2c0] ss:$8 sps:$4 sm:$0xff]  }
 0x55d   : > { %8997 = vmatprep.subr.bf16.mxu0 %v12038_v26  ;;  %v12122_v26 = vld [vmem:[%s16297_s5 + $0x2d4] ss:$8 sps:$4 sm:$0xff]  }
 0x560   : > { %8998 = vmatpush1.bf16.msra.mxu0 %v12036_v5  ;;  %v12120_v5 = vld [vmem:[%s16297_s5 + $0x2d0] ss:$8 sps:$4 sm:$0xff]  }
 0x561   : > { %8999 = vmatprep.subr.bf16.mxu0 %v12041_v21  ;;  %v12125_v21 = vld [vmem:[%s16297_s5 + $0x2e4] ss:$8 sps:$4 sm:$0xff]  }
 0x564   : > { %9000 = vmatpush1.bf16.msra.mxu0 %v12039_v9  ;;  %v12123_v9 = vld [vmem:[%s16297_s5 + $0x2e0] ss:$8 sps:$4 sm:$0xff]  }
 0x565   : > { %9001 = vmatprep.subr.bf16.mxu0 %v12044_v18  ;;  %v12128_v18 = vld [vmem:[%s16297_s5 + $0x2f4] ss:$8 sps:$4 sm:$0xff]  }
 0x568   : > { %9002 = vmatpush1.bf16.msra.mxu0 %v12042_v63  ;;  %v12126_v63 = vld [vmem:[%s16297_s5 + $0x2f0] ss:$8 sps:$4 sm:$0xff]  }
 0x569   : > { %9003 = vmatprep.subr.bf16.mxu0 %v12047_v59  ;;  %v7761_v59 = vrot.slane %v15692_v8, 1 }
 0x56c   : > { %9004 = vmatpush1.bf16.msra.mxu0 %v12045_v43  ;;  %v12131_v43 = vld [vmem:[%s16297_s5 + $0x304] ss:$8 sps:$4 sm:$0xff]  }
 0x56d   : > { %9005 = vmatprep.subr.bf16.mxu0 %v12050_v62  ;;  %v7767_v62 = vrot.slane %v15692_v8, 2 }
 0x570   : > { %9006 = vmatpush1.bf16.msra.mxu0 %v12048_v37  ;;  %v12129_v37 = vld [vmem:[%s16297_s5 + $0x300] ss:$8 sps:$4 sm:$0xff]  }
 0x571   : > { %9007 = vmatprep.subr.bf16.mxu0 %v12053_v36  ;;  %v7782_v36 = vpack.c.bf16 %v7761_v59, %v7761_v59  ;;  %v12282_v59 = vld [vmem:[%s16299_s7 + $0x20] sm:$0xff]  }
 0x574   : > { %9008 = vmatpush1.bf16.msra.mxu0 %v12051_v23  ;;  %v12134_v23 = vld [vmem:[%s16297_s5 + $0x314] ss:$8 sps:$4 sm:$0xff]  }
 0x575   : > { %9009 = vmatprep.subr.bf16.mxu0 %v12056_v49  ;;  %v7785_v49 = vpack.c.bf16 %v7767_v62, %v7767_v62  ;;  %v12192_v62 = vld [vmem:[%s16297_s5 + $0x450] ss:$8 sps:$4 sm:$0xff]  }
 0x578   : > { %9010 = vmatpush1.bf16.msra.mxu0 %v12054_v11  ;;  %v12132_v11 = vld [vmem:[%s16297_s5 + $0x310] ss:$8 sps:$4 sm:$0xff]  }
 0x579   : > { %9011 = vmatprep.subr.bf16.mxu0 %v12059_v34  ;;  %v12137_v34 = vld [vmem:[%s16297_s5 + $0x324] ss:$8 sps:$4 sm:$0xff]  }
 0x57c   : > { %9012 = vmatpush1.bf16.msra.mxu0 %v12057_v6  ;;  %v12135_v6 = vld [vmem:[%s16297_s5 + $0x320] ss:$8 sps:$4 sm:$0xff]  }
 0x57d   : > { %9013 = vmatprep.subr.bf16.mxu0 %v12062_v27  ;;  %v12140_v27 = vld [vmem:[%s16297_s5 + $0x334] ss:$8 sps:$4 sm:$0xff]  }
 0x580   : > { %9014 = vmatpush1.bf16.msra.mxu0 %v12060_v40  ;;  %v12138_v40 = vld [vmem:[%s16297_s5 + $0x330] ss:$8 sps:$4 sm:$0xff]  }
 0x581   : > { %9015 = vmatprep.subr.bf16.mxu0 %v12065_v19  ;;  %v12143_v19 = vld [vmem:[%s16297_s5 + $0x344] ss:$8 sps:$4 sm:$0xff]  }
 0x584   : > { %9016 = vmatpush1.bf16.msra.mxu0 %v12063_v13  ;;  %v12141_v13 = vld [vmem:[%s16297_s5 + $0x340] ss:$8 sps:$4 sm:$0xff]  }
 0x585   : > { %9017 = vmatprep.subr.bf16.mxu0 %v12068_v16  ;;  %v12146_v16 = vld [vmem:[%s16297_s5 + $0x354] ss:$8 sps:$4 sm:$0xff]  }
 0x588   : > { %9018 = vmatpush1.bf16.msra.mxu0 %v12066_v24  ;;  %v12144_v24 = vld [vmem:[%s16297_s5 + $0x350] ss:$8 sps:$4 sm:$0xff]  }
 0x589   : > { %9019 = vmatprep.subr.bf16.mxu0 %v12071_v45  ;;  %v12149_v45 = vld [vmem:[%s16297_s5 + $0x364] ss:$8 sps:$4 sm:$0xff]  }
 0x58c   : > { %9020 = vmatpush1.bf16.msra.mxu0 %v12069_v52  ;;  %v12147_v52 = vld [vmem:[%s16297_s5 + $0x360] ss:$8 sps:$4 sm:$0xff]  }
 0x58d   : > { %9021 = vmatprep.subr.bf16.mxu0 %v12074_v17  ;;  %v12152_v17 = vld [vmem:[%s16297_s5 + $0x374] ss:$8 sps:$4 sm:$0xff]  }
 0x590   : > { %9022 = vmatpush1.bf16.msra.mxu0 %v12072_v46  ;;  %v12150_v46 = vld [vmem:[%s16297_s5 + $0x370] ss:$8 sps:$4 sm:$0xff]  }
 0x591   : > { %9023 = vmatprep.subr.bf16.mxu0 %v12077_v55  ;;  %v12155_v55 = vld [vmem:[%s16297_s5 + $0x384] ss:$8 sps:$4 sm:$0xff]  }
 0x594   : > { %9024 = vmatpush1.bf16.msra.mxu0 %v12075_v22  ;;  %v12153_v22 = vld [vmem:[%s16297_s5 + $0x380] ss:$8 sps:$4 sm:$0xff]  }
 0x595   : > { %9025 = vmatprep.subr.bf16.mxu0 %v12080_v44  ;;  %v12158_v44 = vld [vmem:[%s16297_s5 + $0x394] ss:$8 sps:$4 sm:$0xff]  }
 0x598   : > { %9026 = vmatpush1.bf16.msra.mxu0 %v12078_v51  ;;  %v12156_v51 = vld [vmem:[%s16297_s5 + $0x390] ss:$8 sps:$4 sm:$0xff]  }
 0x599   : > { %9036 = vmatprep.subr.bf16.mxu0 %v12083_v54  ;;  %v12161_v54 = vld [vmem:[%s16297_s5 + $0x3a4] ss:$8 sps:$4 sm:$0xff]  }
 0x59b   : > { %9028 = vmatmul.mubr.bf16.vlgmr.msra.gmra.mrb[56].mxu0 %v7780_v32  ;;  %v12162_v32 = vld [vmem:[%s16297_s5 + $0x3b0] ss:$8 sps:$4 sm:$0xff]  }
 0x59c   : > { %9037 = vmatpush1.bf16.msra.mxu0 %v12081_v57  ;;  %9068 = vmatprep.mubr.bf16.mxu0 %v7783_v25  ;;  %v12164_v57 = vld [vmem:[%s16297_s5 + $0x3b4] ss:$8 sps:$4 sm:$0xff]   ;;  %v12165_v25 = vld [vmem:[%s16297_s5 + $0x3c0] ss:$8 sps:$4 sm:$0xff]  }
 0x59d   : > { %9038 = vmatprep.subr.bf16.mxu0 %v12086_v14  ;;  %v12167_v14 = vld [vmem:[%s16297_s5 + $0x3c4] ss:$8 sps:$4 sm:$0xff]  }
 0x5a0   : > { %9039 = vmatpush1.bf16.msra.mxu0 %v12084_v29  ;;  %v12170_v29 = vld [vmem:[%s16297_s5 + $0x3d4] ss:$8 sps:$4 sm:$0xff]  }
 0x5a1   : > { %9040 = vmatprep.subr.bf16.mxu0 %v12089_v47  ;;  %v12168_v47 = vld [vmem:[%s16297_s5 + $0x3d0] ss:$8 sps:$4 sm:$0xff]  }
 0x5a4   : > { %9041 = vmatpush1.bf16.msra.mxu0 %v12087_v1  ;;  %v12173_v1 = vld [vmem:[%s16297_s5 + $0x3e4] ss:$8 sps:$4 sm:$0xff]  }
 0x5a5   : > { %9042 = vmatprep.subr.bf16.mxu0 %v12092_v53  ;;  %v12171_v53 = vld [vmem:[%s16297_s5 + $0x3e0] ss:$8 sps:$4 sm:$0xff]  }
 0x5a8   : > { %9043 = vmatpush1.bf16.msra.mxu0 %v12090_v12  ;;  %v12176_v12 = vld [vmem:[%s16297_s5 + $0x3f4] ss:$8 sps:$4 sm:$0xff]  }
 0x5a9   : > { %9044 = vmatprep.subr.bf16.mxu0 %v12095_v10  ;;  %v12174_v10 = vld [vmem:[%s16297_s5 + $0x3f0] ss:$8 sps:$4 sm:$0xff]  }
 0x5ac   : > { %9045 = vmatpush1.bf16.msra.mxu0 %v12093_v41  ;;  %v7766_v41 = vrot.slane %v15690_v60, 2 }
 0x5ad   : > { %9046 = vmatprep.subr.bf16.mxu0 %v12098_v7  ;;  %v12179_v7 = vld [vmem:[%s16297_s5 + $0x404] ss:$8 sps:$4 sm:$0xff]  }
 0x5b0   : > { %9047 = vmatpush1.bf16.msra.mxu0 %v12096_v48  ;;  %v7772_v48 = vrot.slane %v15690_v60, 3  ;;  %v12274_v60 = vld [vmem:[%s16299_s7] sm:$0xff]  }
 0x5b1   : > { %9048 = vmatprep.subr.bf16.mxu0 %v12101_v38  ;;  %v12177_v38 = vld [vmem:[%s16297_s5 + $0x400] ss:$8 sps:$4 sm:$0xff]  }
 0x5b4   : > { %9049 = vmatpush1.bf16.msra.mxu0 %v12099_v50  ;;  %v7784_v50 = vpack.c.bf16 %v7766_v41, %v7766_v41  ;;  %v12237_v41 = vld [vmem:[%s16297_s5 + $0x540] ss:$8 sps:$4 sm:$0xff]  }
 0x5b5   : > { %9050 = vmatprep.subr.bf16.mxu0 %v12104_v28  ;;  %v12182_v28 = vld [vmem:[%s16297_s5 + $0x414] ss:$8 sps:$4 sm:$0xff]  }
 0x5b8   : > { %9051 = vmatpush1.bf16.msra.mxu0 %v12102_v20  ;;  %v7787_v20 = vpack.c.bf16 %v7772_v48, %v7772_v48  ;;  %v12240_v48 = vld [vmem:[%s16297_s5 + $0x550] ss:$8 sps:$4 sm:$0xff]  }
 0x5b9   : > { %9052 = vmatprep.subr.bf16.mxu0 %v12107_v61  ;;  %v12273_v61 = vld [vmem:[%s16299_s7 + $0x40] sm:$0xff]  }
 0x5ba   : > { %10818 = vmatprep.subr.bf16.mxu1 %v12273_v61  ;;  %v12251_v61 = vld [vmem:[%s16297_s5 + $0x584] ss:$8 sps:$4 sm:$0xff]  }
 0x5bb   : > { %10819 = vmatpush3.bf16.msra.mxu1 %v12274_v60  ;;  %v12249_v60 = vld [vmem:[%s16297_s5 + $0x580] ss:$8 sps:$4 sm:$0xff]  }
 0x5bc   : > { %9053 = vmatpush1.bf16.msra.mxu0 %v12105_v2  ;;  %v12275_v2 = vld [vmem:[%s16299_s7 + $0x48] sm:$0xff]  }
 0x5bd   : > { %9054 = vmatprep.subr.bf16.mxu0 %v12110_v15  ;;  %v12180_v15 = vld [vmem:[%s16297_s5 + $0x410] ss:$8 sps:$4 sm:$0xff]   ;;  %10820 = vmatprep.subr.bf16.mxu1 %v12275_v2  ;;  %v12254_v2 = vld [vmem:[%s16297_s5 + $0x594] ss:$8 sps:$4 sm:$0xff]  }
 0x5c0   : > { %9055 = vmatpush1.bf16.msra.mxu0 %v12108_v35  ;;  %v12185_v35 = vld [vmem:[%s16297_s5 + $0x424] ss:$8 sps:$4 sm:$0xff]  }
 0x5c1   : > { %9056 = vmatprep.subr.bf16.mxu0 %v12113_v56  ;;  %v12276_v56 = vld [vmem:[%s16299_s7 + $0x8] sm:$0xff]  }
 0x5c2   : > { %10821 = vmatpush3.bf16.msra.mxu1 %v12276_v56  ;;  %v12255_v56 = vld [vmem:[%s16297_s5 + $0x5a0] ss:$8 sps:$4 sm:$0xff]  }
 0x5c4   : > { %9057 = vmatpush1.bf16.msra.mxu0 %v12111_v39  ;;  %v12277_v39 = vld [vmem:[%s16299_s7 + $0x50] sm:$0xff]  }
 0x5c5   : > { %9058 = vmatprep.subr.bf16.mxu0 %v12116_v0  ;;  %v12183_v0 = vld [vmem:[%s16297_s5 + $0x420] ss:$8 sps:$4 sm:$0xff]   ;;  %10822 = vmatprep.subr.bf16.mxu1 %v12277_v39  ;;  %v12260_v39 = vld [vmem:[%s16297_s5 + $0x5b4] ss:$8 sps:$4 sm:$0xff]  }
 0x5c8   : > { %9059 = vmatpush1.bf16.msra.mxu0 %v12114_v3  ;;  %v12188_v3 = vld [vmem:[%s16297_s5 + $0x434] ss:$8 sps:$4 sm:$0xff]  }
 0x5c9   : > { %9060 = vmatprep.subr.bf16.mxu0 %v12119_v58  ;;  %v12278_v58 = vld [vmem:[%s16299_s7 + $0x10] sm:$0xff]  }
 0x5ca   : > { %10823 = vmatpush3.bf16.msra.mxu1 %v12278_v58  ;;  %v12261_v58 = vld [vmem:[%s16297_s5 + $0x5c0] ss:$8 sps:$4 sm:$0xff]  }
 0x5cc   : > { %9061 = vmatpush1.bf16.msra.mxu0 %v12117_v33  ;;  %v12279_v33 = vld [vmem:[%s16299_s7 + $0x58] sm:$0xff]  }
 0x5cd   : > { %9062 = vmatprep.subr.bf16.mxu0 %v12122_v26  ;;  %v12186_v26 = vld [vmem:[%s16297_s5 + $0x430] ss:$8 sps:$4 sm:$0xff]   ;;  %10824 = vmatprep.subr.bf16.mxu1 %v12279_v33  ;;  %v12266_v33 = vld [vmem:[%s16297_s5 + $0x5d4] ss:$8 sps:$4 sm:$0xff]  }
 0x5d0   : > { %9063 = vmatpush1.bf16.msra.mxu0 %v12120_v5  ;;  %v12191_v5 = vld [vmem:[%s16297_s5 + $0x444] ss:$8 sps:$4 sm:$0xff]  }
 0x5d1   : > { %9064 = vmatprep.subr.bf16.mxu0 %v12125_v21  ;;  %v12280_v21 = vld [vmem:[%s16299_s7 + $0x18] sm:$0xff]  }
 0x5d2   : > { %10825 = vmatpush3.bf16.msra.mxu1 %v12280_v21  ;;  %v12267_v21 = vld [vmem:[%s16297_s5 + $0x5e0] ss:$8 sps:$4 sm:$0xff]  }
 0x5d4   : > { %9065 = vmatpush1.bf16.msra.mxu0 %v12123_v9  ;;  %v12281_v9 = vld [vmem:[%s16299_s7 + $0x60] sm:$0xff]  }
 0x5d5   : > { %9066 = vmatprep.subr.bf16.mxu0 %v12128_v18  ;;  %v12189_v18 = vld [vmem:[%s16297_s5 + $0x440] ss:$8 sps:$4 sm:$0xff]   ;;  %10826 = vmatprep.subr.bf16.mxu1 %v12281_v9  ;;  %v12272_v9 = vld [vmem:[%s16297_s5 + $0x5f4] ss:$8 sps:$4 sm:$0xff]  }
 0x5d6   : > { %10827 = vmatpush3.bf16.msra.mxu1 %v12282_v59 }
 0x5d8   : > { %9067 = vmatpush1.bf16.msra.mxu0 %v12126_v63  ;;  %v12194_v63 = vld [vmem:[%s16297_s5 + $0x454] ss:$8 sps:$4 sm:$0xff]  }
 0x5d9   : > { %9077 = vmatprep.subr.bf16.mxu0 %v12131_v43  ;;  %v12283_v43 = vld [vmem:[%s16299_s7 + $0x68] sm:$0xff]  }
 0x5da   : > { %10828 = vmatprep.subr.bf16.mxu1 %v12283_v43  ;;  %v12285_v43 = vld [vmem:[%s16299_s7 + $0x70] sm:$0xff]  }
 0x5db   : > { %9069 = vmatmul.mubr.bf16.vlgmr.msra.gmra.mrb[56].mxu0 %v7782_v36  ;;  %v12284_v36 = vld [vmem:[%s16299_s7 + $0x28] sm:$0xff]  }
 0x5dc   : > { %9078 = vmatpush1.bf16.msra.mxu0 %v12129_v37  ;;  %9109 = vmatprep.mubr.bf16.mxu0 %v7785_v49  ;;  %v12197_v37 = vld [vmem:[%s16297_s5 + $0x464] ss:$8 sps:$4 sm:$0xff]   ;;  %v12200_v49 = vld [vmem:[%s16297_s5 + $0x474] ss:$8 sps:$4 sm:$0xff]  }
 0x5dd   : > { %9079 = vmatprep.subr.bf16.mxu0 %v12134_v23  ;;  %v12195_v23 = vld [vmem:[%s16297_s5 + $0x460] ss:$8 sps:$4 sm:$0xff]   ;;  %10829 = vmatpush3.bf16.msra.mxu1 %v12284_v36 }
 0x5de   : > { %10830 = vmatprep.subr.bf16.mxu1 %v12285_v43  ;;  %v7982_v36 = vld [vmem:[%s16298_s6] sm:$0x3] }
 0x5e0   : > { %9080 = vmatpush1.bf16.msra.mxu0 %v12132_v11  ;;  %v12198_v11 = vld [vmem:[%s16297_s5 + $0x470] ss:$8 sps:$4 sm:$0xff]  }
 0x5e1   : > { %9081 = vmatprep.subr.bf16.mxu0 %v12137_v34  ;;  %v12203_v34 = vld [vmem:[%s16297_s5 + $0x484] ss:$8 sps:$4 sm:$0xff]  }
 0x5e4   : > { %9082 = vmatpush1.bf16.msra.mxu0 %v12135_v6  ;;  %v12201_v6 = vld [vmem:[%s16297_s5 + $0x480] ss:$8 sps:$4 sm:$0xff]  }
 0x5e5   : > { %9083 = vmatprep.subr.bf16.mxu0 %v12140_v27  ;;  %v12206_v27 = vld [vmem:[%s16297_s5 + $0x494] ss:$8 sps:$4 sm:$0xff]  }
 0x5e8   : > { %9084 = vmatpush1.bf16.msra.mxu0 %v12138_v40  ;;  %v12204_v40 = vld [vmem:[%s16297_s5 + $0x490] ss:$8 sps:$4 sm:$0xff]  }
 0x5e9   : > { %9085 = vmatprep.subr.bf16.mxu0 %v12143_v19  ;;  %v12209_v19 = vld [vmem:[%s16297_s5 + $0x4a4] ss:$8 sps:$4 sm:$0xff]  }
 0x5ec   : > { %9086 = vmatpush1.bf16.msra.mxu0 %v12141_v13  ;;  %v12207_v13 = vld [vmem:[%s16297_s5 + $0x4a0] ss:$8 sps:$4 sm:$0xff]  }
 0x5ed   : > { %9087 = vmatprep.subr.bf16.mxu0 %v12146_v16  ;;  %v12212_v16 = vld [vmem:[%s16297_s5 + $0x4b4] ss:$8 sps:$4 sm:$0xff]  }
 0x5f0   : > { %9088 = vmatpush1.bf16.msra.mxu0 %v12144_v24  ;;  %v12210_v24 = vld [vmem:[%s16297_s5 + $0x4b0] ss:$8 sps:$4 sm:$0xff]  }
 0x5f1   : > { %9089 = vmatprep.subr.bf16.mxu0 %v12149_v45  ;;  %v12215_v45 = vld [vmem:[%s16297_s5 + $0x4c4] ss:$8 sps:$4 sm:$0xff]  }
 0x5f4   : > { %9090 = vmatpush1.bf16.msra.mxu0 %v12147_v52  ;;  %v12213_v52 = vld [vmem:[%s16297_s5 + $0x4c0] ss:$8 sps:$4 sm:$0xff]  }
 0x5f5   : > { %9091 = vmatprep.subr.bf16.mxu0 %v12152_v17  ;;  %v12218_v17 = vld [vmem:[%s16297_s5 + $0x4d4] ss:$8 sps:$4 sm:$0xff]  }
 0x5f8   : > { %9092 = vmatpush1.bf16.msra.mxu0 %v12150_v46  ;;  %v12216_v46 = vld [vmem:[%s16297_s5 + $0x4d0] ss:$8 sps:$4 sm:$0xff]  }
 0x5f9   : > { %9093 = vmatprep.subr.bf16.mxu0 %v12155_v55  ;;  %v12221_v55 = vld [vmem:[%s16297_s5 + $0x4e4] ss:$8 sps:$4 sm:$0xff]  }
 0x5fc   : > { %9094 = vmatpush1.bf16.msra.mxu0 %v12153_v22  ;;  %v12219_v22 = vld [vmem:[%s16297_s5 + $0x4e0] ss:$8 sps:$4 sm:$0xff]  }
 0x5fd   : > { %9095 = vmatprep.subr.bf16.mxu0 %v12158_v44  ;;  %v12224_v44 = vld [vmem:[%s16297_s5 + $0x4f4] ss:$8 sps:$4 sm:$0xff]  }
 0x600   : > { %9096 = vmatpush1.bf16.msra.mxu0 %v12156_v51  ;;  %v12222_v51 = vld [vmem:[%s16297_s5 + $0x4f0] ss:$8 sps:$4 sm:$0xff]  }
 0x601   : > { %9097 = vmatprep.subr.bf16.mxu0 %v12161_v54  ;;  %v7768_v54 = vrot.slane %v15790_v4, 2 }
 0x604   : > { %9098 = vmatpush1.bf16.msra.mxu0 %v12159_v42  ;;  %v12227_v42 = vld [vmem:[%s16297_s5 + $0x504] ss:$8 sps:$4 sm:$0xff]  }
 0x605   : > { %9099 = vmatprep.subr.bf16.mxu0 %v12164_v57  ;;  %v7774_v57 = vrot.slane %v15790_v4, 3  ;;  %v12233_v4 = vld [vmem:[%s16297_s5 + $0x524] ss:$8 sps:$4 sm:$0xff]  }
 0x608   : > { %9100 = vmatpush1.bf16.msra.mxu0 %v12162_v32  ;;  %v12225_v32 = vld [vmem:[%s16297_s5 + $0x500] ss:$8 sps:$4 sm:$0xff]  }
 0x609   : > { %9101 = vmatprep.subr.bf16.mxu0 %v12167_v14  ;;  %v7786_v14 = vpack.c.bf16 %v7768_v54, %v7768_v54 }
 0x60c   : > { %9102 = vmatpush1.bf16.msra.mxu0 %v12165_v25  ;;  %v12230_v25 = vld [vmem:[%s16297_s5 + $0x514] ss:$8 sps:$4 sm:$0xff]  }
 0x60d   : > { %9103 = vmatprep.subr.bf16.mxu0 %v12170_v29  ;;  %v7789_v29 = vpack.c.bf16 %v7774_v57, %v7774_v57 }
 0x610   : > { %9104 = vmatpush1.bf16.msra.mxu0 %v12168_v47  ;;  %v12228_v47 = vld [vmem:[%s16297_s5 + $0x510] ss:$8 sps:$4 sm:$0xff]  }
 0x611   : > { %9105 = vmatprep.subr.bf16.mxu0 %v12173_v1  ;;  %v12231_v1 = vld [vmem:[%s16297_s5 + $0x520] ss:$8 sps:$4 sm:$0xff]  }
 0x614   : > { %9106 = vmatpush1.bf16.msra.mxu0 %v12171_v53  ;;  %v12236_v53 = vld [vmem:[%s16297_s5 + $0x534] ss:$8 sps:$4 sm:$0xff]  }
 0x615   : > { %9107 = vmatprep.subr.bf16.mxu0 %v12176_v12  ;;  %v12234_v12 = vld [vmem:[%s16297_s5 + $0x530] ss:$8 sps:$4 sm:$0xff]  }
 0x618   : > { %9108 = vmatpush1.bf16.msra.mxu0 %v12174_v10  ;;  %v12239_v10 = vld [vmem:[%s16297_s5 + $0x544] ss:$8 sps:$4 sm:$0xff]  }
 0x619   : > { %9118 = vmatprep.subr.bf16.mxu0 %v12179_v7  ;;  %v12242_v7 = vld [vmem:[%s16297_s5 + $0x554] ss:$8 sps:$4 sm:$0xff]  }
 0x61b   : > { %9110 = vmatmul.mubr.bf16.vlgmr.msra.gmra.mrb[56].mxu0 %v7784_v50  ;;  %v12243_v50 = vld [vmem:[%s16297_s5 + $0x560] ss:$8 sps:$4 sm:$0xff]  }
 0x61c   : > { %9119 = vmatpush1.bf16.msra.mxu0 %v12177_v38  ;;  %9150 = vmatprep.mubr.bf16.mxu0 %v7787_v20  ;;  %v12245_v38 = vld [vmem:[%s16297_s5 + $0x564] ss:$8 sps:$4 sm:$0xff]   ;;  %v12246_v20 = vld [vmem:[%s16297_s5 + $0x570] ss:$8 sps:$4 sm:$0xff]  }
 0x61d   : > { %9120 = vmatprep.subr.bf16.mxu0 %v12182_v28  ;;  %v12248_v28 = vld [vmem:[%s16297_s5 + $0x574] ss:$8 sps:$4 sm:$0xff]  }
 0x620   : > { %9121 = vmatpush1.bf16.msra.mxu0 %v12180_v15  ;;  %v12252_v15 = vld [vmem:[%s16297_s5 + $0x590] ss:$8 sps:$4 sm:$0xff]  }
 0x621   : > { %9122 = vmatprep.subr.bf16.mxu0 %v12185_v35  ;;  %v12257_v35 = vld [vmem:[%s16297_s5 + $0x5a4] ss:$8 sps:$4 sm:$0xff]  }
 0x624   : > { %9123 = vmatpush1.bf16.msra.mxu0 %v12183_v0  ;;  %v12258_v0 = vld [vmem:[%s16297_s5 + $0x5b0] ss:$8 sps:$4 sm:$0xff]  }
 0x625   : > { %9124 = vmatprep.subr.bf16.mxu0 %v12188_v3  ;;  %v12263_v3 = vld [vmem:[%s16297_s5 + $0x5c4] ss:$8 sps:$4 sm:$0xff]  }
 0x628   : > { %9125 = vmatpush1.bf16.msra.mxu0 %v12186_v26  ;;  %v12264_v26 = vld [vmem:[%s16297_s5 + $0x5d0] ss:$8 sps:$4 sm:$0xff]  }
 0x629   : > { %9126 = vmatprep.subr.bf16.mxu0 %v12191_v5  ;;  %v12269_v5 = vld [vmem:[%s16297_s5 + $0x5e4] ss:$8 sps:$4 sm:$0xff]  }
 0x62c   : > { %9127 = vmatpush1.bf16.msra.mxu0 %v12189_v18  ;;  %v12270_v18 = vld [vmem:[%s16297_s5 + $0x5f0] ss:$8 sps:$4 sm:$0xff]  }
 0x62d   : > { %9128 = vmatprep.subr.bf16.mxu0 %v12194_v63  ;;  %v7773_v63 = vrot.slane %v15692_v8, 3  ;;  %v12288_v8 = vld [vmem:[%s16299_s7 + $0x38] sm:$0xff]  }
 0x62f   : > { %v7788_v59 = vpack.c.bf16 %v7773_v63, %v7773_v63 }
 0x630   : > { %9129 = vmatpush1.bf16.msra.mxu0 %v12192_v62  ;;  %v12286_v62 = vld [vmem:[%s16299_s7 + $0x30] sm:$0xff]  }
 0x631   : > { %9130 = vmatprep.subr.bf16.mxu0 %v12197_v37  ;;  %v12287_v37 = vld [vmem:[%s16299_s7 + $0x78] sm:$0xff]   ;;  %10831 = vmatpush3.bf16.msra.mxu1 %v12286_v62 }
 0x632   : > { %10832 = vmatprep.subr.bf16.mxu1 %v12287_v37 }
 0x634   : > { %9131 = vmatpush1.bf16.msra.mxu0 %v12195_v23  ;;  %v8947_v23 = vrot.slane %v7982_v36, %v12718_v30  ;;  %v9236_v30 = vld [vmem:[%s16300_s8] sm:$0x1] }
 0x635   : > { %9132 = vmatprep.subr.bf16.mxu0 %v12200_v49  ;;  %10833 = vmatpush3.bf16.msra.mxu1 %v12288_v8  ;;  %v8951_v49 = vrot.slane %v7982_v36, %v12721_v31 }
 0x638   : > { %9133 = vmatpush1.bf16.msra.mxu0 %v12198_v11 }
 0x639   : > { %9134 = vmatprep.subr.bf16.mxu0 %v12203_v34 }
 0x63c   : > { %9135 = vmatpush1.bf16.msra.mxu0 %v12201_v6 }
 0x63d   : > { %9136 = vmatprep.subr.bf16.mxu0 %v12206_v27 }
 0x640   : > { %9137 = vmatpush1.bf16.msra.mxu0 %v12204_v40 }
 0x641   : > { %9138 = vmatprep.subr.bf16.mxu0 %v12209_v19 }
 0x644   : > { %9139 = vmatpush1.bf16.msra.mxu0 %v12207_v13 }
 0x645   : > { %9140 = vmatprep.subr.bf16.mxu0 %v12212_v16 }
 0x648   : > { %9141 = vmatpush1.bf16.msra.mxu0 %v12210_v24 }
 0x649   : > { %9142 = vmatprep.subr.bf16.mxu0 %v12215_v45 }
 0x64c   : > { %9143 = vmatpush1.bf16.msra.mxu0 %v12213_v52 }
 0x64d   : > { %9144 = vmatprep.subr.bf16.mxu0 %v12218_v17 }
 0x650   : > { %9145 = vmatpush1.bf16.msra.mxu0 %v12216_v46 }
 0x651   : > { %9146 = vmatprep.subr.bf16.mxu0 %v12221_v55 }
 0x654   : > { %9147 = vmatpush1.bf16.msra.mxu0 %v12219_v22 }
 0x655   : > { %9148 = vmatprep.subr.bf16.mxu0 %v12224_v44 }
 0x658   : > { %9149 = vmatpush1.bf16.msra.mxu0 %v12222_v51 }
 0x659   : > { %9159 = vmatprep.subr.bf16.mxu0 %v12227_v42 }
 0x65b   : > { %9151 = vmatmul.mubr.bf16.vlgmr.msra.gmra.mrb[56].mxu0 %v7786_v14 }
 0x65c   : > { %9160 = vmatpush1.bf16.msra.mxu0 %v12225_v32  ;;  %9191 = vmatprep.mubr.bf16.mxu0 %v7789_v29 }
 0x65d   : > { %9161 = vmatprep.subr.bf16.mxu0 %v12230_v25 }
 0x660   : > { %9162 = vmatpush1.bf16.msra.mxu0 %v12228_v47 }
 0x661   : > { %9163 = vmatprep.subr.bf16.mxu0 %v12233_v4 }
 0x664   : > { %9164 = vmatpush1.bf16.msra.mxu0 %v12231_v1 }
 0x665   : > { %9165 = vmatprep.subr.bf16.mxu0 %v12236_v53 }
 0x668   : > { %9166 = vmatpush1.bf16.msra.mxu0 %v12234_v12 }
 0x669   : > { %9167 = vmatprep.subr.bf16.mxu0 %v12239_v10 }
 0x66c   : > { %9168 = vmatpush1.bf16.msra.mxu0 %v12237_v41 }
 0x66d   : > { %9169 = vmatprep.subr.bf16.mxu0 %v12242_v7 }
 0x670   : > { %9170 = vmatpush1.bf16.msra.mxu0 %v12240_v48 }
 0x671   : > { %9171 = vmatprep.subr.bf16.mxu0 %v12245_v38 }
 0x674   : > { %9172 = vmatpush1.bf16.msra.mxu0 %v12243_v50 }
 0x675   : > { %9173 = vmatprep.subr.bf16.mxu0 %v12248_v28 }
 0x678   : > { %9174 = vmatpush1.bf16.msra.mxu0 %v12246_v20 }
 0x679   : > { %9175 = vmatprep.subr.bf16.mxu0 %v12251_v61 }
 0x67c   : > { %9176 = vmatpush1.bf16.msra.mxu0 %v12249_v60 }
 0x67d   : > { %9177 = vmatprep.subr.bf16.mxu0 %v12254_v2 }
 0x680   : > { %9178 = vmatpush1.bf16.msra.mxu0 %v12252_v15 }
 0x681   : > { %9179 = vmatprep.subr.bf16.mxu0 %v12257_v35 }
 0x684   : > { %9180 = vmatpush1.bf16.msra.mxu0 %v12255_v56 }
 0x685   : > { %9181 = vmatprep.subr.bf16.mxu0 %v12260_v39 }
 0x688   : > { %9182 = vmatpush1.bf16.msra.mxu0 %v12258_v0 }
 0x689   : > { %9183 = vmatprep.subr.bf16.mxu0 %v12263_v3 }
 0x68c   : > { %9184 = vmatpush1.bf16.msra.mxu0 %v12261_v58 }
 0x68d   : > { %9185 = vmatprep.subr.bf16.mxu0 %v12266_v33 }
 0x690   : > { %9186 = vmatpush1.bf16.msra.mxu0 %v12264_v26 }
 0x691   : > { %9187 = vmatprep.subr.bf16.mxu0 %v12269_v5 }
 0x694   : > { %9188 = vmatpush1.bf16.msra.mxu0 %v12267_v21 }
 0x695   : > { %9189 = vmatprep.subr.bf16.mxu0 %v12272_v9 }
 0x698   : > { %9190 = vmatpush1.bf16.msra.mxu0 %v12270_v18 }
 0x69b   : > { %9192 = vmatmul.mubr.bf16.vlgmr.msra.gmra.mrb[56].mxu0 %v7788_v59 }
 0x76e   : > { %v9193_v11 = vpop.f32.mrb[56].mxu0 }
 0x76f   : > { %v10840_v34 = vadd.f32 %v9193_v11, %v8947_v23  ;;  %v9195_v6 = vpop.f32.mrb[57].mxu0 }
 0x770   : > { %v10841_v27 = vadd.f32 %v9195_v6, %v8951_v49  ;;  %v9197_v40 = vpop.f32.mrb[58].mxu0 }
 0x771   : > { %v9200_v19 = vmax.f32 %v10840_v34, 0.0  ;;  %v9198_v13 = vpop.f32.mrb[59].mxu0 }
 0x772   : > { %v9201_v16 = vmax.f32 %v10841_v27, 0.0 }
 0x773   : > { %v9202_v45 = vpack.c.bf16 %v9200_v19, %v9200_v19 }
 0x774   : > { %v9203_v24 = vpack.c.bf16 %v9201_v16, %v9201_v16 }
 0x776   : > { %9365 = vmatprep.mubr.bf16.mxu1 %v9203_v24 }
 0x777   : > { %9366 = vmatmul.mubr.bf16.vlgmr.msra.gmra.mrb[88].mxu1 %v9202_v45 }
 0x84a   : > { %v10834_v52 = vpop.f32.mrb[88].mxu1 }
 0x84b   : > { %v10835_v31 = vpop.f32.mrb[89].mxu1 }
 0x84c   : > { %v10836_v17 = vadd.f32 %v10835_v31, %v10834_v52  ;;  %v10837_v46 = vpop.f32.mrb[90].mxu1 }
 0x84d   : > { %v10838_v55 = vpop.f32.mrb[91].mxu1 }
 0x84e   : > { %v9368_v22 = vadd.f32 %v10836_v17, %v9236_v30 }
 0x850   : > { %9373 = vst [vmem:[%s324_s22] sm:$0x1] %v9368_v22 }
 0x851   : > { %12302 = shalt.err (!%p12299_p3)
}
 0x852   : > { %s12303_s16 = scalar_lea.hbm %s16250_s26, 16  ;;  %s12307_s22 = scalar_lea.hbm %s16301_s9, 32 }
 0x853   : > { %p12304_p4 = scmp.ne.s32.totalorder %s16250_s26, %s12303_s16  ;;  %p12308_p9 = scmp.lt.u32.totalorder %s16250_s26, %s16301_s9 }
 0x854   : > { %p12309_p10 = scmp.lt.u32.totalorder %s12307_s22, %s12303_s16  ;;  %p12311_p12 = scmp.lt.u32.totalorder %s12303_s16, %s16250_s26 }
 0x855   : > { %p12305_p7 = pnand %p12304_p4, %p12442_p5 }
 0x856   : > { %p12310_p11 = por %p12309_p10, %p12308_p9 }
 0x857   : > { %p12306_p8 = pneg %p12305_p7 }
 0x858   : > { %p12312_p13 = por %p12311_p12, %p12310_p11 }
 0x85a   : > { %p12313_p0 = pnand %p12312_p13, %p12306_p8 }
 0x85c   : > { %12316 = shalt.err (!%p12313_p0)
}
 0x85d   : > { %10863 = dma.vmem_to_hbm [thread:$0]  (%p12442_p5), %s16252_s23, 16, %s16250_s26, %s9375_s28  }
 0x85e PF: > { %p10869_p1 = scmp.ge.s32.totalorder %s12351_s12, 2  ;;  %s9399_s25 = sand.u32 1, %s12339_s30  }
 0x85f   : > { %s9400_s13 = scalar_lea.sflag [#allocation4], %s9399_s25 }
 0x860   : > { %p10866_p2 = pnand %p10869_p1, %p12446_p6 }
 0x862   : > { %12334 = dma.done.wait (!%p10866_p2), %s9400_s13, 16  }
 0x863   : > { %12336 = vsyncadd (!%p10866_p2), %s9400_s13, 4294967280  ;;  %p19_p3 = scmp.ge.s32.totalorder %s12429_s15, 4   ;;  %s16304_s30 = smov %s12343_s10 }
 0x864   : > { %s16305_s10 = smov %s12347_s11  ;;  %s16306_s11 = smov %s12440_s18 }
 0x865   : > { %s16307_s12 = smov %s12429_s15  ;;  %21 = sbr.rel (!%p19_p3) target bundleno = 3 (0x3), region = 126 }
 0x86c   :  { %9404 = vsyncpa [#allocation4], 1 }
 0x86d   :  { %9406 = vsyncpa [#allocation4 + $0x1], 1 }

</bundles_post_ra>
